<compile_context>
chip_gen: v6e
topology: v6e:2x2x1
jax: 0.10.0
libtpu: 0.0.40
codegen_flags: <defaults>
</compile_context>

<pallas_src>
import jax
import jax.numpy as jnp
from jax.experimental import pallas as pl
from jax.experimental.pallas import tpu as pltpu

C = 48          # ResidualBlock hard-codes 48 -> 48 channels
KH = KW = 3     # 3x3 conv, stride 1, padding 1
EPS = 1e-5      # nn.InstanceNorm2d default eps (affine=False, biased variance)


def _instance_norm(acc):
    """Per-channel (row) norm over the lane (spatial) axis. acc: (C, HW) f32."""
    mean = jnp.mean(acc, axis=1, keepdims=True)
    var = jnp.mean(acc * acc, axis=1, keepdims=True) - mean * mean
    return (acc - mean) * jax.lax.rsqrt(jnp.maximum(var, 0.0) + EPS)


def _conv3x3(src_ref, w_mat, mask_l, mask_r, W, HW):
    """3x3 'same' conv as one tap-packed MXU matmul.

    src_ref : (C, (H+2)*W + 2) ref — spatially flattened input with one zero row of
              padding above/below plus one extra zero element at each end.
    w_mat   : (C, 9*C) packed weights, tap-major (t = ky*3 + kx).
    mask_l/r: (1, HW) lane masks killing the column that a +-1 horizontal tap shift
              would otherwise wrap across a row boundary.
    Returns (C, HW) f32.
    """
    taps = []
    for ky in range(KH):
        for kx in range(KW):
            t = src_ref[:, pl.ds(ky * W + kx, HW)]      # (C, HW) lane-offset load
            if kx == 0:                                  # source col w-1 invalid at w == 0
                t = t * mask_l
            elif kx == KW - 1:                           # source col w+1 invalid at w == W-1
                t = t * mask_r
            taps.append(t)
    rhs = jnp.concatenate(taps, axis=0)                  # (9*C, HW) im2col, K packed to 432
    return jnp.dot(w_mat, rhs, preferred_element_type=jnp.float32)


def _make_kernel(H, W, bt, mm_dtype):
    HW = H * W
    PADW = W + 1

    def kernel(xp_ref, w1_ref, w2_ref, masks_ref, out_ref, ypad_ref):
        w1 = w1_ref[...]                       # (C, 9C)
        w2 = w2_ref[...]
        mask_l = masks_ref[0:1, :]             # (1, HW): 0 where w == 0
        mask_r = masks_ref[1:2, :]             # (1, HW): 0 where w == W-1

        # Keep the scratch's halo zeroed.  Done every step (not gated on program_id==0)
        # so it stays correct when the parallel grid axis is split across TensorCores;
        # it is only 2*(W+1) lanes x C sublanes.
        ypad_ref[:, pl.ds(0, PADW)] = jnp.zeros((C, PADW), mm_dtype)
        ypad_ref[:, pl.ds(PADW + HW, PADW)] = jnp.zeros((C, PADW), mm_dtype)

        for b in range(bt):                    # static unroll over images in this block
            xb = xp_ref.at[b]                  # (C, (H+2)*W + 2) ref view

            # ---- conv1 -> InstanceNorm -> ReLU (bias is dead under InstanceNorm)
            acc1 = _conv3x3(xb, w1, mask_l, mask_r, W, HW)
            y1 = jnp.maximum(_instance_norm(acc1), 0.0)

            # ---- re-pad the intermediate activation (interior only; halo stays zero)
            ypad_ref[:, pl.ds(PADW, HW)] = y1.astype(mm_dtype)

            # ---- conv2 -> InstanceNorm
            acc2 = _conv3x3(ypad_ref, w2, mask_l, mask_r, W, HW)
            y2 = _instance_norm(acc2)

            # ---- residual add + ReLU
            residual = xb[:, pl.ds(PADW, HW)].astype(jnp.float32)
            out_ref[b] = jnp.maximum(y2 + residual, 0.0)

    return kernel


def residual_block(x_nchw, w1, b1, w2, b2, *, matmul_dtype=jnp.bfloat16):
    """ResidualBlock forward.

    x_nchw : (N, 48, H, W) float32
    w1, w2 : (48, 48, 3, 3) OIHW conv weights
    b1, b2 : (48,) conv biases — accepted for API parity but unused: a per-channel
             constant is exactly cancelled by InstanceNorm2d's mean subtraction.
    matmul_dtype : dtype of the MXU operands (activations / packed weights); bf16 gives
             2x MXU rate and half the input DMA.  Norm / residual math stays f32.
    """
    del b1, b2
    N, Cin, H, W = x_nchw.shape
    assert Cin == C, f"ResidualBlock is hard-wired to {C} channels"
    HW = H * W
    L = (H + 2) * W + 2        # flattened spatial + 1-row halo top/bottom + 1 elem each end

    # NCHW -> (N, C, H*W) is a free view of contiguous data; pad the flattened spatial
    # axis so every conv tap is a static lane-offset slice inside the kernel.
    x_flat = x_nchw.reshape(N, C, HW).astype(matmul_dtype)
    xp = jnp.pad(x_flat, ((0, 0), (0, 0), (W + 1, W + 1)))

    # OIHW -> (C_out, 9*C_in), tap-major (t = ky*3 + kx) to match the kernel's im2col rows.
    w1m = jnp.transpose(w1, (0, 2, 3, 1)).reshape(C, KH * KW * C).astype(matmul_dtype)
    w2m = jnp.transpose(w2, (0, 2, 3, 1)).reshape(C, KH * KW * C).astype(matmul_dtype)

    # Lane masks for the two horizontally-shifted tap columns that would otherwise wrap.
    col = jnp.arange(HW, dtype=jnp.int32) % W
    masks = jnp.stack([(col != 0), (col != W - 1)]).astype(matmul_dtype)   # (2, HW)

    # Block a couple of images per grid step to amortise per-step overhead, but keep at
    # least 2 grid steps so both v7x TensorCores get work.
    bt = 2 if (N % 2 == 0 and N >= 4) else 1
    grid = (N // bt,)

    kernel = _make_kernel(H, W, bt, matmul_dtype)
    # TODO(synk): for very large images add a row-strip grid axis with a 1-row halo and
    # two-pass InstanceNorm statistics (whole-image blocks won't fit v7x's 64 MiB VMEM).
    out_flat = pl.pallas_call(
        kernel,
        out_shape=jax.ShapeDtypeStruct((N, C, HW), jnp.float32),
        grid_spec=pltpu.PrefetchScalarGridSpec(
            num_scalar_prefetch=0,
            grid=grid,
            in_specs=[
                pl.BlockSpec((bt, C, L), lambda n: (n, 0, 0)),
                pl.BlockSpec((C, KH * KW * C), lambda n: (0, 0)),
                pl.BlockSpec((C, KH * KW * C), lambda n: (0, 0)),
                pl.BlockSpec((2, HW), lambda n: (0, 0)),
            ],
            out_specs=pl.BlockSpec((bt, C, HW), lambda n: (n, 0, 0)),
            scratch_shapes=[pltpu.VMEM((C, L), matmul_dtype)],
        ),
        compiler_params=pltpu.CompilerParams(
            dimension_semantics=("parallel",),
            vmem_limit_bytes=64 * 1024 * 1024,
        ),
    )(xp, w1m, w2m, masks)

    return out_flat.reshape(N, C, H, W)


def _reference(x_nchw, w1, b1, w2, b2):
    """Pure-JAX reference mirroring the PyTorch module (with biases)."""
    def conv(x, w, b):
        y = jax.lax.conv_general_dilated(
            x, w, window_strides=(1, 1), padding=((1, 1), (1, 1)),
            dimension_numbers=("NCHW", "OIHW", "NCHW"))
        return y + b[None, :, None, None]

    def inorm(x):
        m = jnp.mean(x, axis=(2, 3), keepdims=True)
        v = jnp.mean((x - m) ** 2, axis=(2, 3), keepdims=True)
        return (x - m) * jax.lax.rsqrt(v + EPS)

    y = jax.nn.relu(inorm(conv(x_nchw, w1, b1)))
    y = inorm(conv(y, w2, b2))
    return jax.nn.relu(y + x_nchw)


if __name__ == "__main__":
    key = jax.random.PRNGKey(0)
    k1, k2, k3, k4, k5 = jax.random.split(key, 5)

    N, H, W = 2, 16, 16
    x = jax.random.normal(k1, (N, C, H, W), jnp.float32)

    # deterministic synthetic params (PyTorch-style uniform(-1/sqrt(fan_in), 1/sqrt(fan_in)))
    fan_in = C * KH * KW
    scale = 1.0 / (fan_in ** 0.5)
    w1 = jax.random.uniform(k2, (C, C, KH, KW), jnp.float32, -scale, scale)
    b1 = jax.random.uniform(k3, (C,), jnp.float32, -scale, scale)
    w2 = jax.random.uniform(k4, (C, C, KH, KW), jnp.float32, -scale, scale)
    b2 = jax.random.uniform(k5, (C,), jnp.float32, -scale, scale)

    ref = _reference(x, w1, b1, w2, b2)

    # f32 MXU path: must match the reference tightly.
    out_f32 = jax.block_until_ready(
        residual_block(x, w1, b1, w2, b2, matmul_dtype=jnp.float32))
    assert out_f32.shape == ref.shape == (N, C, H, W)
    err_f32 = float(jnp.max(jnp.abs(out_f32 - ref)))
    assert err_f32 < 1e-3, f"f32 path max abs err {err_f32}"

    # bf16 MXU path (default, fast): error bounded by bf16 operand rounding.
    out_bf16 = jax.block_until_ready(residual_block(x, w1, b1, w2, b2))
    err_bf16 = float(jnp.max(jnp.abs(out_bf16 - ref)))
    assert err_bf16 < 6e-2, f"bf16 path max abs err {err_bf16}"

    print("KERNEL_OK")
</pallas_src>

<mosaic_0001>
module attributes {stable_mosaic.version = 11 : i64} {
  func.func @kernel(%arg0: i32, %arg1: memref<1x48x290xf32, #tpu.memory_space<vmem>>, %arg2: memref<48x432xf32, #tpu.memory_space<vmem>>, %arg3: memref<48x432xf32, #tpu.memory_space<vmem>>, %arg4: memref<2x256xf32, #tpu.memory_space<vmem>>, %arg5: memref<1x48x256xf32, #tpu.memory_space<vmem>>, %arg6: memref<48x290xf32, #tpu.memory_space<vmem>>) attributes {dimension_semantics = [#tpu.dimension_semantics<parallel>], iteration_bounds = array<i64: 2>, scalar_prefetch = 0 : i64, scratch_operands = 1 : i64, tpu.core_type = #tpu.core_type<tc>, window_params = [{transform_indices = @transform_0, window_bounds = array<i64: 1, 48, 290>}, {pipeline_mode = #tpu.pipeline_mode<synchronous>, transform_indices = @transform_1, window_bounds = array<i64: 48, 432>}, {pipeline_mode = #tpu.pipeline_mode<synchronous>, transform_indices = @transform_2, window_bounds = array<i64: 48, 432>}, {pipeline_mode = #tpu.pipeline_mode<synchronous>, transform_indices = @transform_3, window_bounds = array<i64: 2, 256>}, {transform_indices = @transform_4, window_bounds = array<i64: 1, 48, 256>}]} {
    %c0 = arith.constant 0 : index
    %c0_0 = arith.constant 0 : index
    %0 = vector.load %arg2[%c0, %c0_0] : memref<48x432xf32, #tpu.memory_space<vmem>>, vector<48x432xf32>
    %c0_1 = arith.constant 0 : index
    %c0_2 = arith.constant 0 : index
    %1 = vector.load %arg3[%c0_1, %c0_2] : memref<48x432xf32, #tpu.memory_space<vmem>>, vector<48x432xf32>
    %c0_3 = arith.constant 0 : index
    %c0_4 = arith.constant 0 : index
    %2 = vector.load %arg4[%c0_3, %c0_4] : memref<2x256xf32, #tpu.memory_space<vmem>>, vector<1x256xf32>
    %c1 = arith.constant 1 : index
    %c0_5 = arith.constant 0 : index
    %3 = vector.load %arg4[%c1, %c0_5] : memref<2x256xf32, #tpu.memory_space<vmem>>, vector<1x256xf32>
    %cst = arith.constant 0.000000e+00 : f32
    %4 = vector.broadcast %cst : f32 to vector<48x17xf32>
    %c0_6 = arith.constant 0 : index
    %c0_7 = arith.constant 0 : index
    %5 = vector.load %arg6[%c0_6, %c0_7] : memref<48x290xf32, #tpu.memory_space<vmem>>, vector<48x17xf32>
    tpu.vector_store %arg6[%c0_6, %c0_7], %4 {strides = array<i32>} : memref<48x290xf32, #tpu.memory_space<vmem>>, vector<48x17xf32>,
    %cst_8 = arith.constant 0.000000e+00 : f32
    %6 = vector.broadcast %cst_8 : f32 to vector<48x17xf32>
    %c0_9 = arith.constant 0 : index
    %c273 = arith.constant 273 : index
    %7 = vector.load %arg6[%c0_9, %c273] : memref<48x290xf32, #tpu.memory_space<vmem>>, vector<48x17xf32>
    tpu.vector_store %arg6[%c0_9, %c273], %6 {strides = array<i32>} : memref<48x290xf32, #tpu.memory_space<vmem>>, vector<48x17xf32>,
    %c0_i32 = arith.constant 0 : i32
    %c0_i32_10 = arith.constant 0 : i32
    %c0_i32_11 = arith.constant 0 : i32
    %8 = tpu.memref_slice %arg1[%c0_i32, %c0_i32_10, %c0_i32_11] : memref<1x48x290xf32, #tpu.memory_space<vmem>> -> memref<1x48x290xf32, #tpu.memory_space<vmem>>
    %9 = tpu.memref_squeeze %8 : memref<1x48x290xf32, #tpu.memory_space<vmem>> -> memref<48x290xf32, #tpu.memory_space<vmem>>
    %c0_12 = arith.constant 0 : index
    %c0_13 = arith.constant 0 : index
    %10 = vector.load %9[%c0_12, %c0_13] : memref<48x290xf32, #tpu.memory_space<vmem>>, vector<48x256xf32>
    %11 = vector.broadcast %2 : vector<1x256xf32> to vector<48x256xf32>
    %12 = arith.mulf %10, %11 : vector<48x256xf32>
    %c0_i32_14 = arith.constant 0 : i32
    %c0_i32_15 = arith.constant 0 : i32
    %c0_i32_16 = arith.constant 0 : i32
    %13 = tpu.memref_slice %arg1[%c0_i32_14, %c0_i32_15, %c0_i32_16] : memref<1x48x290xf32, #tpu.memory_space<vmem>> -> memref<1x48x290xf32, #tpu.memory_space<vmem>>
    %14 = tpu.memref_squeeze %13 : memref<1x48x290xf32, #tpu.memory_space<vmem>> -> memref<48x290xf32, #tpu.memory_space<vmem>>
    %c0_17 = arith.constant 0 : index
    %c1_18 = arith.constant 1 : index
    %15 = vector.load %14[%c0_17, %c1_18] : memref<48x290xf32, #tpu.memory_space<vmem>>, vector<48x256xf32>
    %c0_i32_19 = arith.constant 0 : i32
    %c0_i32_20 = arith.constant 0 : i32
    %c0_i32_21 = arith.constant 0 : i32
    %16 = tpu.memref_slice %arg1[%c0_i32_19, %c0_i32_20, %c0_i32_21] : memref<1x48x290xf32, #tpu.memory_space<vmem>> -> memref<1x48x290xf32, #tpu.memory_space<vmem>>
    %17 = tpu.memref_squeeze %16 : memref<1x48x290xf32, #tpu.memory_space<vmem>> -> memref<48x290xf32, #tpu.memory_space<vmem>>
    %c0_22 = arith.constant 0 : index
    %c2 = arith.constant 2 : index
    %18 = vector.load %17[%c0_22, %c2] : memref<48x290xf32, #tpu.memory_space<vmem>>, vector<48x256xf32>
    %19 = vector.broadcast %3 : vector<1x256xf32> to vector<48x256xf32>
    %20 = arith.mulf %18, %19 : vector<48x256xf32>
    %c0_i32_23 = arith.constant 0 : i32
    %c0_i32_24 = arith.constant 0 : i32
    %c0_i32_25 = arith.constant 0 : i32
    %21 = tpu.memref_slice %arg1[%c0_i32_23, %c0_i32_24, %c0_i32_25] : memref<1x48x290xf32, #tpu.memory_space<vmem>> -> memref<1x48x290xf32, #tpu.memory_space<vmem>>
    %22 = tpu.memref_squeeze %21 : memref<1x48x290xf32, #tpu.memory_space<vmem>> -> memref<48x290xf32, #tpu.memory_space<vmem>>
    %c0_26 = arith.constant 0 : index
    %c16 = arith.constant 16 : index
    %23 = vector.load %22[%c0_26, %c16] : memref<48x290xf32, #tpu.memory_space<vmem>>, vector<48x256xf32>
    %24 = vector.broadcast %2 : vector<1x256xf32> to vector<48x256xf32>
    %25 = arith.mulf %23, %24 : vector<48x256xf32>
    %c0_i32_27 = arith.constant 0 : i32
    %c0_i32_28 = arith.constant 0 : i32
    %c0_i32_29 = arith.constant 0 : i32
    %26 = tpu.memref_slice %arg1[%c0_i32_27, %c0_i32_28, %c0_i32_29] : memref<1x48x290xf32, #tpu.memory_space<vmem>> -> memref<1x48x290xf32, #tpu.memory_space<vmem>>
    %27 = tpu.memref_squeeze %26 : memref<1x48x290xf32, #tpu.memory_space<vmem>> -> memref<48x290xf32, #tpu.memory_space<vmem>>
    %c0_30 = arith.constant 0 : index
    %c17 = arith.constant 17 : index
    %28 = vector.load %27[%c0_30, %c17] : memref<48x290xf32, #tpu.memory_space<vmem>>, vector<48x256xf32>
    %c0_i32_31 = arith.constant 0 : i32
    %c0_i32_32 = arith.constant 0 : i32
    %c0_i32_33 = arith.constant 0 : i32
    %29 = tpu.memref_slice %arg1[%c0_i32_31, %c0_i32_32, %c0_i32_33] : memref<1x48x290xf32, #tpu.memory_space<vmem>> -> memref<1x48x290xf32, #tpu.memory_space<vmem>>
    %30 = tpu.memref_squeeze %29 : memref<1x48x290xf32, #tpu.memory_space<vmem>> -> memref<48x290xf32, #tpu.memory_space<vmem>>
    %c0_34 = arith.constant 0 : index
    %c18 = arith.constant 18 : index
    %31 = vector.load %30[%c0_34, %c18] : memref<48x290xf32, #tpu.memory_space<vmem>>, vector<48x256xf32>
    %32 = vector.broadcast %3 : vector<1x256xf32> to vector<48x256xf32>
    %33 = arith.mulf %31, %32 : vector<48x256xf32>
    %c0_i32_35 = arith.constant 0 : i32
    %c0_i32_36 = arith.constant 0 : i32
    %c0_i32_37 = arith.constant 0 : i32
    %34 = tpu.memref_slice %arg1[%c0_i32_35, %c0_i32_36, %c0_i32_37] : memref<1x48x290xf32, #tpu.memory_space<vmem>> -> memref<1x48x290xf32, #tpu.memory_space<vmem>>
    %35 = tpu.memref_squeeze %34 : memref<1x48x290xf32, #tpu.memory_space<vmem>> -> memref<48x290xf32, #tpu.memory_space<vmem>>
    %c0_38 = arith.constant 0 : index
    %c32 = arith.constant 32 : index
    %36 = vector.load %35[%c0_38, %c32] : memref<48x290xf32, #tpu.memory_space<vmem>>, vector<48x256xf32>
    %37 = vector.broadcast %2 : vector<1x256xf32> to vector<48x256xf32>
    %38 = arith.mulf %36, %37 : vector<48x256xf32>
    %c0_i32_39 = arith.constant 0 : i32
    %c0_i32_40 = arith.constant 0 : i32
    %c0_i32_41 = arith.constant 0 : i32
    %39 = tpu.memref_slice %arg1[%c0_i32_39, %c0_i32_40, %c0_i32_41] : memref<1x48x290xf32, #tpu.memory_space<vmem>> -> memref<1x48x290xf32, #tpu.memory_space<vmem>>
    %40 = tpu.memref_squeeze %39 : memref<1x48x290xf32, #tpu.memory_space<vmem>> -> memref<48x290xf32, #tpu.memory_space<vmem>>
    %c0_42 = arith.constant 0 : index
    %c33 = arith.constant 33 : index
    %41 = vector.load %40[%c0_42, %c33] : memref<48x290xf32, #tpu.memory_space<vmem>>, vector<48x256xf32>
    %c0_i32_43 = arith.constant 0 : i32
    %c0_i32_44 = arith.constant 0 : i32
    %c0_i32_45 = arith.constant 0 : i32
    %42 = tpu.memref_slice %arg1[%c0_i32_43, %c0_i32_44, %c0_i32_45] : memref<1x48x290xf32, #tpu.memory_space<vmem>> -> memref<1x48x290xf32, #tpu.memory_space<vmem>>
    %43 = tpu.memref_squeeze %42 : memref<1x48x290xf32, #tpu.memory_space<vmem>> -> memref<48x290xf32, #tpu.memory_space<vmem>>
    %c0_46 = arith.constant 0 : index
    %c34 = arith.constant 34 : index
    %44 = vector.load %43[%c0_46, %c34] : memref<48x290xf32, #tpu.memory_space<vmem>>, vector<48x256xf32>
    %45 = vector.broadcast %3 : vector<1x256xf32> to vector<48x256xf32>
    %46 = arith.mulf %44, %45 : vector<48x256xf32>
    %47 = tpu.concatenate %12, %15, %20, %25, %28, %33, %38, %41, %46 in 0 : vector<48x256xf32>, vector<48x256xf32>, vector<48x256xf32>, vector<48x256xf32>, vector<48x256xf32>, vector<48x256xf32>, vector<48x256xf32>, vector<48x256xf32>, vector<48x256xf32> -> vector<432x256xf32>
    %cst_47 = arith.constant dense<0.000000e+00> : vector<48x256xf32>
    %48 = tpu.matmul %0, %47, %cst_47 {dimension_numbers = #tpu.dot_dimension_numbers<[1], [0], [0], [1], [0, 0, 1, 1], [], []>} : vector<48x432xf32>, vector<432x256xf32>, vector<48x256xf32> -> vector<48x256xf32>
    %cst_48 = arith.constant dense<0.000000e+00> : vector<48xf32>
    %49 = vector.multi_reduction <add>, %48, %cst_48 [1] : vector<48x256xf32> to vector<48xf32>
    %50 = vector.shape_cast %49 : vector<48xf32> to vector<48x1xf32>
    %cst_49 = arith.constant 2.560000e+02 : f32
    %51 = vector.broadcast %cst_49 : f32 to vector<48x1xf32>
    %52 = arith.divf %50, %51 : vector<48x1xf32>
    %53 = arith.mulf %48, %48 : vector<48x256xf32>
    %cst_50 = arith.constant dense<0.000000e+00> : vector<48xf32>
    %54 = vector.multi_reduction <add>, %53, %cst_50 [1] : vector<48x256xf32> to vector<48xf32>
    %55 = vector.shape_cast %54 : vector<48xf32> to vector<48x1xf32>
    %cst_51 = arith.constant 2.560000e+02 : f32
    %56 = vector.broadcast %cst_51 : f32 to vector<48x1xf32>
    %57 = arith.divf %55, %56 : vector<48x1xf32>
    %58 = arith.mulf %52, %52 : vector<48x1xf32>
    %59 = arith.subf %57, %58 : vector<48x1xf32>
    %60 = vector.broadcast %52 : vector<48x1xf32> to vector<48x256xf32>
    %61 = arith.subf %48, %60 : vector<48x256xf32>
    %cst_52 = arith.constant 0.000000e+00 : f32
    %62 = vector.broadcast %cst_52 : f32 to vector<48x1xf32>
    %63 = arith.maximumf %59, %62 : vector<48x1xf32>
    %cst_53 = arith.constant 9.99999974E-6 : f32
    %64 = vector.broadcast %cst_53 : f32 to vector<48x1xf32>
    %65 = arith.addf %63, %64 : vector<48x1xf32>
    %66 = math.rsqrt %65 : vector<48x1xf32>
    %67 = vector.broadcast %66 : vector<48x1xf32> to vector<48x256xf32>
    %68 = arith.mulf %61, %67 : vector<48x256xf32>
    %cst_54 = arith.constant 0.000000e+00 : f32
    %69 = vector.broadcast %cst_54 : f32 to vector<48x256xf32>
    %70 = arith.maximumf %68, %69 : vector<48x256xf32>
    %c0_55 = arith.constant 0 : index
    %c17_56 = arith.constant 17 : index
    %71 = vector.load %arg6[%c0_55, %c17_56] : memref<48x290xf32, #tpu.memory_space<vmem>>, vector<48x256xf32>
    tpu.vector_store %arg6[%c0_55, %c17_56], %70 {strides = array<i32>} : memref<48x290xf32, #tpu.memory_space<vmem>>, vector<48x256xf32>,
    %c0_57 = arith.constant 0 : index
    %c0_58 = arith.constant 0 : index
    %72 = vector.load %arg6[%c0_57, %c0_58] : memref<48x290xf32, #tpu.memory_space<vmem>>, vector<48x256xf32>
    %73 = vector.broadcast %2 : vector<1x256xf32> to vector<48x256xf32>
    %74 = arith.mulf %72, %73 : vector<48x256xf32>
    %c0_59 = arith.constant 0 : index
    %c1_60 = arith.constant 1 : index
    %75 = vector.load %arg6[%c0_59, %c1_60] : memref<48x290xf32, #tpu.memory_space<vmem>>, vector<48x256xf32>
    %c0_61 = arith.constant 0 : index
    %c2_62 = arith.constant 2 : index
    %76 = vector.load %arg6[%c0_61, %c2_62] : memref<48x290xf32, #tpu.memory_space<vmem>>, vector<48x256xf32>
    %77 = vector.broadcast %3 : vector<1x256xf32> to vector<48x256xf32>
    %78 = arith.mulf %76, %77 : vector<48x256xf32>
    %c0_63 = arith.constant 0 : index
    %c16_64 = arith.constant 16 : index
    %79 = vector.load %arg6[%c0_63, %c16_64] : memref<48x290xf32, #tpu.memory_space<vmem>>, vector<48x256xf32>
    %80 = vector.broadcast %2 : vector<1x256xf32> to vector<48x256xf32>
    %81 = arith.mulf %79, %80 : vector<48x256xf32>
    %c0_65 = arith.constant 0 : index
    %c17_66 = arith.constant 17 : index
    %82 = vector.load %arg6[%c0_65, %c17_66] : memref<48x290xf32, #tpu.memory_space<vmem>>, vector<48x256xf32>
    %c0_67 = arith.constant 0 : index
    %c18_68 = arith.constant 18 : index
    %83 = vector.load %arg6[%c0_67, %c18_68] : memref<48x290xf32, #tpu.memory_space<vmem>>, vector<48x256xf32>
    %84 = vector.broadcast %3 : vector<1x256xf32> to vector<48x256xf32>
    %85 = arith.mulf %83, %84 : vector<48x256xf32>
    %c0_69 = arith.constant 0 : index
    %c32_70 = arith.constant 32 : index
    %86 = vector.load %arg6[%c0_69, %c32_70] : memref<48x290xf32, #tpu.memory_space<vmem>>, vector<48x256xf32>
    %87 = vector.broadcast %2 : vector<1x256xf32> to vector<48x256xf32>
    %88 = arith.mulf %86, %87 : vector<48x256xf32>
    %c0_71 = arith.constant 0 : index
    %c33_72 = arith.constant 33 : index
    %89 = vector.load %arg6[%c0_71, %c33_72] : memref<48x290xf32, #tpu.memory_space<vmem>>, vector<48x256xf32>
    %c0_73 = arith.constant 0 : index
    %c34_74 = arith.constant 34 : index
    %90 = vector.load %arg6[%c0_73, %c34_74] : memref<48x290xf32, #tpu.memory_space<vmem>>, vector<48x256xf32>
    %91 = vector.broadcast %3 : vector<1x256xf32> to vector<48x256xf32>
    %92 = arith.mulf %90, %91 : vector<48x256xf32>
    %93 = tpu.concatenate %74, %75, %78, %81, %82, %85, %88, %89, %92 in 0 : vector<48x256xf32>, vector<48x256xf32>, vector<48x256xf32>, vector<48x256xf32>, vector<48x256xf32>, vector<48x256xf32>, vector<48x256xf32>, vector<48x256xf32>, vector<48x256xf32> -> vector<432x256xf32>
    %cst_75 = arith.constant dense<0.000000e+00> : vector<48x256xf32>
    %94 = tpu.matmul %1, %93, %cst_75 {dimension_numbers = #tpu.dot_dimension_numbers<[1], [0], [0], [1], [0, 0, 1, 1], [], []>} : vector<48x432xf32>, vector<432x256xf32>, vector<48x256xf32> -> vector<48x256xf32>
    %cst_76 = arith.constant dense<0.000000e+00> : vector<48xf32>
    %95 = vector.multi_reduction <add>, %94, %cst_76 [1] : vector<48x256xf32> to vector<48xf32>
    %96 = vector.shape_cast %95 : vector<48xf32> to vector<48x1xf32>
    %cst_77 = arith.constant 2.560000e+02 : f32
    %97 = vector.broadcast %cst_77 : f32 to vector<48x1xf32>
    %98 = arith.divf %96, %97 : vector<48x1xf32>
    %99 = arith.mulf %94, %94 : vector<48x256xf32>
    %cst_78 = arith.constant dense<0.000000e+00> : vector<48xf32>
    %100 = vector.multi_reduction <add>, %99, %cst_78 [1] : vector<48x256xf32> to vector<48xf32>
    %101 = vector.shape_cast %100 : vector<48xf32> to vector<48x1xf32>
    %cst_79 = arith.constant 2.560000e+02 : f32
    %102 = vector.broadcast %cst_79 : f32 to vector<48x1xf32>
    %103 = arith.divf %101, %102 : vector<48x1xf32>
    %104 = arith.mulf %98, %98 : vector<48x1xf32>
    %105 = arith.subf %103, %104 : vector<48x1xf32>
    %106 = vector.broadcast %98 : vector<48x1xf32> to vector<48x256xf32>
    %107 = arith.subf %94, %106 : vector<48x256xf32>
    %cst_80 = arith.constant 0.000000e+00 : f32
    %108 = vector.broadcast %cst_80 : f32 to vector<48x1xf32>
    %109 = arith.maximumf %105, %108 : vector<48x1xf32>
    %cst_81 = arith.constant 9.99999974E-6 : f32
    %110 = vector.broadcast %cst_81 : f32 to vector<48x1xf32>
    %111 = arith.addf %109, %110 : vector<48x1xf32>
    %112 = math.rsqrt %111 : vector<48x1xf32>
    %113 = vector.broadcast %112 : vector<48x1xf32> to vector<48x256xf32>
    %114 = arith.mulf %107, %113 : vector<48x256xf32>
    %c0_i32_82 = arith.constant 0 : i32
    %c0_i32_83 = arith.constant 0 : i32
    %c0_i32_84 = arith.constant 0 : i32
    %115 = tpu.memref_slice %arg1[%c0_i32_82, %c0_i32_83, %c0_i32_84] : memref<1x48x290xf32, #tpu.memory_space<vmem>> -> memref<1x48x290xf32, #tpu.memory_space<vmem>>
    %116 = tpu.memref_squeeze %115 : memref<1x48x290xf32, #tpu.memory_space<vmem>> -> memref<48x290xf32, #tpu.memory_space<vmem>>
    %c0_85 = arith.constant 0 : index
    %c17_86 = arith.constant 17 : index
    %117 = vector.load %116[%c0_85, %c17_86] : memref<48x290xf32, #tpu.memory_space<vmem>>, vector<48x256xf32>
    %118 = arith.addf %114, %117 : vector<48x256xf32>
    %cst_87 = arith.constant 0.000000e+00 : f32
    %119 = vector.broadcast %cst_87 : f32 to vector<48x256xf32>
    %120 = arith.maximumf %118, %119 : vector<48x256xf32>
    %c0_88 = arith.constant 0 : index
    %c0_89 = arith.constant 0 : index
    %c0_90 = arith.constant 0 : index
    %121 = vector.load %arg5[%c0_88, %c0_89, %c0_90] : memref<1x48x256xf32, #tpu.memory_space<vmem>>, vector<1x48x256xf32>
    %122 = vector.shape_cast %121 : vector<1x48x256xf32> to vector<48x256xf32>
    %123 = vector.shape_cast %120 : vector<48x256xf32> to vector<1x48x256xf32>
    tpu.vector_store %arg5[%c0_88, %c0_89, %c0_90], %123 {strides = array<i32>} : memref<1x48x256xf32, #tpu.memory_space<vmem>>, vector<1x48x256xf32>,
    return
  }
  func.func @transform_0(%arg0: i32) -> (i32, i32, i32) {
    %c0_i32 = arith.constant 0 : i32
    %c0_i32_0 = arith.constant 0 : i32
    %c0_i32_1 = arith.constant 0 : i32
    return %arg0, %c0_i32, %c0_i32_0 : i32, i32, i32
  }
  func.func @transform_1(%arg0: i32) -> (i32, i32) {
    %c0_i32 = arith.constant 0 : i32
    %c0_i32_0 = arith.constant 0 : i32
    %c0_i32_1 = arith.constant 0 : i32
    return %c0_i32, %c0_i32_0 : i32, i32
  }
  func.func @transform_2(%arg0: i32) -> (i32, i32) {
    %c0_i32 = arith.constant 0 : i32
    %c0_i32_0 = arith.constant 0 : i32
    %c0_i32_1 = arith.constant 0 : i32
    return %c0_i32, %c0_i32_0 : i32, i32
  }
  func.func @transform_3(%arg0: i32) -> (i32, i32) {
    %c0_i32 = arith.constant 0 : i32
    %c0_i32_0 = arith.constant 0 : i32
    %c0_i32_1 = arith.constant 0 : i32
    return %c0_i32, %c0_i32_0 : i32, i32
  }
  func.func @transform_4(%arg0: i32) -> (i32, i32, i32) {
    %c0_i32 = arith.constant 0 : i32
    %c0_i32_0 = arith.constant 0 : i32
    %c0_i32_1 = arith.constant 0 : i32
    return %arg0, %c0_i32, %c0_i32_0 : i32, i32, i32
  }
}

</mosaic_0001>

<bundles_post_ra>
// kernel: tpu_custom_call.1
= control target key start
LH: loop header
LB: loop body
LE: loop exit
PB: predicated region body
PF: predicated region fallthrough
CT: control target
= control target key end

     0   :  { %9 = vsyncpa [#allocation4], 0  ;;  %s5272_s0 = inlined_call_operand.hbm [shape: f32[2,48,290], index: 0, kind: input, shape index: {}]   ;;  %s5273_s1 = inlined_call_operand.hbm [shape: f32[48,432], index: 1, kind: input, shape index: {}]   ;;  %s5274_s2 = inlined_call_operand.hbm [shape: f32[48,432], index: 2, kind: input, shape index: {}]   ;;  %s5275_s3 = inlined_call_operand.vmem [shape: f32[2,256], index: 3, kind: input, shape index: {}]   ;;  %s5276_s4 = inlined_call_operand.hbm [shape: f32[2,48,256], index: 4, kind: output, shape index: {}]  }
   0x1   :  { %11 = vsyncpa [#allocation4 + $0x1], 0 }
   0x2   :  { %12 = vsyncpa [#allocation7], 0 }
   0x3   :  { %13 = vsyncpa [#allocation5], 0 }
   0x4   :  { %15 = vsyncpa [#allocation5 + $0x1], 0  ;;  %s3140_s15 = smov 0   ;;  %s3142_s16 = smov 0  }
   0x5   :  { %s3144_s17 = smov 0   ;;  %s3146_s18 = smov 0  }
   0x6 LB: > { %s3161_s19 = sadd.s32 4294967295, %s3089_s18   ;;  %s2798_s20 = sadd.s32 4294967294, %s3089_s18   ;;  %s3089_s18 = sphi %s3146_s18, %s5466_s18   ;;  %s3085_s17 = sphi %s3144_s17, %s5465_s17   ;;  %s3081_s16 = sphi %s3142_s16, %s5464_s16   ;;  %s3077_s15 = sphi %s3140_s15, %s5463_s15  }
   0x7   : > { %p41_p0 = scmp.ne.s32.totalorder %s3081_s16, %s3077_s15  ;;  %p5277_p1 = scmp.eq.s32.totalorder %s3161_s19, 0 }
   0x8   : > { %p134_p3 = scmp.eq.s32.totalorder %s2798_s20, 1  ;;  %p2799_p5 = scmp.ge.s32.totalorder %s3089_s18, 1 }
   0x9   : > { %p3170_p4 = por %p5277_p1, %p41_p0  ;;  %p141_p7 = scmp.lt.s32.totalorder %s3089_s18, 3 }
   0xa   : > { %p3175_p6 = por %p134_p3, %p41_p0  ;;  %s3091_s24 = smov [#allocation6]  }
   0xb   : > { %s5317_s21 = scalar_select %p3170_p4, 1, 0 }
   0xc   : > { %s5318_s22 = scalar_select %p3175_p6, 1, 0 }
   0xd   : > { %p3180_p8 = pnand %p2799_p5, %p141_p7  ;;  %s153_s25 = sshll.u32 %s3091_s24, 4  ;;  %s154_s25 = int_to_ptr.vmem [resolvable:$true] %s153_s25 }
   0xe   : > { %s3092_s27 = smov [#allocation8]   ;;  %s2952_s29 = scalar_lea.vmem %s154_s25, 3072 }
   0xf   : > { %s5319_s23 = scalar_select %p3180_p8, 1, 0 }
  0x10   : > { %p2840_p9 = pneg %p3180_p8  ;;  %s166_s28 = sshll.u32 %s3092_s27, 4  ;;  %s167_s28 = int_to_ptr.vmem [resolvable:$true] %s166_s28 }
  0x11   : > { %p2953_p13 = scmp.ne.s32.totalorder %s154_s25, %s2952_s29  ;;  %p2960_p5 = scmp.lt.s32.totalorder %s154_s25, %s154_s25 }
  0x12   : > { %p3189_p11 = pnand %p2840_p9, %p5277_p1  ;;  %p2961_p7 = scmp.lt.s32.totalorder %s2952_s29, %s2952_s29 }
  0x14   : > { %p2943_p12 = pneg %p3189_p11  ;;  %p2962_p10 = por %p2961_p7, %p2960_p5 }
  0x16   : > { %p2955_p0 = pnand %p2953_p13, %p2943_p12 }
  0x18   : > { %p2956_p3 = pneg %p2955_p0 }
  0x1a   : > { %p2963_p9 = pnand %p2962_p10, %p2956_p3 }
  0x1c   : > { %2966 = shalt.err (!%p2963_p9)
}
  0x1d   : > { %s3093_s30 = smov 512   ;;  %s3094_s5 = smov 32  }
  0x1e   : > { %2843 = dma.hbm_to_vmem [thread:$0]  (!%p3189_p11), %s5273_s1, 3072, %s154_s25, [#allocation7], %s3093_s30, %s3093_s30, %s3094_s5  }
  0x1f   : > { %s2978_s8 = scalar_lea.vmem %s167_s28, 3072  ;;  %p2986_p2 = scmp.lt.s32.totalorder %s167_s28, %s167_s28 }
  0x20   : > { %p2979_p1 = scmp.ne.s32.totalorder %s167_s28, %s2978_s8  ;;  %p2987_p6 = scmp.lt.s32.totalorder %s2978_s8, %s2978_s8 }
  0x22   : > { %p2981_p13 = pnand %p2979_p1, %p2943_p12  ;;  %p2988_p5 = por %p2987_p6, %p2986_p2 }
  0x24   : > { %p2982_p0 = pneg %p2981_p13 }
  0x26   : > { %p2989_p10 = pnand %p2988_p5, %p2982_p0 }
  0x28   : > { %2992 = shalt.err (!%p2989_p10)
}
  0x29   : > { %2846 = dma.hbm_to_vmem [thread:$0]  (!%p3189_p11), %s5274_s2, 3072, %s167_s28, [#allocation7], %s3093_s30, %s3093_s30, %s3094_s5  }
  0x2a   : > { %s3212_s11 = sadd.s32 1, %s3089_s18   ;;  %s28_s12 = sadd.s32 1, %s3085_s17 }
  0x2b   : > { %s25_s13 = ssub.s32 %s3089_s18, %s3212_s11  ;;  %p35_p1 = scmp.ne.s32.totalorder %s3085_s17, %s3081_s16 }
  0x2c   : > { %p26_p2 = scmp.eq.s32.totalorder %s25_s13, 0  ;;  %p36_p6 = scmp.eq.s32.totalorder %s3089_s18, 0 }
  0x2d   : > { %p5321_p12 = scmp.eq.s32.totalorder %s3161_s19, 1  ;;  %p2857_p7 = scmp.lt.s32.totalorder %s3089_s18, 2 }
  0x2e   : > { %s3228_s20 = scalar_select %p26_p2, %s3085_s17, %s28_s12  }
  0x2f   : > { %p3222_p3 = por %p5321_p12, %p35_p1  ;;  %p37_p9 = por %p36_p6, %p35_p1 }
  0x30   : > { %s183_s24 = sand.u32 1, %s3085_s17   ;;  %s2824_s26 = smul.u32 2304, %s3089_s18 }
  0x31   : > { %s5322_s14 = scalar_select %p3222_p3, 1, 0 }
  0x32   : > { %s2823_s25 = smul.u32 144, %s183_s24  ;;  %p3232_p11 = pnand %p2857_p7, %p37_p9 }
  0x33   : > { %s3239_s30 = scalar_lea.hbm %s5272_s0, %s2824_s26  ;;  %s3243_s7 = scalar_lea.sflag [#allocation4], %s183_s24 }
  0x34   : > { %s187_s5 = scalar_lea.vmem [#allocation3], %s2823_s25  ;;  %s2993_s8 = scalar_lea.hbm %s3239_s30, 2304 }
  0x35   : > { %s194_s6 = sshll.u32 %s187_s5, 4  ;;  %p2994_p13 = scmp.ne.s32.totalorder %s3239_s30, %s2993_s8  ;;  %s3241_s6 = int_to_ptr.vmem [resolvable:$true] %s194_s6 }
  0x36   : > { %p2995_p0 = pneg %p3232_p11  ;;  %s2998_s12 = scalar_lea.hbm %s5272_s0, 4608 }
  0x37   : > { %p2999_p1 = scmp.lt.s32.totalorder %s3239_s30, %s5272_s0  ;;  %p3000_p2 = scmp.lt.s32.totalorder %s2998_s12, %s2993_s8 }
  0x38   : > { %p2996_p5 = pnand %p2995_p0, %p2994_p13 }
  0x39   : > { %p3001_p6 = por %p3000_p2, %p2999_p1 }
  0x3a   : > { %p2997_p10 = pneg %p2996_p5 }
  0x3c   : > { %p3002_p12 = pnand %p3001_p6, %p2997_p10 }
  0x3e   : > { %3005 = shalt.err (!%p3002_p12)
}
  0x3f   : > { %s3006_s24 = scalar_lea.vmem %s3241_s6, 2304  ;;  %s3095_s25 = smov [#allocation3]  }
  0x40   : > { %p3007_p7 = scmp.ne.s32.totalorder %s3241_s6, %s3006_s24  ;;  %s3011_s28 = sshll.u32 %s3095_s25, 4  ;;  %s3012_s28 = int_to_ptr.vmem [resolvable:$false] %s3011_s28 }
  0x41   : > { %s3013_s29 = scalar_lea.vmem %s3012_s28, 4608  ;;  %p3014_p5 = scmp.lt.s32.totalorder %s3241_s6, %s3012_s28 }
  0x42   : > { %p3009_p9 = pnand %p3007_p7, %p2995_p0  ;;  %p3015_p3 = scmp.lt.s32.totalorder %s3013_s29, %s3006_s24 }
  0x44   : > { %p3010_p13 = pneg %p3009_p9  ;;  %p3016_p4 = por %p3015_p3, %p3014_p5 }
  0x46   : > { %p3017_p8 = pnand %p3016_p4, %p3010_p13 }
  0x48   : > { %3020 = shalt.err (!%p3017_p8)
}
  0x49   : > { %s3096_s5 = smov 384   ;;  %s3097_s8 = smov 24  }
  0x4a   : > { %2850 = dma.hbm_to_vmem [thread:$0]  (!%p3232_p11), %s3239_s30, 2304, %s3241_s6, %s3243_s7, %s3096_s5, %s3096_s5, %s3097_s8  }
  0x4b   : > { %p5324_p0 = scmp.ne.s32.totalorder %s5319_s23, 0 }
  0x4d   : > { %206 = sbr.rel (%p5324_p0) target bundleno = 1846 (0x736), region = 36 }
  0x52   : > { %s3267_s9 = sand.u32 1, %s3081_s16   ;;  %p5325_p4 = scmp.ne.s32.totalorder %s5317_s21, 0 }
  0x53   : > { %s2825_s10 = smul.u32 144, %s3267_s9  ;;  %s209_s12 = scalar_lea.sflag [#allocation4], %s3267_s9 }
  0x55   : > { %s3271_s13 = scalar_lea.vmem [#allocation3], %s2825_s10 }
  0x56   : > { %3064 = dma.done.wait (%p5325_p4), %s209_s12, 2304  }
  0x57   : > { %3066 = vsyncadd (%p5325_p4), %s209_s12, 4294964992  ;;  %p5326_p8 = scmp.eq.s32.totalorder %s3161_s19, 0 }
  0x59   : > { %3068 = dma.done.wait (%p5326_p8), [#allocation7], 6144   ;;  %p5327_p3 = pmov %p5326_p8 }
  0x5a   : > { %v323_v0 = vlaneseq  ;;  %v2807_v4 = vld [vmem:[%s5275_s3 + $0x1] ss:$2 sm:$0x3]  ;;  %s3098_s30 = smov 2   ;;  %s3099_s21 = smov 18   ;;  %v3301_v11 = vld [vmem:[%s3271_s13 + $0x88] sm:$0xff] }
  0x5b   : > { %3070 = vsyncadd (%p5327_p3), [#allocation7], 4294961152  ;;  %v293_v7 = vld [vmem:[%s5275_s3] ss:$2 sm:$0x3]  ;;  %s3100_s26 = smov 32  }
  0x5c   : > { %v324_v1 = vshrl.u32 %v323_v0, 7  ;;  %s3101_s24 = smov 16   ;;  %s3102_s25 = smov 34   ;;  %v3298_v10 = vld [vmem:[%s3271_s13 + $0x80] sm:$0xff]  ;;  %v3308_v12 = vld [vmem:[%s3271_s13 + $0x78] sm:$0xff]  ;;  %v3311_v13 = vld [vmem:[%s3271_s13 + $0x68] sm:$0xff] }
  0x5d   : > { %s3103_s28 = smov 127   ;;  %v3318_v14 = vld [vmem:[%s3271_s13 + $0x70] sm:$0xff]  ;;  %v3321_v15 = vld [vmem:[%s3271_s13 + $0x60] sm:$0xff]  ;;  %v3331_v17 = vld [vmem:[%s3271_s13 + $0x58] sm:$0xff]  ;;  %s3104_s29 = smov 95   ;;  %vm364_vm0 = vcmask 15360  }
  0x5e   : > { %v325_v2 = vsub.s32 0, %v324_v1  ;;  %v329_v3 = vsub.s32 1, %v324_v1  ;;  %v3328_v16 = vld [vmem:[%s3271_s13 + $0x50] sm:$0xff]  ;;  %v3338_v18 = vld [vmem:[%s3271_s13 + $0x48] sm:$0xff]  ;;  %v3341_v19 = vld [vmem:[%s3271_s13 + $0x38] sm:$0xff]  ;;  %s3105_s5 = smov 126  }
  0x5f   : > { %v3348_v20 = vld [vmem:[%s3271_s13 + $0x40] sm:$0xff]  ;;  %v3351_v21 = vld [vmem:[%s3271_s13 + $0x30] sm:$0xff]  ;;  %v3361_v23 = vld [vmem:[%s3271_s13 + $0x28] sm:$0xff]  ;;  %s3106_s8 = smov 110   ;;  %vm418_vm1 = vcmask 146432   ;;  %s3107_s10 = smov 96  }
  0x60   : > { %v355_v5 = vrot.slane %v2807_v4, %v325_v2  ;;  %v359_v6 = vrot.slane %v2807_v4, %v329_v3  ;;  %v3287_v8 = vrot.slane %v293_v7, %v325_v2  ;;  %v3289_v9 = vrot.slane %v293_v7, %v329_v3  ;;  %v3358_v22 = vld [vmem:[%s3271_s13 + $0x20] sm:$0xff]  ;;  %v3368_v24 = vld [vmem:[%s3271_s13 + $0x18] sm:$0xff]  ;;  %v3371_v25 = vld [vmem:[%s3271_s13 + $0x8] sm:$0xff]  ;;  %s3108_s12 = smov 111   ;;  %s3109_s23 = smov 112  }
  0x61   : > { %v3378_v26 = vld [vmem:[%s3271_s13 + $0x10] sm:$0xff]  ;;  %v3381_v27 = vld [vmem:[%s3271_s13] sm:$0xff]  ;;  %vm445_vm2 = vcmask 261120   ;;  %vm987_vm3 = vcmask 777216   ;;  %vm391_vm4 = vcmask 130048   ;;  %vm628_vm5 = vcmask 1031168  }
  0x62   : > { %360 = vrot.lane.b32.xlu0 %v355_v5, %s3098_s30  ;;  %414 = vrot.lane.b32.xlu1 %v355_v5, %s3099_s21  ;;  %vm472_vm6 = vcmask 277504   ;;  %vm926_vm7 = vcmask 785408   ;;  %s3110_s27 = smov 94   ;;  %vm549_vm8 = vcmask 1039360   ;;  %vm847_vm9 = vcmask 900096   ;;  %s2827_s6 = smul.u32 1536, %s3161_s19 }
  0x63   : > { %vm768_vm10 = vcmask 908288   ;;  %vm1091_vm11 = vcmask 392192   ;;  %vm707_vm12 = vcmask 916480   ;;  %vm1066_vm13 = vcmask 769024   ;;  %s2693_s19 = scalar_lea.sflag [#allocation5], %s3267_s9  ;;  %p5460_p10 = scmp.ne.s32.totalorder %s5322_s14, 0 }
  0x64   : > { %vm296_vm14 = vcmask 138240   ;;  %vm303_vm15 = vcmask 277640  }
  0x66   : > { %362 = vrot.lane.b32.xlu0 %v359_v6, %s3098_s30  ;;  %416 = vrot.lane.b32.xlu1 %v359_v6, %s3099_s21  ;;  %s3112_s30 = smov 17  }
  0x6a   : > { %443 = vrot.lane.b32.xlu1 %v3289_v9, %s3100_s26  ;;  %441 = vrot.lane.b32.xlu0 %v3287_v8, %s3100_s26 }
  0x6e   : > { %387 = vrot.lane.b32.xlu0 %v3287_v8, %s3101_s24  ;;  %389 = vrot.lane.b32.xlu1 %v3289_v9, %s3101_s24 }
  0x72   : > { %468 = vrot.lane.b32.xlu0 %v355_v5, %s3102_s25  ;;  %470 = vrot.lane.b32.xlu1 %v359_v6, %s3102_s25 }
  0x76   : > { %545 = vrot.lane.b32.xlu0 %v3298_v10, %s3103_s28  ;;  %547 = vrot.lane.b32.xlu1 %v3301_v11, %s3103_s28 }
  0x7a   : > { %543 = vrot.lane.b32.xlu0 %v3308_v12, %s3103_s28  ;;  %539 = vrot.lane.b32.xlu1 %v3311_v13, %s3103_s28 }
  0x7e   : > { %541 = vrot.lane.b32.xlu0 %v3318_v14, %s3103_s28  ;;  %537 = vrot.lane.b32.xlu1 %v3321_v15, %s3103_s28 }
  0x82   : > { %533 = vrot.lane.b32.xlu0 %v3328_v16, %s3103_s28  ;;  %535 = vrot.lane.b32.xlu1 %v3331_v17, %s3103_s28 }
  0x86   : > { %531 = vrot.lane.b32.xlu0 %v3338_v18, %s3103_s28  ;;  %527 = vrot.lane.b32.xlu1 %v3341_v19, %s3103_s28 }
  0x8a   : > { %529 = vrot.lane.b32.xlu0 %v3348_v20, %s3103_s28  ;;  %525 = vrot.lane.b32.xlu1 %v3351_v21, %s3103_s28 }
  0x8e   : > { %521 = vrot.lane.b32.xlu0 %v3358_v22, %s3103_s28  ;;  %523 = vrot.lane.b32.xlu1 %v3361_v23, %s3103_s28 }
  0x92   : > { %519 = vrot.lane.b32.xlu0 %v3368_v24, %s3103_s28  ;;  %515 = vrot.lane.b32.xlu1 %v3371_v25, %s3103_s28 }
  0x96   : > { %517 = vrot.lane.b32.xlu0 %v3378_v26, %s3103_s28  ;;  %513 = vrot.lane.b32.xlu1 %v3381_v27, %s3103_s28 }
  0x9a   : > { %983 = vrot.lane.b32.xlu0 %v3298_v10, %s3104_s29  ;;  %985 = vrot.lane.b32.xlu1 %v3301_v11, %s3104_s29 }
  0x9e   : > { %981 = vrot.lane.b32.xlu0 %v3308_v12, %s3104_s29  ;;  %977 = vrot.lane.b32.xlu1 %v3311_v13, %s3104_s29 }
  0xa2   : > { %979 = vrot.lane.b32.xlu0 %v3318_v14, %s3104_s29  ;;  %975 = vrot.lane.b32.xlu1 %v3321_v15, %s3104_s29 }
  0xa6   : > { %971 = vrot.lane.b32.xlu0 %v3328_v16, %s3104_s29  ;;  %973 = vrot.lane.b32.xlu1 %v3331_v17, %s3104_s29 }
  0xaa   : > { %969 = vrot.lane.b32.xlu0 %v3338_v18, %s3104_s29  ;;  %965 = vrot.lane.b32.xlu1 %v3341_v19, %s3104_s29 }
  0xae   : > { %967 = vrot.lane.b32.xlu0 %v3348_v20, %s3104_s29  ;;  %963 = vrot.lane.b32.xlu1 %v3351_v21, %s3104_s29 }
  0xb2   : > { %959 = vrot.lane.b32.xlu0 %v3358_v22, %s3104_s29  ;;  %961 = vrot.lane.b32.xlu1 %v3361_v23, %s3104_s29 }
  0xb6   : > { %957 = vrot.lane.b32.xlu0 %v3368_v24, %s3104_s29  ;;  %953 = vrot.lane.b32.xlu1 %v3371_v25, %s3104_s29 }
  0xba   : > { %955 = vrot.lane.b32.xlu0 %v3378_v26, %s3104_s29  ;;  %951 = vrot.lane.b32.xlu1 %v3381_v27, %s3104_s29 }
  0xd4   : > { %v3423_v28 = vpop.permute.xlu0 %360  ;;  %v3425_v29 = vpop.permute.xlu1 %414 }
  0xd5   : > { %5328 = vst [vmem:[#allocation13_spill] sm:$0xff] %v3423_v28  ;;  %5329 = vst [vmem:[#allocation14_spill] sm:$0xff] %v3425_v29  ;;  %v378_v30 = vmul.f32 %v3423_v28, %v3338_v18  ;;  %v375_v37 = vmul.f32 %v3423_v28, %v3351_v21  ;;  %v372_v38 = vmul.f32 %v3423_v28, %v3368_v24 }
  0xd6   : > { %v426_v43 = vmul.f32 %v3425_v29, %v3368_v24  ;;  %v369_v46 = vmul.f32 %v3423_v28, %v3381_v27 }
  0xd7   : > { %610 = vrot.lane.b32.xlu0 %v378_v30, %s3105_s5 }
  0xd8   : > { %v3430_v31 = vpop.permute.xlu0 %362  ;;  %v3432_v32 = vpop.permute.xlu1 %416 }
  0xd9   : > { %5330 = vst [vmem:[#allocation15_spill] sm:$0xff] %v3430_v31  ;;  %5331 = vst [vmem:[#allocation16_spill] sm:$0xff] %v3432_v32  ;;  %v380_v33 = vmul.f32 %v3430_v31, %v3331_v17  ;;  %v377_v34 = vmul.f32 %v3430_v31, %v3348_v20  ;;  %v374_v41 = vmul.f32 %v3430_v31, %v3361_v23 }
  0xda   : > { %v371_v42 = vmul.f32 %v3430_v31, %v3378_v26  ;;  %v3470_v47 = vsel %vm364_vm0, %v3423_v28, %v3430_v31  ;;  %v428_v48 = vmul.f32 %v3432_v32, %v3361_v23  ;;  %v3494_v56 = vsel %vm418_vm1, %v3425_v29, %v3432_v32 }
  0xdb   : > { %614 = vrot.lane.b32.xlu1 %v380_v33, %s3105_s5  ;;  %608 = vrot.lane.b32.xlu0 %v377_v34, %s3105_s5  ;;  %5334 = vst [vmem:[#allocation19_spill] sm:$0xff] %v3470_v47  ;;  %v379_v51 = vmul.f32 %v3470_v47, %v3328_v16  ;;  %v373_v55 = vmul.f32 %v3470_v47, %v3358_v22  ;;  %5335 = vst [vmem:[#allocation20_spill] sm:$0xff] %v3494_v56  ;;  %vm1499_vm0 = vcmask 1047688  }
  0xdc   : > { %v3440_v35 = vpop.permute.xlu1 %443  ;;  %v3442_v36 = vpop.permute.xlu0 %441  ;;  %v427_v60 = vmul.f32 %v3494_v56, %v3358_v22  ;;  %v425_v0 = vmul.f32 %v3432_v32, %v3378_v26  ;;  %v376_v4 = vmul.f32 %v3470_v47, %v3341_v19  ;;  %v424_v5 = vmul.f32 %v3494_v56, %v3371_v25 }
  0xdd   : > { %5332 = vst [vmem:[#allocation17_spill] sm:$0xff] %v3440_v35  ;;  %5333 = vst [vmem:[#allocation18_spill] sm:$0xff] %v3442_v36  ;;  %v467_v52 = vmul.f32 %v3440_v35, %v3301_v11  ;;  %v465_v57 = vmul.f32 %v3442_v36, %v3308_v12  ;;  %v3508_v61 = vsel %vm445_vm2, %v3442_v36, %v3440_v35 }
  0xde   : > { %5336 = vst [vmem:[#allocation21_spill] sm:$0xff] %v3508_v61  ;;  %v466_v1 = vmul.f32 %v3508_v61, %v3298_v10  ;;  %v370_v30 = vmul.f32 %v3470_v47, %v3371_v25  ;;  %v463_v33 = vmul.f32 %v3508_v61, %v3311_v13  ;;  %v431_v47 = vmul.f32 %v3432_v32, %v3348_v20 }
  0xdf   : > { %604 = vrot.lane.b32.xlu1 %v375_v37, %s3105_s5  ;;  %598 = vrot.lane.b32.xlu0 %v372_v38, %s3105_s5  ;;  %v464_v38 = vmul.f32 %v3440_v35, %v3318_v14 }
  0xe0   : > { %v3450_v39 = vpop.permute.xlu0 %387  ;;  %v3452_v40 = vpop.permute.xlu1 %389 }
  0xe3   : > { %602 = vrot.lane.b32.xlu1 %v374_v41, %s3105_s5  ;;  %596 = vrot.lane.b32.xlu0 %v371_v42, %s3105_s5  ;;  %v423_v41 = vmul.f32 %v3425_v29, %v3381_v27 }
  0xe4   : > { %v3462_v44 = vpop.permute.xlu0 %468  ;;  %v3464_v45 = vpop.permute.xlu1 %470 }
  0xe7   : > { %592 = vrot.lane.b32.xlu1 %v369_v46, %s3105_s5  ;;  %817 = vrot.lane.b32.xlu0 %v426_v43, %s3106_s8  ;;  %v462_v46 = vmul.f32 %v3442_v36, %v3321_v15 }
  0xe8   : > { %v3476_v49 = vpop.permute.xlu0 %545  ;;  %v3478_v50 = vpop.permute.xlu1 %547 }
  0xeb   : > { %821 = vrot.lane.b32.xlu1 %v428_v48, %s3106_s8  ;;  %612 = vrot.lane.b32.xlu0 %v379_v51, %s3105_s5 }
  0xec   : > { %v3486_v53 = vpop.permute.xlu0 %543  ;;  %v3488_v54 = vpop.permute.xlu1 %539 }
  0xef   : > { %924 = vrot.lane.b32.xlu1 %v467_v52, %s3107_s10  ;;  %600 = vrot.lane.b32.xlu0 %v373_v55, %s3105_s5  ;;  %v460_v52 = vmul.f32 %v3508_v61, %v3328_v16 }
  0xf0   : > { %v3500_v58 = vpop.permute.xlu0 %541  ;;  %v3502_v59 = vpop.permute.xlu1 %537 }
  0xf3   : > { %819 = vrot.lane.b32.xlu0 %v427_v60, %s3106_s8  ;;  %920 = vrot.lane.b32.xlu1 %v465_v57, %s3107_s10  ;;  %v461_v60 = vmul.f32 %v3440_v35, %v3331_v17 }
  0xf4   : > { %v3512_v62 = vpop.permute.xlu0 %533  ;;  %v3514_v63 = vpop.permute.xlu1 %535 }
  0xf7   : > { %815 = vrot.lane.b32.xlu1 %v425_v0, %s3106_s8  ;;  %922 = vrot.lane.b32.xlu0 %v466_v1, %s3107_s10 }
  0xf8   : > { %v3522_v2 = vpop.permute.xlu0 %531  ;;  %v3524_v3 = vpop.permute.xlu1 %527 }
  0xfb   : > { %606 = vrot.lane.b32.xlu1 %v376_v4, %s3105_s5  ;;  %813 = vrot.lane.b32.xlu0 %v424_v5, %s3106_s8  ;;  %v459_v5 = vmul.f32 %v3442_v36, %v3338_v18 }
  0xfc   : > { %v3532_v6 = vpop.permute.xlu0 %529  ;;  %v3534_v7 = vpop.permute.xlu1 %525 }
  0xff   : > { %594 = vrot.lane.b32.xlu1 %v370_v30, %s3105_s5  ;;  %916 = vrot.lane.b32.xlu0 %v463_v33, %s3107_s10 }
 0x100   : > { %v3542_v34 = vpop.permute.xlu0 %521  ;;  %v3544_v37 = vpop.permute.xlu1 %523 }
 0x103   : > { %918 = vrot.lane.b32.xlu1 %v464_v38, %s3107_s10  ;;  %811 = vrot.lane.b32.xlu0 %v423_v41, %s3106_s8  ;;  %v457_v41 = vmul.f32 %v3508_v61, %v3341_v19 }
 0x104   : > { %v3552_v42 = vpop.permute.xlu0 %519  ;;  %v3554_v43 = vpop.permute.xlu1 %515 }
 0x107   : > { %914 = vrot.lane.b32.xlu1 %v462_v46, %s3107_s10  ;;  %764 = vrot.lane.b32.xlu0 %v3298_v10, %s3108_s12 }
 0x108   : > { %v3561_v48 = vpop.permute.xlu0 %517  ;;  %v3563_v51 = vpop.permute.xlu1 %513 }
 0x10b   : > { %766 = vrot.lane.b32.xlu1 %v3301_v11, %s3108_s12  ;;  %910 = vrot.lane.b32.xlu0 %v460_v52, %s3107_s10 }
 0x10c   : > { %v984_v55 = vpop.permute.xlu0 %983  ;;  %v986_v57 = vpop.permute.xlu1 %985 }
 0x10d   : > { %v999_v0 = vsel %vm987_vm3, %v984_v55, %v986_v57 }
 0x10e   : > { %1211 = vmatprep.subr.mxu1 %v999_v0 }
 0x10f   : > { %912 = vrot.lane.b32.xlu1 %v461_v60, %s3107_s10  ;;  %762 = vrot.lane.b32.xlu0 %v3308_v12, %s3108_s12  ;;  %v458_v60 = vmul.f32 %v3440_v35, %v3348_v20 }
 0x110   : > { %v982_v1 = vpop.permute.xlu0 %981  ;;  %v978_v4 = vpop.permute.xlu1 %977 }
 0x111   : > { %v998_v30 = vsel %vm987_vm3, %v982_v1, %v984_v55 }
 0x112   : > { %1212 = vmatpush1.msra.mxu1 %v998_v30 }
 0x113   : > { %908 = vrot.lane.b32.xlu1 %v459_v5, %s3107_s10  ;;  %758 = vrot.lane.b32.xlu0 %v3311_v13, %s3108_s12  ;;  %v456_v5 = vmul.f32 %v3442_v36, %v3351_v21 }
 0x114   : > { %v980_v33 = vpop.permute.xlu0 %979  ;;  %v976_v38 = vpop.permute.xlu1 %975 }
 0x115   : > { %v997_v46 = vsel %vm987_vm3, %v978_v4, %v980_v33  ;;  %v996_v52 = vsel %vm987_vm3, %v976_v38, %v978_v4 }
 0x116   : > { %1213 = vmatprep.subr.mxu1 %v997_v46 }
 0x117   : > { %760 = vrot.lane.b32.xlu1 %v3318_v14, %s3108_s12  ;;  %904 = vrot.lane.b32.xlu0 %v457_v41, %s3107_s10  ;;  %v454_v41 = vmul.f32 %v3508_v61, %v3358_v22 }
 0x118   : > { %1214 = vmatpush1.msra.mxu1 %v996_v52  ;;  %v972_v55 = vpop.permute.xlu0 %971  ;;  %v974_v57 = vpop.permute.xlu1 %973 }
 0x119   : > { %v995_v0 = vsel %vm987_vm3, %v972_v55, %v974_v57 }
 0x11a   : > { %1215 = vmatprep.subr.mxu1 %v995_v0 }
 0x11b   : > { %906 = vrot.lane.b32.xlu1 %v458_v60, %s3107_s10  ;;  %756 = vrot.lane.b32.xlu0 %v3321_v15, %s3108_s12  ;;  %v455_v60 = vmul.f32 %v3440_v35, %v3361_v23 }
 0x11c   : > { %v970_v1 = vpop.permute.xlu0 %969  ;;  %v966_v4 = vpop.permute.xlu1 %965 }
 0x11d   : > { %v994_v30 = vsel %vm987_vm3, %v970_v1, %v972_v55 }
 0x11e   : > { %1216 = vmatpush1.msra.mxu1 %v994_v30 }
 0x11f   : > { %902 = vrot.lane.b32.xlu1 %v456_v5, %s3107_s10  ;;  %752 = vrot.lane.b32.xlu0 %v3328_v16, %s3108_s12  ;;  %v453_v5 = vmul.f32 %v3442_v36, %v3368_v24 }
 0x120   : > { %v968_v33 = vpop.permute.xlu0 %967  ;;  %v964_v38 = vpop.permute.xlu1 %963 }
 0x121   : > { %v993_v46 = vsel %vm987_vm3, %v966_v4, %v968_v33  ;;  %v992_v52 = vsel %vm987_vm3, %v964_v38, %v966_v4 }
 0x122   : > { %1217 = vmatprep.subr.mxu1 %v993_v46 }
 0x123   : > { %754 = vrot.lane.b32.xlu1 %v3331_v17, %s3108_s12  ;;  %898 = vrot.lane.b32.xlu0 %v454_v41, %s3107_s10  ;;  %v451_v41 = vmul.f32 %v3508_v61, %v3371_v25 }
 0x124   : > { %1218 = vmatpush1.msra.mxu1 %v992_v52  ;;  %v960_v55 = vpop.permute.xlu0 %959  ;;  %v962_v57 = vpop.permute.xlu1 %961 }
 0x125   : > { %v991_v0 = vsel %vm987_vm3, %v960_v55, %v962_v57  ;;  %v450_v57 = vmul.f32 %v3442_v36, %v3381_v27 }
 0x126   : > { %1219 = vmatprep.subr.mxu1 %v991_v0  ;;  %v440_v0 = vmul.f32 %v3432_v32, %v3301_v11 }
 0x127   : > { %900 = vrot.lane.b32.xlu1 %v455_v60, %s3107_s10  ;;  %750 = vrot.lane.b32.xlu0 %v3338_v18, %s3108_s12  ;;  %v439_v60 = vmul.f32 %v3494_v56, %v3298_v10 }
 0x128   : > { %v958_v1 = vpop.permute.xlu0 %957  ;;  %v954_v4 = vpop.permute.xlu1 %953 }
 0x129   : > { %v990_v30 = vsel %vm987_vm3, %v958_v1, %v960_v55  ;;  %v452_v55 = vmul.f32 %v3440_v35, %v3378_v26  ;;  %v438_v1 = vmul.f32 %v3425_v29, %v3308_v12  ;;  %v430_v35 = vmul.f32 %v3494_v56, %v3341_v19 }
 0x12a   : > { %1220 = vmatpush1.msra.mxu1 %v990_v30  ;;  %v437_v30 = vmul.f32 %v3432_v32, %v3318_v14 }
 0x12b   : > { %896 = vrot.lane.b32.xlu1 %v453_v5, %s3107_s10  ;;  %746 = vrot.lane.b32.xlu0 %v3341_v19, %s3108_s12 }
 0x12c   : > { %v956_v33 = vpop.permute.xlu0 %955  ;;  %v952_v38 = vpop.permute.xlu1 %951 }
 0x12d   : > { %v989_v46 = vsel %vm987_vm3, %v954_v4, %v956_v33  ;;  %v988_v52 = vsel %vm987_vm3, %v952_v38, %v954_v4  ;;  %v436_v4 = vmul.f32 %v3494_v56, %v3311_v13  ;;  %v3661_v33 = vsel %vm391_vm4, %v3450_v39, %v3452_v40 }
 0x12e   : > { %1221 = vmatprep.subr.mxu1 %v989_v46  ;;  %v435_v46 = vmul.f32 %v3425_v29, %v3321_v15 }
 0x12f   : > { %748 = vrot.lane.b32.xlu1 %v3348_v20, %s3108_s12  ;;  %892 = vrot.lane.b32.xlu0 %v451_v41, %s3107_s10 }
 0x130   : > { %1222 = vmatpush1.msra.mxu1 %v988_v52  ;;  %v412_v52 = vmul.f32 %v3661_v33, %v3298_v10 }
 0x133   : > { %894 = vrot.lane.b32.xlu1 %v452_v55, %s3107_s10  ;;  %744 = vrot.lane.b32.xlu0 %v3351_v21, %s3108_s12 }
 0x137   : > { %890 = vrot.lane.b32.xlu1 %v450_v57, %s3107_s10  ;;  %740 = vrot.lane.b32.xlu0 %v3358_v22, %s3108_s12 }
 0x13b   : > { %742 = vrot.lane.b32.xlu1 %v3361_v23, %s3108_s12  ;;  %843 = vrot.lane.b32.xlu0 %v439_v60, %s3106_s8  ;;  %v413_v60 = vmul.f32 %v3452_v40, %v3301_v11 }
 0x13f   : > { %845 = vrot.lane.b32.xlu1 %v440_v0, %s3106_s8  ;;  %738 = vrot.lane.b32.xlu0 %v3368_v24, %s3108_s12  ;;  %v433_v0 = vmul.f32 %v3494_v56, %v3328_v16 }
 0x143   : > { %841 = vrot.lane.b32.xlu1 %v438_v1, %s3106_s8  ;;  %734 = vrot.lane.b32.xlu0 %v3371_v25, %s3108_s12 }
 0x147   : > { %736 = vrot.lane.b32.xlu1 %v3378_v26, %s3108_s12  ;;  %837 = vrot.lane.b32.xlu0 %v436_v4, %s3106_s8 }
 0x149   : > { %v611_v5 = vpop.permute.xlu0 %610 }
 0x14b   : > { %839 = vrot.lane.b32.xlu1 %v437_v30, %s3106_s8  ;;  %732 = vrot.lane.b32.xlu0 %v3381_v27, %s3108_s12  ;;  %v434_v30 = vmul.f32 %v3432_v32, %v3331_v17 }
 0x14d   : > { %v615_v38 = vpop.permute.xlu1 %614  ;;  %v3666_v41 = vpop.permute.xlu0 %608 }
 0x14f   : > { %835 = vrot.lane.b32.xlu1 %v435_v46, %s3106_s8  ;;  %703 = vrot.lane.b32.xlu0 %v412_v52, %s3109_s23  ;;  %v411_v46 = vmul.f32 %v3450_v39, %v3308_v12 }
 0x151   : > { %v605_v55 = vpop.permute.xlu1 %604  ;;  %v3674_v57 = vpop.permute.xlu0 %598 }
 0x153   : > { %705 = vrot.lane.b32.xlu1 %v413_v60, %s3109_s23  ;;  %831 = vrot.lane.b32.xlu0 %v433_v0, %s3106_s8  ;;  %v432_v60 = vmul.f32 %v3425_v29, %v3338_v18  ;;  %v409_v0 = vmul.f32 %v3661_v33, %v3311_v13 }
 0x155   : > { %v603_v1 = vpop.permute.xlu1 %602  ;;  %v3682_v4 = vpop.permute.xlu0 %596 }
 0x157   : > { %833 = vrot.lane.b32.xlu1 %v434_v30, %s3106_s8  ;;  %701 = vrot.lane.b32.xlu0 %v411_v46, %s3109_s23  ;;  %v410_v46 = vmul.f32 %v3452_v40, %v3318_v14 }
 0x159   : > { %v3690_v52 = vpop.permute.xlu1 %592  ;;  %v3692_v36 = vpop.permute.xlu0 %817 }
 0x15a   : > { %5337 = vst [vmem:[#allocation22_spill] sm:$0xff] %v3692_v36  ;;  %v408_v36 = vmul.f32 %v3450_v39, %v3321_v15 }
 0x15b   : > { %829 = vrot.lane.b32.xlu1 %v432_v60, %s3106_s8  ;;  %697 = vrot.lane.b32.xlu0 %v409_v0, %s3109_s23 }
 0x15d   : > { %v3700_v61 = vpop.permute.xlu1 %821  ;;  %v613_v30 = vpop.permute.xlu0 %612 }
 0x15e   : > { %v636_v28 = vsel %vm628_vm5, %v613_v30, %v615_v38  ;;  %v635_v31 = vsel %vm628_vm5, %v611_v5, %v613_v30  ;;  %v407_v30 = vmul.f32 %v3452_v40, %v3331_v17 }
 0x15f   : > { %699 = vrot.lane.b32.xlu1 %v410_v46, %s3109_s23  ;;  %825 = vrot.lane.b32.xlu0 %v430_v35, %s3106_s8  ;;  %v3724_v35 = vsel %vm472_vm6, %v3462_v44, %v3464_v45 }
 0x160   : > { %1110 = vmatprep.subr.mxu0 %v636_v28  ;;  %v429_v28 = vmul.f32 %v3425_v29, %v3351_v21  ;;  %v493_v46 = vmul.f32 %v3724_v35, %v3298_v10  ;;  %v494_v29 = vmul.f32 %v3464_v45, %v3301_v11 }
 0x161   : > { %1111 = vmatpush1.msra.mxu0 %v635_v31  ;;  %v925_v60 = vpop.permute.xlu1 %924  ;;  %v601_v0 = vpop.permute.xlu0 %600  ;;  %v406_v31 = vmul.f32 %v3661_v33, %v3328_v16 }
 0x163   : > { %827 = vrot.lane.b32.xlu1 %v431_v47, %s3106_s8  ;;  %695 = vrot.lane.b32.xlu0 %v408_v36, %s3109_s23 }
 0x165   : > { %v921_v5 = vpop.permute.xlu1 %920  ;;  %v3716_v38 = vpop.permute.xlu0 %819 }
 0x167   : > { %823 = vrot.lane.b32.xlu1 %v429_v28, %s3106_s8  ;;  %691 = vrot.lane.b32.xlu0 %v406_v31, %s3109_s23 }
 0x169   : > { %v3728_v36 = vpop.permute.xlu1 %815  ;;  %v923_v47 = vpop.permute.xlu0 %922 }
 0x16a   : > { %5338 = vst [vmem:[#allocation23_spill] sm:$0xff] %v3728_v36  ;;  %v938_v56 = vsel %vm926_vm7, %v923_v47, %v925_v60  ;;  %v937_v32 = vsel %vm926_vm7, %v921_v5, %v923_v47  ;;  %v405_v36 = vmul.f32 %v3450_v39, %v3338_v18 }
 0x16b   : > { %693 = vrot.lane.b32.xlu1 %v407_v30, %s3109_s23  ;;  %1062 = vrot.lane.b32.xlu0 %v493_v46, %s3110_s27  ;;  %v492_v30 = vmul.f32 %v3462_v44, %v3308_v12  ;;  %v490_v46 = vmul.f32 %v3724_v35, %v3311_v13 }
 0x16c   : > { %1223 = vmatprep.subr.mxu1 %v938_v56  ;;  %v632_v56 = vsel %vm628_vm5, %v601_v0, %v603_v1 }
 0x16d   : > { %1224 = vmatpush1.msra.mxu1 %v937_v32  ;;  %v607_v28 = vpop.permute.xlu1 %606  ;;  %v3738_v31 = vpop.permute.xlu0 %813 }
 0x16e   : > { %v634_v60 = vsel %vm628_vm5, %v607_v28, %v3666_v41  ;;  %v633_v5 = vsel %vm628_vm5, %v605_v55, %v607_v28  ;;  %v631_v41 = vsel %vm628_vm5, %v3674_v57, %v601_v0  ;;  %v403_v55 = vmul.f32 %v3661_v33, %v3341_v19 }
 0x16f   : > { %1064 = vrot.lane.b32.xlu1 %v494_v29, %s3110_s27  ;;  %689 = vrot.lane.b32.xlu0 %v405_v36, %s3109_s23  ;;  %v561_v57 = vsel %vm549_vm8, %v3476_v49, %v3478_v50  ;;  %v559_v50 = vsel %vm549_vm8, %v3488_v54, %v3500_v58  ;;  %v556_v58 = vsel %vm549_vm8, %v3522_v2, %v3512_v62 }
 0x170   : > { %1112 = vmatprep.subr.mxu0 %v634_v60  ;;  %v558_v60 = vsel %vm549_vm8, %v3502_v59, %v3488_v54  ;;  %v402_v54 = vmul.f32 %v3450_v39, %v3351_v21  ;;  %v553_v2 = vsel %vm549_vm8, %v3542_v34, %v3544_v37  ;;  %v551_v37 = vsel %vm549_vm8, %v3554_v43, %v3561_v48 }
 0x171   : > { %1113 = vmatpush1.msra.mxu0 %v633_v5  ;;  %v595_v32 = vpop.permute.xlu1 %594  ;;  %v917_v47 = vpop.permute.xlu0 %916  ;;  %v401_v48 = vmul.f32 %v3452_v40, %v3361_v23 }
 0x172   : > { %1114 = vmatprep.subr.mxu0 %v632_v56  ;;  %v630_v29 = vsel %vm628_vm5, %v595_v32, %v3682_v4  ;;  %v629_v36 = vsel %vm628_vm5, %v3690_v52, %v595_v32  ;;  %v404_v4 = vmul.f32 %v3452_v40, %v3348_v20  ;;  %v560_v52 = vsel %vm549_vm8, %v3486_v53, %v3476_v49 }
 0x173   : > { %1115 = vmatpush1.msra.mxu0 %v631_v41  ;;  %1060 = vrot.lane.b32.xlu1 %v492_v30, %s3110_s27  ;;  %v557_v53 = vsel %vm549_vm8, %v3512_v62, %v3514_v63  ;;  %v491_v32 = vmul.f32 %v3464_v45, %v3318_v14  ;;  %v555_v63 = vsel %vm549_vm8, %v3524_v3, %v3532_v6 }
 0x174   : > { %685 = vrot.lane.b32.xlu0 %v403_v55, %s3109_s23  ;;  %1116 = vmatprep.subr.mxu0 %v630_v29  ;;  %v554_v56 = vsel %vm549_vm8, %v3534_v7, %v3524_v3  ;;  %v489_v30 = vmul.f32 %v3462_v44, %v3321_v15  ;;  %v552_v6 = vsel %vm549_vm8, %v3552_v42, %v3542_v34 }
 0x175   : > { %1117 = vmatpush1.msra.mxu0 %v629_v36  ;;  %v919_v1 = vpop.permute.xlu1 %918  ;;  %v3765_v0 = vpop.permute.xlu0 %811  ;;  %v400_v3 = vmul.f32 %v3661_v33, %v3358_v22  ;;  %v344_v7 = vmul.f32 %v3289_v9, %v3298_v10  ;;  %v343_v41 = vmul.f32 %v3287_v8, %v3308_v12  ;;  %v550_v34 = vsel %vm549_vm8, %v3563_v51, %v3554_v43 }
 0x176   : > { %1118 = vmatprep.subr.mxu0 %v561_v57  ;;  %v936_v28 = vsel %vm926_vm7, %v917_v47, %v919_v1  ;;  %v342_v42 = vmul.f32 %v3289_v9, %v3311_v13  ;;  %v341_v36 = vmul.f32 %v3287_v8, %v3321_v15  ;;  %v487_v1 = vmul.f32 %v3724_v35, %v3328_v16 }
 0x177   : > { %1119 = vmatpush1.msra.mxu0 %v560_v52  ;;  %687 = vrot.lane.b32.xlu1 %v404_v4, %s3109_s23  ;;  %v340_v43 = vmul.f32 %v3289_v9, %v3328_v16  ;;  %v339_v51 = vmul.f32 %v3287_v8, %v3338_v18  ;;  %v338_v4 = vmul.f32 %v3289_v9, %v3341_v19 }
 0x178   : > { %1056 = vrot.lane.b32.xlu0 %v490_v46, %s3110_s27  ;;  %1120 = vmatprep.subr.mxu0 %v559_v50  ;;  %v337_v16 = vmul.f32 %v3287_v8, %v3351_v21  ;;  %v399_v50 = vmul.f32 %v3450_v39, %v3368_v24 }
 0x179   : > { %1225 = vmatprep.subr.mxu1 %v936_v28  ;;  %1121 = vmatpush1.msra.mxu0 %v558_v60  ;;  %v915_v49 = vpop.permute.xlu1 %914  ;;  %v3786_v5 = vpop.permute.xlu0 %764  ;;  %v488_v28 = vmul.f32 %v3464_v45, %v3331_v17  ;;  %v334_v17 = vmul.f32 %v3289_v9, %v3371_v25 }
 0x17a   : > { %1122 = vmatprep.subr.mxu0 %v557_v53  ;;  %v935_v59 = vsel %vm926_vm7, %v915_v49, %v917_v47  ;;  %v336_v49 = vmul.f32 %v3289_v9, %v3358_v22  ;;  %v335_v53 = vmul.f32 %v3287_v8, %v3368_v24 }
 0x17b   : > { %1123 = vmatpush1.msra.mxu0 %v556_v58  ;;  %1058 = vrot.lane.b32.xlu1 %v491_v32, %s3110_s27 }
 0x17c   : > { %683 = vrot.lane.b32.xlu0 %v402_v54, %s3109_s23  ;;  %1124 = vmatprep.subr.mxu0 %v555_v63  ;;  %v486_v54 = vmul.f32 %v3462_v44, %v3338_v18  ;;  %v397_v63 = vmul.f32 %v3661_v33, %v3371_v25  ;;  %v851_v18 = vsel %vm847_vm9, %v3716_v38, %v3700_v61 }
 0x17d   : > { %1226 = vmatpush1.msra.mxu1 %v935_v59  ;;  %1125 = vmatpush1.msra.mxu0 %v554_v56  ;;  %v3804_v62 = vpop.permute.xlu1 %766  ;;  %v911_v47 = vpop.permute.xlu0 %910  ;;  %v333_v59 = vmul.f32 %v3287_v8, %v3381_v27 }
 0x17e   : > { %1126 = vmatprep.subr.mxu0 %v553_v2 }
 0x17f   : > { %1127 = vmatpush1.msra.mxu0 %v552_v6  ;;  %1054 = vrot.lane.b32.xlu1 %v489_v30, %s3110_s27  ;;  %v5339_v30 = vld [vmem:[#allocation22_spill] sm:$0xff] }
 0x180   : > { %679 = vrot.lane.b32.xlu0 %v400_v3, %s3109_s23  ;;  %1128 = vmatprep.subr.mxu0 %v551_v37  ;;  %v850_v6 = vsel %vm847_vm9, %v5339_v30, %v3716_v38  ;;  %v484_v3 = vmul.f32 %v3724_v35, %v3341_v19  ;;  %v5340_v37 = vld [vmem:[#allocation23_spill] sm:$0xff]  ;;  %v848_v38 = vsel %vm847_vm9, %v3765_v0, %v3738_v31 }
 0x181   : > { %1129 = vmatpush1.msra.mxu0 %v550_v34  ;;  %v913_v55 = vpop.permute.xlu1 %912  ;;  %v3830_v29 = vpop.permute.xlu0 %762  ;;  %v849_v61 = vsel %vm847_vm9, %v3738_v31, %v5340_v37  ;;  %v780_v34 = vsel %vm768_vm10, %v3786_v5, %v3804_v62 }
 0x182   : > { %1130 = vmatprep.subr.mxu0 %v344_v7  ;;  %v934_v57 = vsel %vm926_vm7, %v911_v47, %v913_v55  ;;  %v779_v55 = vsel %vm768_vm10, %v3830_v29, %v3786_v5  ;;  %v483_v5 = vmul.f32 %v3462_v44, %v3351_v21  ;;  %v5341_v29 = vld [vmem:[#allocation19_spill] sm:$0xff] }
 0x183   : > { %1131 = vmatpush1.msra.mxu0 %v343_v41  ;;  %681 = vrot.lane.b32.xlu1 %v401_v48, %s3109_s23  ;;  %v396_v48 = vmul.f32 %v3450_v39, %v3381_v27 }
 0x184   : > { %1050 = vrot.lane.b32.xlu0 %v487_v1, %s3110_s27  ;;  %1132 = vmatprep.subr.mxu0 %v342_v42  ;;  %v485_v42 = vmul.f32 %v3464_v45, %v3348_v20  ;;  %v385_v1 = vmul.f32 %v5341_v29, %v3298_v10 }
 0x185   : > { %1227 = vmatprep.subr.mxu1 %v934_v57  ;;  %1133 = vmatpush1.msra.mxu0 %v341_v36  ;;  %v909_v52 = vpop.permute.xlu1 %908  ;;  %v759_v46 = vpop.permute.xlu0 %758 }
 0x186   : > { %1134 = vmatprep.subr.mxu0 %v340_v43  ;;  %v933_v60 = vsel %vm926_vm7, %v909_v52, %v911_v47  ;;  %v398_v47 = vmul.f32 %v3452_v40, %v3378_v26 }
 0x187   : > { %1135 = vmatpush1.msra.mxu0 %v339_v51  ;;  %1052 = vrot.lane.b32.xlu1 %v488_v28, %s3110_s27 }
 0x188   : > { %677 = vrot.lane.b32.xlu0 %v399_v50, %s3109_s23  ;;  %1136 = vmatprep.subr.mxu0 %v338_v4  ;;  %v5342_v4 = vld [vmem:[#allocation15_spill] sm:$0xff]  ;;  %v482_v50 = vmul.f32 %v3464_v45, %v3361_v23 }
 0x189   : > { %1228 = vmatpush1.msra.mxu1 %v933_v60  ;;  %1137 = vmatpush1.msra.mxu0 %v337_v16  ;;  %v761_v32 = vpop.permute.xlu1 %760  ;;  %v905_v58 = vpop.permute.xlu0 %904  ;;  %v386_v52 = vmul.f32 %v5342_v4, %v3301_v11  ;;  %v5343_v11 = vld [vmem:[#allocation13_spill] sm:$0xff] }
 0x18a   : > { %1138 = vmatprep.subr.mxu0 %v336_v49  ;;  %v778_v0 = vsel %vm768_vm10, %v759_v46, %v761_v32  ;;  %v384_v60 = vmul.f32 %v5343_v11, %v3308_v12  ;;  %v246_v32 = vld [vmem:[#allocation6 + $0x8] sm:$0xff]  ;;  %v248_v12 = vld [vmem:[#allocation6 + $0x18] sm:$0xff] }
 0x18b   : > { %1139 = vmatpush1.msra.mxu0 %v335_v53  ;;  %1048 = vrot.lane.b32.xlu1 %v486_v54, %s3110_s27 }
 0x18c   : > { %673 = vrot.lane.b32.xlu0 %v397_v63, %s3109_s23  ;;  %1140 = vmatprep.subr.mxu0 %v334_v17  ;;  %v480_v17 = vmul.f32 %v3462_v44, %v3368_v24  ;;  %v383_v24 = vmul.f32 %v5342_v4, %v3318_v14  ;;  %v381_v14 = vmul.f32 %v5343_v11, %v3321_v15 }
 0x18d   : > { %1141 = vmatpush1.msra.mxu0 %v333_v59  ;;  %v907_v56 = vpop.permute.xlu1 %906  ;;  %v757_v2 = vpop.permute.xlu0 %756  ;;  %1174 = vmatprep.mubr.f32.mxu0 %v246_v32 }
 0x18e   : > { %1142 = vmatprep.subr.mxu0 %v851_v18  ;;  %v932_v7 = vsel %vm926_vm7, %v905_v58, %v907_v56  ;;  %v777_v20 = vsel %vm768_vm10, %v757_v2, %v759_v46  ;;  %v481_v46 = vmul.f32 %v3724_v35, %v3358_v22  ;;  %2808 = vmatprep.mubr.msk.f32.mxu1 %vm1091_vm11, %v248_v12 }
 0x18f   : > { %1143 = vmatpush2.msra.mxu0 %v850_v6  ;;  %675 = vrot.lane.b32.xlu1 %v398_v47, %s3109_s23  ;;  %v479_v47 = vmul.f32 %v3464_v45, %v3378_v26 }
 0x190   : > { %1044 = vrot.lane.b32.xlu0 %v484_v3, %s3110_s27  ;;  %1144 = vmatprep.subr.mxu0 %v849_v61  ;;  %v477_v3 = vmul.f32 %v3462_v44, %v3381_v27 }
 0x191   : > { %1229 = vmatprep.subr.mxu1 %v932_v7  ;;  %1145 = vmatpush2.msra.mxu0 %v848_v38  ;;  %v903_v19 = vpop.permute.xlu1 %902  ;;  %v753_v41 = vpop.permute.xlu0 %752 }
 0x192   : > { %1146 = vmatprep.subr.mxu0 %v780_v34  ;;  %v931_v31 = vsel %vm926_vm7, %v903_v19, %v905_v58  ;;  %v382_v58 = vmul.f32 %v5341_v29, %v3311_v13  ;;  %v478_v13 = vmul.f32 %v3724_v35, %v3371_v25 }
 0x193   : > { %1147 = vmatpush2.msra.mxu0 %v779_v55  ;;  %1046 = vrot.lane.b32.xlu1 %v485_v42, %s3110_s27 }
 0x194   : > { %671 = vrot.lane.b32.xlu0 %v396_v48, %s3109_s23  ;;  %1148 = vmatprep.subr.mxu0 %v778_v0 }
 0x195   : > { %1230 = vmatpush1.msra.mxu1 %v931_v31  ;;  %1149 = vmatpush2.msra.mxu0 %v777_v20  ;;  %v755_v62 = vpop.permute.xlu1 %754  ;;  %v899_v36 = vpop.permute.xlu0 %898 }
 0x196   : > { %v776_v57 = vsel %vm768_vm10, %v753_v41, %v755_v62 }
 0x197   : > { %1042 = vrot.lane.b32.xlu1 %v483_v5, %s3110_s27  ;;  %1150 = vmatprep.subr.mxu0 %v776_v57 }
 0x198   : > { %624 = vrot.lane.b32.xlu0 %v385_v1, %s3105_s5 }
 0x199   : > { %v901_v43 = vpop.permute.xlu1 %900  ;;  %v751_v51 = vpop.permute.xlu0 %750 }
 0x19a   : > { %v775_v21 = vsel %vm768_vm10, %v751_v51, %v753_v41  ;;  %v930_v28 = vsel %vm926_vm7, %v899_v36, %v901_v43 }
 0x19b   : > { %626 = vrot.lane.b32.xlu1 %v386_v52, %s3105_s5  ;;  %1151 = vmatpush2.msra.mxu0 %v775_v21 }
 0x19c   : > { %1038 = vrot.lane.b32.xlu0 %v481_v46, %s3110_s27  ;;  %1231 = vmatprep.subr.mxu1 %v930_v28 }
 0x19d   : > { %v897_v10 = vpop.permute.xlu1 %896  ;;  %v747_v16 = vpop.permute.xlu0 %746 }
 0x19e   : > { %v929_v22 = vsel %vm926_vm7, %v897_v10, %v899_v36 }
 0x19f   : > { %1040 = vrot.lane.b32.xlu1 %v482_v50, %s3110_s27  ;;  %1232 = vmatpush1.msra.mxu1 %v929_v22 }
 0x1a0   : > { %622 = vrot.lane.b32.xlu0 %v384_v60, %s3105_s5 }
 0x1a1   : > { %v749_v49 = vpop.permute.xlu1 %748  ;;  %v893_v53 = vpop.permute.xlu0 %892 }
 0x1a2   : > { %v774_v23 = vsel %vm768_vm10, %v747_v16, %v749_v49 }
 0x1a3   : > { %1036 = vrot.lane.b32.xlu1 %v480_v17, %s3110_s27  ;;  %1152 = vmatprep.subr.mxu0 %v774_v23 }
 0x1a4   : > { %618 = vrot.lane.b32.xlu0 %v382_v58, %s3105_s5 }
 0x1a5   : > { %v895_v54 = vpop.permute.xlu1 %894  ;;  %v745_v59 = vpop.permute.xlu0 %744 }
 0x1a6   : > { %v773_v63 = vsel %vm768_vm10, %v745_v59, %v747_v16  ;;  %v928_v56 = vsel %vm926_vm7, %v893_v53, %v895_v54 }
 0x1a7   : > { %620 = vrot.lane.b32.xlu1 %v383_v24, %s3105_s5  ;;  %1153 = vmatpush2.msra.mxu0 %v773_v63 }
 0x1a8   : > { %1032 = vrot.lane.b32.xlu0 %v478_v13, %s3110_s27  ;;  %1233 = vmatprep.subr.mxu1 %v928_v56 }
 0x1a9   : > { %v891_v2 = vpop.permute.xlu1 %890  ;;  %v741_v18 = vpop.permute.xlu0 %740 }
 0x1aa   : > { %v927_v25 = vsel %vm926_vm7, %v891_v2, %v893_v53 }
 0x1ab   : > { %1034 = vrot.lane.b32.xlu1 %v479_v47, %s3110_s27  ;;  %1234 = vmatpush1.msra.mxu1 %v927_v25 }
 0x1ac   : > { %616 = vrot.lane.b32.xlu0 %v381_v14, %s3105_s5 }
 0x1ad   : > { %v743_v30 = vpop.permute.xlu1 %742  ;;  %v844_v6 = vpop.permute.xlu0 %843 }
 0x1ae   : > { %v772_v7 = vsel %vm768_vm10, %v741_v18, %v743_v30 }
 0x1af   : > { %1030 = vrot.lane.b32.xlu1 %v477_v3, %s3110_s27  ;;  %1154 = vmatprep.subr.mxu0 %v772_v7 }
 0x1b1   : > { %v846_v26 = vpop.permute.xlu1 %845  ;;  %v739_v37 = vpop.permute.xlu0 %738 }
 0x1b2   : > { %v771_v15 = vsel %vm768_vm10, %v739_v37, %v741_v18  ;;  %v859_v61 = vsel %vm847_vm9, %v844_v6, %v846_v26 }
 0x1b3   : > { %1155 = vmatpush2.msra.mxu0 %v771_v15  ;;  %1235 = vmatprep.subr.mxu1 %v859_v61 }
 0x1b5   : > { %v842_v38 = vpop.permute.xlu1 %841  ;;  %v735_v19 = vpop.permute.xlu0 %734 }
 0x1b6   : > { %v858_v41 = vsel %vm847_vm9, %v842_v38, %v844_v6 }
 0x1b7   : > { %1236 = vmatpush1.msra.mxu1 %v858_v41 }
 0x1b9   : > { %v737_v34 = vpop.permute.xlu1 %736  ;;  %v838_v27 = vpop.permute.xlu0 %837 }
 0x1ba   : > { %v770_v42 = vsel %vm768_vm10, %v735_v19, %v737_v34 }
 0x1bb   : > { %1156 = vmatprep.subr.mxu0 %v770_v42 }
 0x1bd   : > { %v840_v55 = vpop.permute.xlu1 %839  ;;  %v733_v48 = vpop.permute.xlu0 %732 }
 0x1be   : > { %v769_v31 = vsel %vm768_vm10, %v733_v48, %v735_v19  ;;  %v857_v0 = vsel %vm847_vm9, %v838_v27, %v840_v55 }
 0x1bf   : > { %1157 = vmatpush2.msra.mxu0 %v769_v31  ;;  %1237 = vmatprep.subr.mxu1 %v857_v0 }
 0x1c1   : > { %v836_v20 = vpop.permute.xlu1 %835  ;;  %v704_v62 = vpop.permute.xlu0 %703 }
 0x1c2   : > { %v856_v36 = vsel %vm847_vm9, %v836_v20, %v838_v27 }
 0x1c3   : > { %1238 = vmatpush1.msra.mxu1 %v856_v36 }
 0x1c5   : > { %v706_v5 = vpop.permute.xlu1 %705  ;;  %v832_v1 = vpop.permute.xlu0 %831 }
 0x1c6   : > { %v719_v57 = vsel %vm707_vm12, %v704_v62, %v706_v5 }
 0x1c7   : > { %1158 = vmatprep.subr.mxu0 %v719_v57 }
 0x1c9   : > { %v834_v43 = vpop.permute.xlu1 %833  ;;  %v702_v51 = vpop.permute.xlu0 %701 }
 0x1ca   : > { %v718_v52 = vsel %vm707_vm12, %v702_v51, %v704_v62  ;;  %v855_v46 = vsel %vm847_vm9, %v832_v1, %v834_v43 }
 0x1cb   : > { %1159 = vmatpush2.msra.mxu0 %v718_v52  ;;  %1239 = vmatprep.subr.mxu1 %v855_v46 }
 0x1cd   : > { %v830_v21 = vpop.permute.xlu1 %829  ;;  %v698_v28 = vpop.permute.xlu0 %697 }
 0x1ce   : > { %v854_v10 = vsel %vm847_vm9, %v830_v21, %v832_v1 }
 0x1cf   : > { %1240 = vmatpush1.msra.mxu1 %v854_v10 }
 0x1d1   : > { %v700_v16 = vpop.permute.xlu1 %699  ;;  %v826_v50 = vpop.permute.xlu0 %825 }
 0x1d2   : > { %v717_v60 = vsel %vm707_vm12, %v698_v28, %v700_v16 }
 0x1d3   : > { %1160 = vmatprep.subr.mxu0 %v717_v60 }
 0x1d5   : > { %v828_v22 = vpop.permute.xlu1 %827  ;;  %v696_v49 = vpop.permute.xlu0 %695 }
 0x1d6   : > { %v716_v53 = vsel %vm707_vm12, %v696_v49, %v698_v28  ;;  %v853_v17 = vsel %vm847_vm9, %v826_v50, %v828_v22 }
 0x1d7   : > { %1161 = vmatpush2.msra.mxu0 %v716_v53  ;;  %1241 = vmatprep.subr.mxu1 %v853_v17 }
 0x1d9   : > { %v824_v32 = vpop.permute.xlu1 %823  ;;  %v692_v58 = vpop.permute.xlu0 %691 }
 0x1da   : > { %v852_v23 = vsel %vm847_vm9, %v824_v32, %v826_v50 }
 0x1db   : > { %1242 = vmatpush1.msra.mxu1 %v852_v23 }
 0x1dd   : > { %v694_v12 = vpop.permute.xlu1 %693  ;;  %v1063_v54 = vpop.permute.xlu0 %1062 }
 0x1de   : > { %v715_v59 = vsel %vm707_vm12, %v692_v58, %v694_v12 }
 0x1df   : > { %1162 = vmatprep.subr.mxu0 %v715_v59 }
 0x1e1   : > { %v1065_v24 = vpop.permute.xlu1 %1064  ;;  %v690_v13 = vpop.permute.xlu0 %689 }
 0x1e2   : > { %v714_v63 = vsel %vm707_vm12, %v690_v13, %v692_v58  ;;  %v1078_v56 = vsel %vm1066_vm13, %v1063_v54, %v1065_v24  ;;  %v245_v24 = vld [vmem:[#allocation6] sm:$0xff] }
 0x1e3   : > { %1163 = vmatpush2.msra.mxu0 %v714_v63  ;;  %1263 = vmatprep.subr.mxu1 %v1078_v56  ;;  %v250_v63 = vld [vmem:[#allocation6 + $0x28] sm:$0xff] }
 0x1e5   : > { %v1061_v2 = vpop.permute.xlu1 %1060 }
 0x1e6   : > { %v686_v18 = vpop.permute.xlu0 %685  ;;  %v1077_v47 = vsel %vm1066_vm13, %v1061_v2, %v1063_v54  ;;  %v247_v2 = vld [vmem:[#allocation6 + $0x10] sm:$0xff] }
 0x1e7   : > { %1264 = vmatpush2.msra.mxu1 %v1077_v47  ;;  %v252_v47 = vld [vmem:[#allocation6 + $0x38] sm:$0xff] }
 0x1e9   : > { %v688_v14 = vpop.permute.xlu1 %687 }
 0x1ea   : > { %v1057_v25 = vpop.permute.xlu0 %1056  ;;  %v713_v30 = vsel %vm707_vm12, %v686_v18, %v688_v14  ;;  %v249_v14 = vld [vmem:[#allocation6 + $0x20] sm:$0xff] }
 0x1eb   : > { %1164 = vmatprep.subr.mxu0 %v713_v30  ;;  %v251_v30 = vld [vmem:[#allocation6 + $0x30] sm:$0xff] }
 0x1ed   : > { %v1059_v6 = vpop.permute.xlu1 %1058 }
 0x1ee   : > { %v684_v3 = vpop.permute.xlu0 %683  ;;  %v1076_v7 = vsel %vm1066_vm13, %v1057_v25, %v1059_v6  ;;  %v256_v6 = vld [vmem:[#allocation6 + $0x58] sm:$0xff] }
 0x1ef   : > { %v712_v26 = vsel %vm707_vm12, %v684_v3, %v686_v18  ;;  %1265 = vmatprep.subr.mxu1 %v1076_v7  ;;  %v253_v3 = vld [vmem:[#allocation6 + $0x40] sm:$0xff]  ;;  %v258_v7 = vld [vmem:[#allocation6 + $0x68] sm:$0xff] }
 0x1f0   : > { %1165 = vmatpush2.msra.mxu0 %v712_v26  ;;  %v255_v26 = vld [vmem:[#allocation6 + $0x50] sm:$0xff] }
 0x1f1   : > { %v1055_v37 = vpop.permute.xlu1 %1054 }
 0x1f2   : > { %v680_v15 = vpop.permute.xlu0 %679  ;;  %v1075_v61 = vsel %vm1066_vm13, %v1055_v37, %v1057_v25  ;;  %v254_v25 = vld [vmem:[#allocation6 + $0x48] sm:$0xff]  ;;  %v260_v37 = vld [vmem:[#allocation6 + $0x78] sm:$0xff] }
 0x1f3   : > { %1266 = vmatpush2.msra.mxu1 %v1075_v61  ;;  %v262_v61 = vld [vmem:[#allocation6 + $0x88] sm:$0xff] }
 0x1f5   : > { %v682_v38 = vpop.permute.xlu1 %681 }
 0x1f6   : > { %v1051_v19 = vpop.permute.xlu0 %1050  ;;  %v711_v41 = vsel %vm707_vm12, %v680_v15, %v682_v38  ;;  %v259_v38 = vld [vmem:[#allocation6 + $0x70] sm:$0xff] }
 0x1f7   : > { %1166 = vmatprep.subr.mxu0 %v711_v41  ;;  %v261_v41 = vld [vmem:[#allocation6 + $0x80] sm:$0xff] }
 0x1f9   : > { %v1053_v34 = vpop.permute.xlu1 %1052 }
 0x1fa   : > { %v678_v27 = vpop.permute.xlu0 %677  ;;  %v1074_v42 = vsel %vm1066_vm13, %v1051_v19, %v1053_v34  ;;  %v266_v34 = vld [vmem:[#allocation6 + $0xa8] sm:$0xff] }
 0x1fb   : > { %v710_v55 = vsel %vm707_vm12, %v678_v27, %v680_v15  ;;  %1267 = vmatprep.subr.mxu1 %v1074_v42  ;;  %v257_v15 = vld [vmem:[#allocation6 + $0x60] sm:$0xff]  ;;  %v263_v27 = vld [vmem:[#allocation6 + $0x90] sm:$0xff]  ;;  %v268_v42 = vld [vmem:[#allocation6 + $0xb8] sm:$0xff] }
 0x1fc   : > { %1167 = vmatpush2.msra.mxu0 %v710_v55  ;;  %v265_v55 = vld [vmem:[#allocation6 + $0xa0] sm:$0xff] }
 0x1fd   : > { %v1049_v48 = vpop.permute.xlu1 %1048 }
 0x1fe   : > { %v674_v31 = vpop.permute.xlu0 %673  ;;  %v1073_v0 = vsel %vm1066_vm13, %v1049_v48, %v1051_v19  ;;  %v264_v19 = vld [vmem:[#allocation6 + $0x98] sm:$0xff]  ;;  %v267_v48 = vld [vmem:[#allocation6 + $0xb0] sm:$0xff] }
 0x1ff   : > { %1268 = vmatpush2.msra.mxu1 %v1073_v0 }
 0x201   : > { %v676_v20 = vpop.permute.xlu1 %675 }
 0x202   : > { %v1045_v62 = vpop.permute.xlu0 %1044  ;;  %v709_v36 = vsel %vm707_vm12, %v674_v31, %v676_v20 }
 0x203   : > { %1168 = vmatprep.subr.mxu0 %v709_v36 }
 0x205   : > { %v1047_v5 = vpop.permute.xlu1 %1046 }
 0x206   : > { %v672_v1 = vpop.permute.xlu0 %671  ;;  %v1072_v57 = vsel %vm1066_vm13, %v1045_v62, %v1047_v5 }
 0x207   : > { %v708_v43 = vsel %vm707_vm12, %v672_v1, %v674_v31  ;;  %1269 = vmatprep.subr.mxu1 %v1072_v57 }
 0x208   : > { %1169 = vmatpush2.msra.mxu0 %v708_v43 }
 0x209   : > { %v1043_v51 = vpop.permute.xlu1 %1042 }
 0x20a   : > { %v625_v52 = vpop.permute.xlu0 %624  ;;  %v1071_v46 = vsel %vm1066_vm13, %v1043_v51, %v1045_v62 }
 0x20b   : > { %1270 = vmatpush2.msra.mxu1 %v1071_v46 }
 0x20d   : > { %v627_v21 = vpop.permute.xlu1 %626 }
 0x20e   : > { %v1039_v28 = vpop.permute.xlu0 %1038  ;;  %v640_v10 = vsel %vm628_vm5, %v625_v52, %v627_v21 }
 0x20f   : > { %1170 = vmatprep.subr.mxu0 %v640_v10 }
 0x211   : > { %v1041_v16 = vpop.permute.xlu1 %1040 }
 0x212   : > { %v623_v50 = vpop.permute.xlu0 %622  ;;  %v1070_v60 = vsel %vm1066_vm13, %v1039_v28, %v1041_v16 }
 0x213   : > { %v639_v22 = vsel %vm628_vm5, %v623_v50, %v625_v52  ;;  %1271 = vmatprep.subr.mxu1 %v1070_v60 }
 0x214   : > { %1171 = vmatpush2.msra.mxu0 %v639_v22 }
 0x215   : > { %v1037_v49 = vpop.permute.xlu1 %1036 }
 0x216   : > { %v619_v53 = vpop.permute.xlu0 %618  ;;  %v1069_v17 = vsel %vm1066_vm13, %v1037_v49, %v1039_v28 }
 0x217   : > { %1272 = vmatpush2.msra.mxu1 %v1069_v17 }
 0x219   : > { %v621_v32 = vpop.permute.xlu1 %620 }
 0x21a   : > { %v1033_v58 = vpop.permute.xlu0 %1032  ;;  %v638_v23 = vsel %vm628_vm5, %v619_v53, %v621_v32 }
 0x21b   : > { %1172 = vmatprep.subr.mxu0 %v638_v23 }
 0x21d   : > { %v1035_v12 = vpop.permute.xlu1 %1034 }
 0x21e   : > { %v617_v54 = vpop.permute.xlu0 %616  ;;  %v1068_v59 = vsel %vm1066_vm13, %v1033_v58, %v1035_v12 }
 0x21f   : > { %v637_v13 = vsel %vm628_vm5, %v617_v54, %v619_v53  ;;  %1273 = vmatprep.subr.mxu1 %v1068_v59 }
 0x220   : > { %1173 = vmatpush2.msra.mxu0 %v637_v13 }
 0x221   : > { %v1031_v56 = vpop.permute.xlu1 %1030  ;;  %1175 = vmatmul.mubr.f32.vlgmr.msra.gmra.mxu0 %v245_v24 }
 0x222   : > { %v1067_v18 = vsel %vm1066_vm13, %v1031_v56, %v1033_v58  ;;  %1180 = vmatprep.mubr.f32.mxu0 %v250_v63 }
 0x223   : > { %1274 = vmatpush2.msra.mxu1 %v1067_v18 }
 0x224   : > { %1276 = vmatmul.mubr.f32.vlgmr.msra.gmra.mxu1 %v247_v2 }
 0x225   : > { %2809 = vmatprep.mubr.msk.f32.mxu1 %vm1091_vm11, %v252_v47  ;;  %1181 = vmatmul.mubr.f32.gmra.mxu0 %v249_v14 }
 0x226   : > { %1186 = vmatprep.mubr.f32.mxu0 %v254_v25 }
 0x228   : > { %1282 = vmatmul.mubr.f32.gmra.mxu1 %v251_v30 }
 0x229   : > { %2810 = vmatprep.mubr.msk.f32.mxu1 %vm1091_vm11, %v256_v6  ;;  %1187 = vmatmul.mubr.f32.gmra.mxu0 %v253_v3 }
 0x22a   : > { %1192 = vmatprep.mubr.f32.mxu0 %v258_v7 }
 0x22c   : > { %1288 = vmatmul.mubr.f32.gmra.mxu1 %v255_v26 }
 0x22d   : > { %2811 = vmatprep.mubr.msk.f32.mxu1 %vm1091_vm11, %v260_v37  ;;  %1193 = vmatmul.mubr.f32.gmra.mxu0 %v257_v15 }
 0x22e   : > { %1198 = vmatprep.mubr.f32.mxu0 %v262_v61 }
 0x230   : > { %1294 = vmatmul.mubr.f32.gmra.mxu1 %v259_v38 }
 0x231   : > { %2812 = vmatprep.mubr.msk.f32.mxu1 %vm1091_vm11, %v264_v19  ;;  %1199 = vmatmul.mubr.f32.gmra.mxu0 %v261_v41 }
 0x232   : > { %1204 = vmatprep.mubr.f32.mxu0 %v266_v34 }
 0x234   : > { %1300 = vmatmul.mubr.f32.gmra.mxu1 %v263_v27 }
 0x235   : > { %2813 = vmatprep.mubr.msk.f32.mxu1 %vm1091_vm11, %v268_v42  ;;  %1205 = vmatmul.mubr.f32.gmra.mxu0 %v265_v55 }
 0x238   : > { %1306 = vmatmul.mubr.f32.gmra.mxu1 %v267_v48 }
 0x2e1   : > { %v1176_v31 = vpop.f32.mrf.mxu0 }
 0x2e3   : > { %v1178_v0 = vpop.f32.mrf.mxu0 }
 0x2e4   : > { %v1277_v20 = vpop.f32.mrf.mxu1 }
 0x2e5   : > { %v1182_v62 = vpop.f32.mrf.mxu0  ;;  %v3997_v5 = vadd.f32 %v1277_v20, %v1176_v31 }
 0x2e6   : > { %v1279_v36 = vpop.f32.mrf.mxu1 }
 0x2e7   : > { %v3999_v1 = vadd.f32 %v1279_v36, %v1178_v0  ;;  %v1184_v57 = vpop.f32.mrf.mxu0  ;;  %v1337_v10 = vmul.f32 %v3997_v5, %v3997_v5 }
 0x2e8   : > { %v1283_v43 = vpop.f32.mrf.mxu1 }
 0x2e9   : > { %v1338_v51 = vmul.f32 %v3999_v1, %v3999_v1  ;;  %v4003_v52 = vadd.f32 %v1283_v43, %v1182_v62  ;;  %v1312_v46 = vadd.f32 %v3999_v1, %v3997_v5  ;;  %v1188_v21 = vpop.f32.mrf.mxu0 }
 0x2ea   : > { %v1285_v28 = vpop.f32.mrf.mxu1 }
 0x2eb   : > { %v1339_v16 = vmul.f32 %v4003_v52, %v4003_v52  ;;  %v4011_v50 = vadd.f32 %v1285_v28, %v1184_v57  ;;  %1313 = vadd.xlane.f32.xlu0 %v1312_v46  ;;  %v1190_v60 = vpop.f32.mrf.mxu0  ;;  %v1349_v17 = vadd.f32 %v1338_v51, %v1337_v10  ;;  %v3111_v51 = vmov 0.0  }
 0x2ec   : > { %v1289_v22 = vpop.f32.mrf.mxu1  ;;  %297 = vst.msk [vmem:[#allocation2] sm:$0xff] %vm296_vm14, %v3111_v51  ;;  %298 = vst.msk [vmem:[#allocation2 + $0x18] sm:$0xff] %vm296_vm14, %v3111_v51 }
 0x2ed   : > { %v1340_v49 = vmul.f32 %v4011_v50, %v4011_v50  ;;  %v4015_v53 = vadd.f32 %v1289_v22, %v1188_v21  ;;  %v1194_v32 = vpop.f32.mrf.mxu0  ;;  %v1315_v59 = vadd.f32 %v4011_v50, %v4003_v52  ;;  %299 = vst.msk [vmem:[#allocation2 + $0x30] sm:$0xff] %vm296_vm14, %v3111_v51  ;;  %300 = vst.msk [vmem:[#allocation2 + $0x48] sm:$0xff] %vm296_vm14, %v3111_v51 }
 0x2ee   : > { %v1291_v58 = vpop.f32.mrf.mxu1  ;;  %301 = vst.msk [vmem:[#allocation2 + $0x60] sm:$0xff] %vm296_vm14, %v3111_v51  ;;  %302 = vst.msk [vmem:[#allocation2 + $0x78] sm:$0xff] %vm296_vm14, %v3111_v51 }
 0x2ef   : > { %v4017_v23 = vadd.f32 %v1291_v58, %v1190_v60  ;;  %1350 = vadd.xlane.f32.xlu0 %v1349_v17  ;;  %v1352_v12 = vadd.f32 %v1340_v49, %v1339_v16  ;;  %v1196_v54 = vpop.f32.mrf.mxu0  ;;  %v1341_v13 = vmul.f32 %v4015_v53, %v4015_v53  ;;  %304 = vst.msk [vmem:[#allocation2 + $0x10] sm:$0xff] %vm303_vm15, %v3111_v51  ;;  %305 = vst.msk [vmem:[#allocation2 + $0x28] sm:$0xff] %vm303_vm15, %v3111_v51 }
 0x2f0   : > { %v1295_v24 = vpop.f32.mrf.mxu1  ;;  %306 = vst.msk [vmem:[#allocation2 + $0x40] sm:$0xff] %vm303_vm15, %v3111_v51  ;;  %307 = vst.msk [vmem:[#allocation2 + $0x58] sm:$0xff] %vm303_vm15, %v3111_v51 }
 0x2f1   : > { %v1342_v63 = vmul.f32 %v4017_v23, %v4017_v23  ;;  %v4025_v56 = vadd.f32 %v1295_v24, %v1194_v32  ;;  %1353 = vadd.xlane.f32.xlu1 %v1352_v12  ;;  %v1200_v2 = vpop.f32.mrf.mxu0  ;;  %v1318_v18 = vadd.f32 %v4017_v23, %v4015_v53  ;;  %308 = vst.msk [vmem:[#allocation2 + $0x70] sm:$0xff] %vm303_vm15, %v3111_v51  ;;  %309 = vst.msk [vmem:[#allocation2 + $0x88] sm:$0xff] %vm303_vm15, %v3111_v51 }
 0x2f2   : > { %v1297_v47 = vpop.f32.mrf.mxu1 }
 0x2f3   : > { %v1343_v14 = vmul.f32 %v4025_v56, %v4025_v56  ;;  %v4031_v25 = vadd.f32 %v1297_v47, %v1196_v54  ;;  %1316 = vadd.xlane.f32.xlu0 %v1315_v59  ;;  %v1202_v30 = vpop.f32.mrf.mxu0  ;;  %v1355_v37 = vadd.f32 %v1342_v63, %v1341_v13 }
 0x2f4   : > { %v1301_v6 = vpop.f32.mrf.mxu1 }
 0x2f5   : > { %v1344_v3 = vmul.f32 %v4031_v25, %v4031_v25  ;;  %1319 = vadd.xlane.f32.xlu1 %v1318_v18  ;;  %v1321_v7 = vadd.f32 %v4031_v25, %v4025_v56  ;;  %v1206_v26 = vpop.f32.mrf.mxu0  ;;  %v4037_v61 = vadd.f32 %v1301_v6, %v1200_v2 }
 0x2f6   : > { %v1303_v15 = vpop.f32.mrf.mxu1 }
 0x2f7   : > { %v4039_v38 = vadd.f32 %v1303_v15, %v1202_v30  ;;  %1322 = vadd.xlane.f32.xlu0 %v1321_v7  ;;  %v1358_v19 = vadd.f32 %v1344_v3, %v1343_v14  ;;  %v1208_v34 = vpop.f32.mrf.mxu0  ;;  %v1345_v42 = vmul.f32 %v4037_v61, %v4037_v61 }
 0x2f8   : > { %v1307_v41 = vpop.f32.mrf.mxu1 }
 0x2f9   : > { %v4041_v27 = vadd.f32 %v1307_v41, %v1206_v26  ;;  %1356 = vadd.xlane.f32.xlu1 %v1355_v37  ;;  %v1346_v48 = vmul.f32 %v4039_v38, %v4039_v38  ;;  %v1324_v20 = vadd.f32 %v4039_v38, %v4037_v61 }
 0x2fa   : > { %v1309_v55 = vpop.f32.mrf.mxu1 }
 0x2fb   : > { %v1347_v31 = vmul.f32 %v4041_v27, %v4041_v27  ;;  %v4049_v0 = vadd.f32 %v1309_v55, %v1208_v34  ;;  %1359 = vadd.xlane.f32.xlu0 %v1358_v19  ;;  %v1361_v57 = vadd.f32 %v1346_v48, %v1345_v42 }
 0x2fd   : > { %v1348_v62 = vmul.f32 %v4049_v0, %v4049_v0  ;;  %v1327_v36 = vadd.f32 %v4049_v0, %v4041_v27 }
 0x2ff   : > { %1325 = vadd.xlane.f32.xlu0 %v1324_v20  ;;  %1328 = vadd.xlane.f32.xlu1 %v1327_v36  ;;  %v1364_v43 = vadd.f32 %v1348_v62, %v1347_v31 }
 0x303   : > { %1362 = vadd.xlane.f32.xlu0 %v1361_v57  ;;  %1365 = vadd.xlane.f32.xlu1 %v1364_v43 }
 0x374   : > { %v1314_v46 = vpop.xlane.xlu0 %1313 }
 0x375   : > { %v1331_v21 = vmul.f32 0.00390625, %v1314_v46 }
 0x377   : > { %v1373_v10 = vmul.f32 %v1331_v21, %v1331_v21  ;;  %v1385_v62 = vsub.f32 %v3997_v5, %v1331_v21 }
 0x378   : > { %v1351_v28 = vpop.xlane.xlu0 %1350 }
 0x379   : > { %v1367_v16 = vmul.f32 0.00390625, %v1351_v28  ;;  %v1386_v28 = vsub.f32 %v3999_v1, %v1331_v21 }
 0x37a   : > { %v1354_v60 = vpop.xlane.xlu1 %1353 }
 0x37b   : > { %v1379_v22 = vsub.f32 %v1367_v16, %v1373_v10  ;;  %v1368_v32 = vmul.f32 0.00390625, %v1354_v60 }
 0x37c   : > { %v1317_v49 = vpop.xlane.xlu0 %1316 }
 0x37d   : > { %v1397_v17 = vmax.f32 %v1379_v22, 0.0  ;;  %v4063_v58 = vmul.f32 0.00390625, %v1317_v49 }
 0x37e   : > { %v1320_v12 = vpop.xlane.xlu1 %1319 }
 0x37f   : > { %v1403_v54 = vadd.f32 1e-05, %v1397_v17  ;;  %v1374_v59 = vmul.f32 %v4063_v58, %v4063_v58  ;;  %v4067_v24 = vmul.f32 0.00390625, %v1320_v12 }
 0x380   : > { %v1323_v13 = vpop.xlane.xlu0 %1322 }
 0x381   : > { %2915 = vrsqrt.f32 %v1403_v54  ;;  %v1380_v63 = vsub.f32 %v1368_v32, %v1374_v59  ;;  %v4069_v2 = vmul.f32 0.00390625, %v1323_v13  ;;  %v1375_v18 = vmul.f32 %v4067_v24, %v4067_v24 }
 0x382   : > { %v1357_v47 = vpop.xlane.xlu1 %1356  ;;  %v1387_v59 = vsub.f32 %v4003_v52, %v4063_v58  ;;  %v1388_v13 = vsub.f32 %v4011_v50, %v4063_v58  ;;  %v1390_v50 = vsub.f32 %v4017_v23, %v4067_v24 }
 0x383   : > { %v1398_v14 = vmax.f32 %v1380_v63, 0.0  ;;  %v1369_v30 = vmul.f32 0.00390625, %v1357_v47  ;;  %v1376_v6 = vmul.f32 %v4069_v2, %v4069_v2  ;;  %v1392_v58 = vsub.f32 %v4031_v25, %v4069_v2 }
 0x384   : > { %v1360_v3 = vpop.xlane.xlu0 %1359 }
 0x385   : > { %v1404_v7 = vadd.f32 1e-05, %v1398_v14  ;;  %v1381_v26 = vsub.f32 %v1369_v30, %v1375_v18  ;;  %v1370_v37 = vmul.f32 0.00390625, %v1360_v3  ;;  %v1389_v14 = vsub.f32 %v4015_v53, %v4067_v24 }
 0x386   : > { %v1391_v53 = vsub.f32 %v4025_v56, %v4069_v2 }
 0x387   : > { %2917 = vrsqrt.f32 %v1404_v7  ;;  %v1399_v15 = vmax.f32 %v1381_v26, 0.0  ;;  %v1382_v19 = vsub.f32 %v1370_v37, %v1376_v6 }
 0x388   : > { %v1326_v41 = vpop.xlane.xlu0 %1325  ;;  %v1329_v34 = vpop.xlane.xlu1 %1328 }
 0x389   : > { %v1405_v42 = vadd.f32 1e-05, %v1399_v15  ;;  %v1400_v55 = vmax.f32 %v1382_v19, 0.0  ;;  %v1335_v48 = vmul.f32 0.00390625, %v1326_v41  ;;  %v4075_v31 = vmul.f32 0.00390625, %v1329_v34 }
 0x38b   : > { %2919 = vrsqrt.f32 %v1405_v42  ;;  %v1406_v20 = vadd.f32 1e-05, %v1400_v55  ;;  %v1377_v36 = vmul.f32 %v1335_v48, %v1335_v48  ;;  %v1378_v43 = vmul.f32 %v4075_v31, %v4075_v31 }
 0x38c   : > { %v1363_v57 = vpop.xlane.xlu0 %1362  ;;  %v1366_v46 = vpop.xlane.xlu1 %1365  ;;  %v1393_v25 = vsub.f32 %v4037_v61, %v1335_v48  ;;  %v1394_v41 = vsub.f32 %v4039_v38, %v1335_v48  ;;  %v1395_v55 = vsub.f32 %v4041_v27, %v4075_v31 }
 0x38d   : > { %2921 = vrsqrt.f32 %v1406_v20  ;;  %v1371_v51 = vmul.f32 0.00390625, %v1363_v57  ;;  %v1372_v10 = vmul.f32 0.00390625, %v1366_v46 }
 0x38e   : > { %v2916_v16 = vpop.eup %2915 }
 0x38f   : > { %v1383_v60 = vsub.f32 %v1371_v51, %v1377_v36  ;;  %v1384_v22 = vsub.f32 %v1372_v10, %v1378_v43  ;;  %v1415_v49 = vmul.f32 %v2916_v16, %v1385_v62  ;;  %v1416_v17 = vmul.f32 %v2916_v16, %v1386_v28 }
 0x390   : > { %v1396_v62 = vsub.f32 %v4049_v0, %v4075_v31 }
 0x391   : > { %v1401_v32 = vmax.f32 %v1383_v60, 0.0  ;;  %v1402_v12 = vmax.f32 %v1384_v22, 0.0  ;;  %v1427_v54 = vmax.f32 %v1415_v49, 0.0  ;;  %v1428_v5 = vmax.f32 %v1416_v17, 0.0 }
 0x393   : > { %v1407_v63 = vadd.f32 1e-05, %v1401_v32  ;;  %v1408_v1 = vadd.f32 1e-05, %v1402_v12  ;;  %1451 = vrot.lane.b32.xlu0 %v1427_v54, %s3112_s30  ;;  %1453 = vrot.lane.b32.xlu1 %v1428_v5, %s3112_s30 }
 0x394   : > { %v2918_v21 = vpop.eup %2917 }
 0x395   : > { %2923 = vrsqrt.f32 %v1407_v63  ;;  %v1417_v18 = vmul.f32 %v2918_v21, %v1387_v59  ;;  %v1418_v47 = vmul.f32 %v2918_v21, %v1388_v13 }
 0x396   : > { %2925 = vrsqrt.f32 %v1408_v1 }
 0x397   : > { %v1429_v30 = vmax.f32 %v1417_v18, 0.0  ;;  %v1430_v52 = vmax.f32 %v1418_v47, 0.0  ;;  %v5344_v18 = vld [vmem:[#allocation14_spill] sm:$0xff] }
 0x398   : > { %v2920_v6 = vpop.eup %2919 }
 0x399   : > { %1455 = vrot.lane.b32.xlu0 %v1429_v30, %s3112_s30  ;;  %1457 = vrot.lane.b32.xlu1 %v1430_v52, %s3112_s30  ;;  %v1419_v3 = vmul.f32 %v2920_v6, %v1389_v14  ;;  %v1420_v15 = vmul.f32 %v2920_v6, %v1390_v50  ;;  %v5345_v30 = vld [vmem:[#allocation16_spill] sm:$0xff] }
 0x39a   : > { %v2922_v7 = vpop.eup %2921  ;;  %v5346_v6 = vld [vmem:[#allocation20_spill] sm:$0xff] }
 0x39b   : > { %v1431_v26 = vmax.f32 %v1419_v3, 0.0  ;;  %v1422_v37 = vmul.f32 %v2922_v7, %v1392_v58  ;;  %v1432_v23 = vmax.f32 %v1420_v15, 0.0  ;;  %v1421_v24 = vmul.f32 %v2922_v7, %v1391_v53  ;;  %v5347_v58 = vld [vmem:[#allocation17_spill] sm:$0xff] }
 0x39c   : > { %v5348_v7 = vld [vmem:[#allocation21_spill] sm:$0xff] }
 0x39d   : > { %1459 = vrot.lane.b32.xlu1 %v1431_v26, %s3112_s30  ;;  %v1434_v19 = vmax.f32 %v1422_v37, 0.0  ;;  %v1433_v20 = vmax.f32 %v1421_v24, 0.0  ;;  %v5349_v37 = vld [vmem:[#allocation18_spill] sm:$0xff] }
 0x39f   : > { %1465 = vrot.lane.b32.xlu0 %v1434_v19, %s3112_s30 }
 0x3a1   : > { %1461 = vrot.lane.b32.xlu1 %v1432_v23, %s3112_s30 }
 0x3a2   : > { %v2924_v34 = vpop.eup %2923 }
 0x3a3   : > { %v2926_v42 = vpop.eup %2925  ;;  %v1423_v56 = vmul.f32 %v2924_v34, %v1393_v25  ;;  %v1424_v2 = vmul.f32 %v2924_v34, %v1394_v41 }
 0x3a4   : > { %v1425_v57 = vmul.f32 %v2926_v42, %v1395_v55  ;;  %v1426_v38 = vmul.f32 %v2926_v42, %v1396_v62 }
 0x3a5   : > { %1463 = vrot.lane.b32.xlu1 %v1433_v20, %s3112_s30  ;;  %v1435_v36 = vmax.f32 %v1423_v56, 0.0  ;;  %v1436_v61 = vmax.f32 %v1424_v2, 0.0 }
 0x3a6   : > { %v1437_v48 = vmax.f32 %v1425_v57, 0.0  ;;  %v1438_v27 = vmax.f32 %v1426_v38, 0.0 }
 0x3a7   : > { %1467 = vrot.lane.b32.xlu0 %v1435_v36, %s3112_s30 }
 0x3a9   : > { %1469 = vrot.lane.b32.xlu1 %v1436_v61, %s3112_s30 }
 0x3ab   : > { %1471 = vrot.lane.b32.xlu0 %v1437_v48, %s3112_s30 }
 0x3ad   : > { %1473 = vrot.lane.b32.xlu1 %v1438_v27, %s3112_s30 }
 0x405   : > { %v1452_v43 = vpop.permute.xlu0 %1451  ;;  %v1454_v46 = vpop.permute.xlu1 %1453 }
 0x406   : > { %1500 = vst.msk [vmem:[#allocation2] sm:$0xff] %vm1499_vm0, %v1452_v43  ;;  %v4113_v0 = vsel %vm296_vm14, %v1452_v43, %v1454_v46 }
 0x407   : > { %1502 = vst.msk [vmem:[#allocation2 + $0x10] sm:$0xff] %vm296_vm14, %v1454_v46  ;;  %1501 = vst [vmem:[#allocation2 + $0x8] sm:$0xff] %v4113_v0  ;;  %v1585_v50 = vmul.f32 %v4113_v0, %v5346_v6  ;;  %v1603_v26 = vmul.f32 %v4113_v0, %v5348_v7  ;;  %v1567_v53 = vmul.f32 %v4113_v0, %v3661_v33 }
 0x408   : > { %v1549_v24 = vmul.f32 %v4113_v0, %v5341_v29 }
 0x40b   : > { %v1456_v31 = vpop.permute.xlu0 %1455  ;;  %v1458_v28 = vpop.permute.xlu1 %1457 }
 0x40c   : > { %1503 = vst.msk [vmem:[#allocation2 + $0x18] sm:$0xff] %vm1499_vm0, %v1456_v31  ;;  %v4119_v51 = vsel %vm296_vm14, %v1456_v31, %v1458_v28 }
 0x40d   : > { %1505 = vst.msk [vmem:[#allocation2 + $0x28] sm:$0xff] %vm296_vm14, %v1458_v28  ;;  %v4122_v10 = vld [vmem:[#allocation2] sm:$0xff]  ;;  %v1552_v36 = vmul.f32 %v4119_v51, %v5341_v29  ;;  %v1588_v57 = vmul.f32 %v4119_v51, %v5346_v6  ;;  %v1606_v38 = vmul.f32 %v4119_v51, %v5348_v7  ;;  %v1570_v48 = vmul.f32 %v4119_v51, %v3661_v33 }
 0x40e   : > { %v4124_v16 = vld [vmem:[#allocation2 + $0x10] sm:$0xff]  ;;  %1656 = vrot.lane.b32.xlu1 %v4122_v10, %s3103_s28  ;;  %v1584_v47 = vmul.f32 %v4122_v10, %v5344_v18  ;;  %v1548_v14 = vmul.f32 %v4122_v10, %v5343_v11  ;;  %v1602_v15 = vmul.f32 %v4122_v10, %v5349_v37 }
 0x40f   : > { %1660 = vrot.lane.b32.xlu0 %v4124_v16, %s3103_s28  ;;  %v1460_v60 = vpop.permute.xlu1 %1459  ;;  %v1550_v13 = vmul.f32 %v4124_v16, %v5342_v4  ;;  %v1586_v52 = vmul.f32 %v4124_v16, %v5345_v30  ;;  %v1604_v3 = vmul.f32 %v4124_v16, %v5347_v58  ;;  %v1568_v19 = vmul.f32 %v4124_v16, %v3452_v40 }
 0x410   : > { %1506 = vst.msk [vmem:[#allocation2 + $0x30] sm:$0xff] %vm1499_vm0, %v1460_v60 }
 0x411   : > { %v1466_v22 = vpop.permute.xlu0 %1465 }
 0x412   : > { %1511 = vst.msk [vmem:[#allocation2 + $0x58] sm:$0xff] %vm296_vm14, %v1466_v22  ;;  %2088 = vrot.lane.b32.xlu1 %v4122_v10, %s3104_s29 }
 0x413   : > { %2092 = vrot.lane.b32.xlu0 %v4124_v16, %s3104_s29  ;;  %v1462_v49 = vpop.permute.xlu1 %1461  ;;  %v4193_v23 = vld [vmem:[#allocation2 + $0x18] sm:$0xff] }
 0x414   : > { %v4137_v17 = vsel %vm296_vm14, %v1460_v60, %v1462_v49  ;;  %1508 = vst.msk [vmem:[#allocation2 + $0x40] sm:$0xff] %vm296_vm14, %v1462_v49  ;;  %5350 = vst [vmem:[#allocation22_spill] sm:$0xff] %v4193_v23  ;;  %v4203_v25 = vld [vmem:[#allocation2 + $0x28] sm:$0xff]  ;;  %v1551_v42 = vmul.f32 %v4193_v23, %v5343_v11  ;;  %v1587_v20 = vmul.f32 %v4193_v23, %v5344_v18 }
 0x415   : > { %v1553_v41 = vmul.f32 %v4203_v25, %v5342_v4  ;;  %v1589_v34 = vmul.f32 %v4203_v25, %v5345_v30  ;;  %v1607_v55 = vmul.f32 %v4203_v25, %v5347_v58  ;;  %v1605_v56 = vmul.f32 %v4193_v23, %v5349_v37 }
 0x416   : > { %1876 = vrot.lane.b32.xlu1 %v4124_v16, %s3108_s12  ;;  %v1569_v2 = vmul.f32 %v4193_v23, %v3450_v39  ;;  %v1571_v62 = vmul.f32 %v4203_v25, %v3452_v40 }
 0x417   : > { %1872 = vrot.lane.b32.xlu0 %v4122_v10, %s3108_s12  ;;  %v1464_v32 = vpop.permute.xlu1 %1463  ;;  %v4248_v61 = vld [vmem:[#allocation2 + $0x30] sm:$0xff] }
 0x418   : > { %v4145_v12 = vsel %vm296_vm14, %v1464_v32, %v1466_v22  ;;  %1509 = vst.msk [vmem:[#allocation2 + $0x48] sm:$0xff] %vm1499_vm0, %v1464_v32  ;;  %v1554_v43 = vmul.f32 %v4248_v61, %v5343_v11  ;;  %v1608_v28 = vmul.f32 %v4248_v61, %v5349_v37  ;;  %v1572_v60 = vmul.f32 %v4248_v61, %v3450_v39 }
 0x419   : > { %v1468_v54 = vpop.permute.xlu0 %1467  ;;  %v1590_v49 = vmul.f32 %v4248_v61, %v5344_v18  ;;  %v1609_v32 = vmul.f32 %v4137_v17, %v5348_v7 }
 0x41a   : > { %1512 = vst.msk [vmem:[#allocation2 + $0x60] sm:$0xff] %vm1499_vm0, %v1468_v54  ;;  %1658 = vrot.lane.b32.xlu1 %v4113_v0, %s3103_s28 }
 0x41b   : > { %1874 = vrot.lane.b32.xlu0 %v4113_v0, %s3108_s12  ;;  %v1470_v5 = vpop.permute.xlu1 %1469  ;;  %v1544_v27 = vld [vmem:[#allocation2 + $0x40] sm:$0xff] }
 0x41c   : > { %v4154_v59 = vsel %vm296_vm14, %v1468_v54, %v1470_v5  ;;  %1514 = vst.msk [vmem:[#allocation2 + $0x70] sm:$0xff] %vm296_vm14, %v1470_v5  ;;  %v1610_v46 = vmul.f32 %v1544_v27, %v5347_v58  ;;  %v1556_v31 = vmul.f32 %v1544_v27, %v5342_v4  ;;  %v1592_v22 = vmul.f32 %v1544_v27, %v5345_v30 }
 0x41d   : > { %v1472_v63 = vpop.permute.xlu0 %1471 }
 0x41e   : > { %1515 = vst.msk [vmem:[#allocation2 + $0x78] sm:$0xff] %vm1499_vm0, %v1472_v63  ;;  %2090 = vrot.lane.b32.xlu1 %v4113_v0, %s3104_s29 }
 0x41f   : > { %1738 = vrot.lane.b32.xlu0 %v1550_v13, %s3105_s5  ;;  %v1474_v1 = vpop.permute.xlu1 %1473  ;;  %v1574_v13 = vmul.f32 %v1544_v27, %v3452_v40 }
 0x420   : > { %v4164_v21 = vsel %vm296_vm14, %v1472_v63, %v1474_v1  ;;  %1517 = vst.msk [vmem:[#allocation2 + $0x88] sm:$0xff] %vm296_vm14, %v1474_v1  ;;  %v1591_v63 = vmul.f32 %v4137_v17, %v5346_v6 }
 0x422   : > { %1734 = vrot.lane.b32.xlu1 %v1548_v14, %s3105_s5  ;;  %v1628_v14 = vmul.f32 %v1544_v27, %v3464_v45 }
 0x423   : > { %1950 = vrot.lane.b32.xlu0 %v1584_v47, %s3106_s8 }
 0x426   : > { %1954 = vrot.lane.b32.xlu1 %v1586_v52, %s3106_s8  ;;  %v1573_v52 = vmul.f32 %v4137_v17, %v3661_v33 }
 0x427   : > { %1952 = vrot.lane.b32.xlu0 %v1585_v50, %s3106_s8 }
 0x42a   : > { %2032 = vrot.lane.b32.xlu1 %v1604_v3, %s3107_s10 }
 0x42b   : > { %2030 = vrot.lane.b32.xlu0 %v1603_v26, %s3107_s10  ;;  %v1627_v26 = vmul.f32 %v4137_v17, %v3724_v35 }
 0x42e   : > { %2028 = vrot.lane.b32.xlu1 %v1602_v15, %s3107_s10  ;;  %v1555_v15 = vmul.f32 %v4137_v17, %v5341_v29 }
 0x42f   : > { %1814 = vrot.lane.b32.xlu0 %v1567_v53, %s3109_s23 }
 0x432   : > { %1816 = vrot.lane.b32.xlu1 %v1568_v19, %s3109_s23 }
 0x433   : > { %1662 = vrot.lane.b32.xlu0 %v4193_v23, %s3103_s28 }
 0x436   : > { %1736 = vrot.lane.b32.xlu1 %v1549_v24, %s3105_s5  ;;  %v1545_v24 = vld [vmem:[#allocation2 + $0x58] sm:$0xff] }
 0x437   : > { %2094 = vrot.lane.b32.xlu0 %v4193_v23, %s3104_s29 }
 0x43a   : > { %1666 = vrot.lane.b32.xlu1 %v4203_v25, %s3103_s28 }
 0x43b   : > { %1878 = vrot.lane.b32.xlu0 %v4193_v23, %s3108_s12 }
 0x43e   : > { %2098 = vrot.lane.b32.xlu1 %v4203_v25, %s3104_s29 }
 0x43f   : > { %1664 = vrot.lane.b32.xlu0 %v4119_v51, %s3103_s28 }
 0x442   : > { %1882 = vrot.lane.b32.xlu1 %v4203_v25, %s3108_s12 }
 0x443   : > { %2096 = vrot.lane.b32.xlu0 %v4119_v51, %s3104_s29 }
 0x446   : > { %1744 = vrot.lane.b32.xlu1 %v1553_v41, %s3105_s5  ;;  %v4325_v41 = vld [vmem:[#allocation2 + $0x48] sm:$0xff] }
 0x447   : > { %1880 = vrot.lane.b32.xlu0 %v4119_v51, %s3108_s12 }
 0x44a   : > { %1960 = vrot.lane.b32.xlu1 %v1589_v34, %s3106_s8 }
 0x44b   : > { %1740 = vrot.lane.b32.xlu0 %v1551_v42, %s3105_s5 }
 0x44e   : > { %2038 = vrot.lane.b32.xlu1 %v1607_v55, %s3107_s10 }
 0x44f   : > { %1956 = vrot.lane.b32.xlu0 %v1587_v20, %s3106_s8 }
 0x452   : > { %2034 = vrot.lane.b32.xlu1 %v1605_v56, %s3107_s10 }
 0x453   : > { %1818 = vrot.lane.b32.xlu0 %v1569_v2, %s3109_s23 }
 0x456   : > { %1822 = vrot.lane.b32.xlu1 %v1571_v62, %s3109_s23  ;;  %v1559_v62 = vmul.f32 %v1545_v24, %v5342_v4 }
 0x457   : > { %1742 = vrot.lane.b32.xlu0 %v1552_v36, %s3105_s5 }
 0x45a   : > { %1668 = vrot.lane.b32.xlu1 %v4248_v61, %s3103_s28 }
 0x45b   : > { %1958 = vrot.lane.b32.xlu0 %v1588_v57, %s3106_s8 }
 0x45e   : > { %2100 = vrot.lane.b32.xlu1 %v4248_v61, %s3104_s29 }
 0x45f   : > { %2036 = vrot.lane.b32.xlu0 %v1606_v38, %s3107_s10  ;;  %v1613_v38 = vmul.f32 %v1545_v24, %v5347_v58 }
 0x462   : > { %1888 = vrot.lane.b32.xlu1 %v1544_v27, %s3108_s12 }
 0x463   : > { %1820 = vrot.lane.b32.xlu0 %v1570_v48, %s3109_s23 }
 0x466   : > { %1670 = vrot.lane.b32.xlu1 %v4137_v17, %s3103_s28 }
 0x467   : > { %1672 = vrot.lane.b32.xlu0 %v1544_v27, %s3103_s28 }
 0x46a   : > { %2102 = vrot.lane.b32.xlu1 %v4137_v17, %s3104_s29 }
 0x46b   : > { %2104 = vrot.lane.b32.xlu0 %v1544_v27, %s3104_s29 }
 0x46e   : > { %1746 = vrot.lane.b32.xlu1 %v1554_v43, %s3105_s5  ;;  %v1611_v43 = vmul.f32 %v4325_v41, %v5349_v37 }
 0x46f   : > { %1884 = vrot.lane.b32.xlu0 %v4248_v61, %s3108_s12 }
 0x472   : > { %2044 = vrot.lane.b32.xlu1 %v1610_v46, %s3107_s10 }
 0x473   : > { %1886 = vrot.lane.b32.xlu0 %v4137_v17, %s3108_s12 }
 0x476   : > { %2040 = vrot.lane.b32.xlu1 %v1608_v28, %s3107_s10  ;;  %v1595_v28 = vmul.f32 %v1545_v24, %v5345_v30 }
 0x477   : > { %1750 = vrot.lane.b32.xlu0 %v1556_v31, %s3105_s5 }
 0x47a   : > { %1966 = vrot.lane.b32.xlu1 %v1592_v22, %s3106_s8 }
 0x47b   : > { %1824 = vrot.lane.b32.xlu0 %v1572_v60, %s3109_s23  ;;  %v1557_v60 = vmul.f32 %v4325_v41, %v5343_v11 }
 0x47e   : > { %1962 = vrot.lane.b32.xlu1 %v1590_v49, %s3106_s8 }
 0x47f   : > { %2042 = vrot.lane.b32.xlu0 %v1609_v32, %s3107_s10  ;;  %v1593_v32 = vmul.f32 %v4325_v41, %v5344_v18 }
 0x480   : > { %v4295_v5 = vpop.permute.xlu1 %1656 }
 0x481   : > { %v4293_v54 = vpop.permute.xlu0 %1660 }
 0x482   : > { %1828 = vrot.lane.b32.xlu1 %v1574_v13, %s3109_s23  ;;  %v1575_v13 = vmul.f32 %v4325_v41, %v3450_v39 }
 0x483   : > { %1964 = vrot.lane.b32.xlu0 %v1591_v63, %s3106_s8 }
 0x484   : > { %v4304_v47 = vpop.permute.xlu1 %2088 }
 0x485   : > { %v4302_v1 = vpop.permute.xlu0 %2092  ;;  %5352 = vst [vmem:[#allocation19_spill] sm:$0xff] %v4304_v47  ;;  %v1626_v47 = vmul.f32 %v4248_v61, %v3462_v44 }
 0x486   : > { %5351 = vst [vmem:[#allocation23_spill] sm:$0xff] %v4302_v1  ;;  %2182 = vrot.lane.b32.xlu1 %v1628_v14, %s3110_s27 }
 0x487   : > { %1826 = vrot.lane.b32.xlu0 %v1573_v52, %s3109_s23  ;;  %v1577_v52 = vmul.f32 %v1545_v24, %v3452_v40 }
 0x488   : > { %v4313_v3 = vpop.permute.xlu1 %1876 }
 0x489   : > { %v4311_v50 = vpop.permute.xlu0 %1872  ;;  %5354 = vst [vmem:[#allocation13_spill] sm:$0xff] %v4313_v3 }
 0x48a   : > { %5353 = vst [vmem:[#allocation15_spill] sm:$0xff] %v4311_v50  ;;  %1748 = vrot.lane.b32.xlu1 %v1555_v15, %s3105_s5  ;;  %v4440_v50 = vld [vmem:[#allocation2 + $0x70] sm:$0xff] }
 0x48b   : > { %2180 = vrot.lane.b32.xlu0 %v1627_v26, %s3110_s27  ;;  %v1558_v26 = vmul.f32 %v4145_v12, %v5341_v29 }
 0x48c   : > { %v4323_v19 = vpop.permute.xlu1 %1658 }
 0x48d   : > { %v4321_v53 = vpop.permute.xlu0 %1874 }
 0x48e   : > { %5355 = vst [vmem:[#allocation14_spill] sm:$0xff] %v4321_v53  ;;  %1678 = vrot.lane.b32.xlu1 %v1545_v24, %s3103_s28 }
 0x48f   : > { %1674 = vrot.lane.b32.xlu0 %v4325_v41, %s3103_s28 }
 0x490   : > { %v4332_v42 = vpop.permute.xlu1 %2090 }
 0x491   : > { %v4330_v34 = vpop.permute.xlu0 %1738  ;;  %5356 = vst [vmem:[#allocation16_spill] sm:$0xff] %v4332_v42  ;;  %v1624_v42 = vmul.f32 %v4119_v51, %v3724_v35 }
 0x492   : > { %2110 = vrot.lane.b32.xlu1 %v1545_v24, %s3104_s29 }
 0x493   : > { %2106 = vrot.lane.b32.xlu0 %v4325_v41, %s3104_s29 }
 0x494   : > { %v4339_v20 = vpop.permute.xlu1 %1734 }
 0x495   : > { %v4337_v55 = vpop.permute.xlu0 %1950 }
 0x496   : > { %5357 = vst [vmem:[#allocation20_spill] sm:$0xff] %v4337_v55  ;;  %1894 = vrot.lane.b32.xlu1 %v1545_v24, %s3108_s12 }
 0x497   : > { %1890 = vrot.lane.b32.xlu0 %v4325_v41, %s3108_s12 }
 0x498   : > { %v4346_v2 = vpop.permute.xlu1 %1954 }
 0x499   : > { %v4344_v56 = vpop.permute.xlu0 %1952  ;;  %5359 = vst [vmem:[#allocation21_spill] sm:$0xff] %v4346_v2 }
 0x49a   : > { %5358 = vst [vmem:[#allocation17_spill] sm:$0xff] %v4344_v56  ;;  %1756 = vrot.lane.b32.xlu1 %v1559_v62, %s3105_s5 }
 0x49b   : > { %1676 = vrot.lane.b32.xlu0 %v4145_v12, %s3103_s28 }
 0x49c   : > { %v4354_v57 = vpop.permute.xlu1 %2032 }
 0x49d   : > { %v4352_v36 = vpop.permute.xlu0 %2030  ;;  %5361 = vst [vmem:[#allocation24_spill] sm:$0xff] %v4354_v57 }
 0x49e   : > { %5360 = vst [vmem:[#allocation18_spill] sm:$0xff] %v4352_v36  ;;  %2050 = vrot.lane.b32.xlu1 %v1613_v38, %s3107_s10  ;;  %v1631_v38 = vmul.f32 %v1545_v24, %v3464_v45 }
 0x49f   : > { %2108 = vrot.lane.b32.xlu0 %v4145_v12, %s3104_s29 }
 0x4a0   : > { %v4362_v27 = vpop.permute.xlu1 %2028 }
 0x4a1   : > { %v4360_v48 = vpop.permute.xlu0 %1814  ;;  %5363 = vst [vmem:[#allocation26_spill] sm:$0xff] %v4362_v27 }
 0x4a2   : > { %5362 = vst [vmem:[#allocation25_spill] sm:$0xff] %v4360_v48  ;;  %2046 = vrot.lane.b32.xlu1 %v1611_v43, %s3107_s10  ;;  %v1612_v43 = vmul.f32 %v4145_v12, %v5348_v7 }
 0x4a3   : > { %1892 = vrot.lane.b32.xlu0 %v4145_v12, %s3108_s12 }
 0x4a4   : > { %v4371_v31 = vpop.permute.xlu1 %1816 }
 0x4a5   : > { %v4369_v46 = vpop.permute.xlu0 %1662  ;;  %5364 = vst [vmem:[#allocation27_spill] sm:$0xff] %v4371_v31 }
 0x4a6   : > { %1972 = vrot.lane.b32.xlu1 %v1595_v28, %s3106_s8 }
 0x4a7   : > { %1752 = vrot.lane.b32.xlu0 %v1557_v60, %s3105_s5 }
 0x4a8   : > { %v4380_v49 = vpop.permute.xlu1 %1736 }
 0x4a9   : > { %v4378_v22 = vpop.permute.xlu0 %2094 }
 0x4aa   : > { %5365 = vst [vmem:[#allocation28_spill] sm:$0xff] %v4378_v22  ;;  %1968 = vrot.lane.b32.xlu1 %v1593_v32, %s3106_s8  ;;  %v1629_v32 = vmul.f32 %v4325_v41, %v3462_v44 }
 0x4ab   : > { %1830 = vrot.lane.b32.xlu0 %v1575_v13, %s3109_s23  ;;  %v1594_v13 = vmul.f32 %v4145_v12, %v5346_v6 }
 0x4ac   : > { %v4390_v14 = vpop.permute.xlu1 %1666 }
 0x4ad   : > { %v4388_v63 = vpop.permute.xlu0 %1878 }
 0x4ae   : > { %5366 = vst [vmem:[#allocation29_spill] sm:$0xff] %v4388_v63  ;;  %1834 = vrot.lane.b32.xlu1 %v1577_v52, %s3109_s23 }
 0x4af   : > { %1754 = vrot.lane.b32.xlu0 %v1558_v26, %s3105_s5  ;;  %v1576_v26 = vmul.f32 %v4145_v12, %v3661_v33 }
 0x4b0   : > { %v4399_v62 = vpop.permute.xlu1 %2098 }
 0x4b1   : > { %v4397_v15 = vpop.permute.xlu0 %1664 }
 0x4b2   : > { %2188 = vrot.lane.b32.xlu1 %v1631_v38, %s3110_s27  ;;  %v4422_v38 = vld [vmem:[#allocation2 + $0x60] sm:$0xff] }
 0x4b3   : > { %2048 = vrot.lane.b32.xlu0 %v1612_v43, %s3107_s10  ;;  %v1578_v27 = vmul.f32 %v4422_v38, %v3450_v39  ;;  %v1614_v36 = vmul.f32 %v4422_v38, %v5349_v37 }
 0x4b4   : > { %v4408_v60 = vpop.permute.xlu1 %1882 }
 0x4b5   : > { %v4406_v28 = vpop.permute.xlu0 %2096  ;;  %5368 = vst [vmem:[#allocation31_spill] sm:$0xff] %v4408_v60 }
 0x4b6   : > { %5367 = vst [vmem:[#allocation30_spill] sm:$0xff] %v4406_v28  ;;  %2184 = vrot.lane.b32.xlu1 %v1629_v32, %s3110_s27  ;;  %v1630_v32 = vmul.f32 %v4145_v12, %v3724_v35 }
 0x4b7   : > { %1970 = vrot.lane.b32.xlu0 %v1594_v13, %s3106_s8 }
 0x4b8   : > { %v4418_v52 = vpop.permute.xlu1 %1744 }
 0x4b9   : > { %v4416_v24 = vpop.permute.xlu0 %1880 }
 0x4ba   : > { %5369 = vst [vmem:[#allocation32_spill] sm:$0xff] %v4416_v24  ;;  %1680 = vrot.lane.b32.xlu1 %v4422_v38, %s3103_s28  ;;  %v1616_v24 = vmul.f32 %v4440_v50, %v5347_v58 }
 0x4bb   : > { %1832 = vrot.lane.b32.xlu0 %v1576_v26, %s3109_s23 }
 0x4bc   : > { %v4429_v48 = vpop.permute.xlu1 %1960 }
 0x4bd   : > { %v4427_v43 = vpop.permute.xlu0 %1740  ;;  %5370 = vst [vmem:[#allocation33_spill] sm:$0xff] %v4429_v48 }
 0x4be   : > { %2112 = vrot.lane.b32.xlu1 %v4422_v38, %s3104_s29 }
 0x4bf   : > { %2186 = vrot.lane.b32.xlu0 %v1630_v32, %s3110_s27 }
 0x4c0   : > { %v4438_v31 = vpop.permute.xlu1 %2038 }
 0x4c1   : > { %v4436_v13 = vpop.permute.xlu0 %1956  ;;  %5372 = vst [vmem:[#allocation35_spill] sm:$0xff] %v4438_v31 }
 0x4c2   : > { %5371 = vst [vmem:[#allocation34_spill] sm:$0xff] %v4436_v13  ;;  %1900 = vrot.lane.b32.xlu1 %v4440_v50, %s3108_s12 }
 0x4c3   : > { %1684 = vrot.lane.b32.xlu0 %v4440_v50, %s3103_s28 }
 0x4c4   : > { %v4448_v53 = vpop.permute.xlu1 %2034 }
 0x4c5   : > { %v4446_v26 = vpop.permute.xlu0 %1818  ;;  %5374 = vst [vmem:[#allocation37_spill] sm:$0xff] %v4448_v53 }
 0x4c6   : > { %5373 = vst [vmem:[#allocation36_spill] sm:$0xff] %v4446_v26  ;;  %1682 = vrot.lane.b32.xlu1 %v4154_v59, %s3103_s28 }
 0x4c7   : > { %2116 = vrot.lane.b32.xlu0 %v4440_v50, %s3104_s29 }
 0x4c8   : > { %v4456_v3 = vpop.permute.xlu1 %1822 }
 0x4c9   : > { %v4454_v32 = vpop.permute.xlu0 %1742  ;;  %5375 = vst [vmem:[#allocation38_spill] sm:$0xff] %v4456_v3 }
 0x4ca   : > { %2114 = vrot.lane.b32.xlu1 %v4154_v59, %s3104_s29 }
 0x4cb   : > { %1896 = vrot.lane.b32.xlu0 %v4422_v38, %s3108_s12 }
 0x4cc   : > { %v4464_v26 = vpop.permute.xlu1 %1668 }
 0x4cd   : > { %v4462_v63 = vpop.permute.xlu0 %1958 }
 0x4ce   : > { %5376 = vst [vmem:[#allocation39_spill] sm:$0xff] %v4462_v63  ;;  %2056 = vrot.lane.b32.xlu1 %v1616_v24, %s3107_s10  ;;  %v1615_v24 = vmul.f32 %v4154_v59, %v5348_v7 }
 0x4cf   : > { %1898 = vrot.lane.b32.xlu0 %v4154_v59, %s3108_s12 }
 0x4d0   : > { %v4473_v3 = vpop.permute.xlu1 %2100 }
 0x4d1   : > { %v4471_v60 = vpop.permute.xlu0 %2036 }
 0x4d2   : > { %5377 = vst [vmem:[#allocation40_spill] sm:$0xff] %v4471_v60  ;;  %2052 = vrot.lane.b32.xlu1 %v1614_v36, %s3107_s10  ;;  %v1598_v60 = vmul.f32 %v4440_v50, %v5345_v30  ;;  %v1597_v36 = vmul.f32 %v4154_v59, %v5346_v6 }
 0x4d3   : > { %1836 = vrot.lane.b32.xlu0 %v1578_v27, %s3109_s23  ;;  %v1596_v27 = vmul.f32 %v4422_v38, %v5344_v18 }
 0x4d4   : > { %v4483_v53 = vpop.permute.xlu1 %1888 }
 0x4d5   : > { %v4481_v57 = vpop.permute.xlu0 %1820  ;;  %5379 = vst [vmem:[#allocation42_spill] sm:$0xff] %v4483_v53 }
 0x4d6   : > { %5378 = vst [vmem:[#allocation41_spill] sm:$0xff] %v4481_v57  ;;  %1978 = vrot.lane.b32.xlu1 %v1598_v60, %s3106_s8  ;;  %v1579_v60 = vmul.f32 %v4154_v59, %v3661_v33 }
 0x4d7   : > { %2054 = vrot.lane.b32.xlu0 %v1615_v24, %s3107_s10  ;;  %v1580_v24 = vmul.f32 %v4440_v50, %v3452_v40 }
 0x4d8   : > { %v4493_v55 = vpop.permute.xlu1 %1670 }
 0x4d9   : > { %v4491_v31 = vpop.permute.xlu0 %1672 }
 0x4da   : > { %1974 = vrot.lane.b32.xlu1 %v1596_v27, %s3106_s8  ;;  %v1634_v27 = vmul.f32 %v4440_v50, %v3464_v45 }
 0x4db   : > { %1976 = vrot.lane.b32.xlu0 %v1597_v36, %s3106_s8  ;;  %v1633_v36 = vmul.f32 %v4154_v59, %v3724_v35 }
 0x4dc   : > { %v4503_v53 = vpop.permute.xlu1 %2102 }
 0x4dd   : > { %v4501_v57 = vpop.permute.xlu0 %2104 }
 0x4de   : > { %1840 = vrot.lane.b32.xlu1 %v1580_v24, %s3109_s23  ;;  %v4527_v24 = vld [vmem:[#allocation2 + $0x78] sm:$0xff] }
 0x4df   : > { %1838 = vrot.lane.b32.xlu0 %v1579_v60, %s3109_s23  ;;  %v1632_v60 = vmul.f32 %v4422_v38, %v3462_v44 }
 0x4e0   : > { %v4513_v2 = vpop.permute.xlu1 %1746 }
 0x4e1   : > { %v4511_v56 = vpop.permute.xlu0 %1884 }
 0x4e2   : > { %5380 = vst [vmem:[#allocation43_spill] sm:$0xff] %v4511_v56  ;;  %2194 = vrot.lane.b32.xlu1 %v1634_v27, %s3110_s27 }
 0x4e3   : > { %2192 = vrot.lane.b32.xlu0 %v1633_v36, %s3110_s27  ;;  %v4536_v36 = vld [vmem:[#allocation2 + $0x88] sm:$0xff] }
 0x4e4   : > { %v4523_v63 = vpop.permute.xlu1 %2044 }
 0x4e5   : > { %v4521_v13 = vpop.permute.xlu0 %1886  ;;  %5382 = vst [vmem:[#allocation45_spill] sm:$0xff] %v4523_v63 }
 0x4e6   : > { %5381 = vst [vmem:[#allocation44_spill] sm:$0xff] %v4521_v13  ;;  %2190 = vrot.lane.b32.xlu1 %v1632_v60, %s3110_s27 }
 0x4e7   : > { %1686 = vrot.lane.b32.xlu0 %v4527_v24, %s3103_s28 }
 0x4e8   : > { %v4534_v48 = vpop.permute.xlu1 %2040 }
 0x4e9   : > { %v4532_v56 = vpop.permute.xlu0 %1750  ;;  %5383 = vst [vmem:[#allocation46_spill] sm:$0xff] %v4534_v48 }
 0x4ea   : > { %1690 = vrot.lane.b32.xlu1 %v4536_v36, %s3103_s28 }
 0x4eb   : > { %2118 = vrot.lane.b32.xlu0 %v4527_v24, %s3104_s29 }
 0x4ec   : > { %v4544_v13 = vpop.permute.xlu1 %1966 }
 0x4ed   : > { %v4542_v27 = vpop.permute.xlu0 %1824  ;;  %5385 = vst [vmem:[#allocation48_spill] sm:$0xff] %v4544_v13  ;;  %v1566_v13 = vmul.f32 %v4122_v10, %v3450_v39 }
 0x4ee   : > { %5384 = vst [vmem:[#allocation47_spill] sm:$0xff] %v4542_v27  ;;  %2122 = vrot.lane.b32.xlu1 %v4536_v36, %s3104_s29 }
 0x4ef   : > { %1902 = vrot.lane.b32.xlu0 %v4527_v24, %s3108_s12 }
 0x4f0   : > { %v4552_v48 = vpop.permute.xlu1 %1962 }
 0x4f1   : > { %v4550_v60 = vpop.permute.xlu0 %2042  ;;  %5387 = vst [vmem:[#allocation50_spill] sm:$0xff] %v4552_v48 }
 0x4f2   : > { %5386 = vst [vmem:[#allocation49_spill] sm:$0xff] %v4550_v60  ;;  %1906 = vrot.lane.b32.xlu1 %v4536_v36, %s3108_s12 }
 0x4f3   : > { %1688 = vrot.lane.b32.xlu0 %v4164_v21, %s3103_s28  ;;  %s5224_s28 = scalar_lea.hbm %s5276_s4, %s2827_s6 }
 0x4f4   : > { %v4560_v27 = vpop.permute.xlu1 %1828 }
 0x4f5   : > { %v4558_v63 = vpop.permute.xlu0 %1964  ;;  %5389 = vst [vmem:[#allocation52_spill] sm:$0xff] %v4560_v27  ;;  %v1625_v27 = vmul.f32 %v4203_v25, %v3464_v45  ;;  %v1617_v25 = vmul.f32 %v4527_v24, %v5349_v37 }
 0x4f6   : > { %5388 = vst [vmem:[#allocation51_spill] sm:$0xff] %v4558_v63  ;;  %2178 = vrot.lane.b32.xlu1 %v1626_v47, %s3110_s27  ;;  %v1619_v47 = vmul.f32 %v4536_v36, %v5347_v58 }
 0x4f7   : > { %1812 = vrot.lane.b32.xlu0 %v1566_v13, %s3109_s23 }
 0x4f8   : > { %v4570_v60 = vpop.permute.xlu1 %2182 }
 0x4f9   : > { %v4568_v48 = vpop.permute.xlu0 %1826  ;;  %5391 = vst [vmem:[#allocation54_spill] sm:$0xff] %v4570_v60 }
 0x4fa   : > { %5390 = vst [vmem:[#allocation53_spill] sm:$0xff] %v4568_v48  ;;  %2176 = vrot.lane.b32.xlu1 %v1625_v27, %s3110_s27  ;;  %v1581_v27 = vmul.f32 %v4527_v24, %v3450_v39  ;;  %v1599_v48 = vmul.f32 %v4527_v24, %v5344_v18 }
 0x4fb   : > { %2174 = vrot.lane.b32.xlu0 %v1624_v42, %s3110_s27 }
 0x4fc   : > { %v4580_v1 = vpop.permute.xlu1 %1748 }
 0x4fd   : > { %v4578_v63 = vpop.permute.xlu0 %2180 }
 0x4fe   : > { %5392 = vst [vmem:[#allocation55_spill] sm:$0xff] %v4578_v63  ;;  %2062 = vrot.lane.b32.xlu1 %v1619_v47, %s3107_s10  ;;  %v1601_v47 = vmul.f32 %v4536_v36, %v5345_v30 }
 0x4ff   : > { %2120 = vrot.lane.b32.xlu0 %v4164_v21, %s3104_s29 }
 0x500   : > { %v4589_v60 = vpop.permute.xlu1 %1678 }
 0x501   : > { %v4587_v13 = vpop.permute.xlu0 %1674 }
 0x502   : > { %2058 = vrot.lane.b32.xlu1 %v1617_v25, %s3107_s10  ;;  %v1618_v25 = vmul.f32 %v4164_v21, %v5348_v7 }
 0x503   : > { %1904 = vrot.lane.b32.xlu0 %v4164_v21, %s3108_s12 }
 0x504   : > { %v4598_v58 = vpop.permute.xlu1 %2110 }
 0x505   : > { %v4596_v42 = vpop.permute.xlu0 %2106 }
 0x506   : > { %1984 = vrot.lane.b32.xlu1 %v1601_v47, %s3106_s8  ;;  %v1583_v47 = vmul.f32 %v4536_v36, %v3452_v40 }
 0x507   : > { %1842 = vrot.lane.b32.xlu0 %v1581_v27, %s3109_s23  ;;  %v1563_v27 = vmul.f32 %v4527_v24, %v5343_v11 }
 0x508   : > { %v4608_v63 = vpop.permute.xlu1 %1894 }
 0x509   : > { %v4606_v37 = vpop.permute.xlu0 %1890  ;;  %5394 = vst [vmem:[#allocation57_spill] sm:$0xff] %v4608_v63 }
 0x50a   : > { %5393 = vst [vmem:[#allocation56_spill] sm:$0xff] %v4606_v37  ;;  %1980 = vrot.lane.b32.xlu1 %v1599_v48, %s3106_s8  ;;  %v1561_v48 = vmul.f32 %v4154_v59, %v5341_v29 }
 0x50b   : > { %2060 = vrot.lane.b32.xlu0 %v1618_v25, %s3107_s10  ;;  %v1637_v25 = vmul.f32 %v4536_v36, %v3464_v45 }
 0x50c   : > { %v1757_v30 = vpop.permute.xlu1 %1756 }
 0x50d   : > { %v4616_v39 = vpop.permute.xlu0 %1676 }
 0x50e   : > { %1846 = vrot.lane.b32.xlu1 %v1583_v47, %s3109_s23  ;;  %v1635_v47 = vmul.f32 %v4527_v24, %v3462_v44 }
 0x50f   : > { %1764 = vrot.lane.b32.xlu0 %v1563_v27, %s3105_s5  ;;  %v1600_v27 = vmul.f32 %v4164_v21, %v5346_v6 }
 0x510   : > { %v4626_v18 = vpop.permute.xlu1 %2050 }
 0x511   : > { %v4624_v7 = vpop.permute.xlu0 %2108  ;;  %5395 = vst [vmem:[#allocation58_spill] sm:$0xff] %v4626_v18 }
 0x512   : > { %2200 = vrot.lane.b32.xlu1 %v1637_v25, %s3110_s27  ;;  %v1565_v25 = vmul.f32 %v4536_v36, %v5342_v4 }
 0x513   : > { %1760 = vrot.lane.b32.xlu0 %v1561_v48, %s3105_s5  ;;  %v1582_v48 = vmul.f32 %v4164_v21, %v3661_v33  ;;  %v270_v33 = vld [vmem:[#allocation8 + $0x8] sm:$0xff] }
 0x514   : > { %v4636_v40 = vpop.permute.xlu1 %2046  ;;  %2308 = vmatprep.mubr.f32.mxu1 %v270_v33  ;;  %v2564_v33 = vld [vmem:[%s3271_s13 + $0x20] sm:$0xff] }
 0x515   : > { %v4634_v37 = vpop.permute.xlu0 %1892  ;;  %5397 = vst [vmem:[#allocation60_spill] sm:$0xff] %v4636_v40  ;;  %v1636_v40 = vmul.f32 %v4164_v21, %v3724_v35 }
 0x516   : > { %5396 = vst [vmem:[#allocation59_spill] sm:$0xff] %v4634_v37  ;;  %2196 = vrot.lane.b32.xlu1 %v1635_v47, %s3110_s27  ;;  %v272_v47 = vld [vmem:[#allocation8 + $0x18] sm:$0xff] }
 0x517   : > { %1982 = vrot.lane.b32.xlu0 %v1600_v27, %s3106_s8  ;;  %v1623_v27 = vmul.f32 %v4193_v23, %v3462_v44  ;;  %2814 = vmatprep.mubr.msk.f32.mxu0 %vm1091_vm11, %v272_v47 }
 0x518   : > { %v1973_v18 = vpop.permute.xlu1 %1972 }
 0x519   : > { %v1753_v63 = vpop.permute.xlu0 %1752 }
 0x51a   : > { %1768 = vrot.lane.b32.xlu1 %v1565_v25, %s3105_s5  ;;  %v1562_v25 = vmul.f32 %v4440_v50, %v5342_v4  ;;  %v1564_v4 = vmul.f32 %v4164_v21, %v5341_v29  ;;  %v1774_v50 = vsel %vm628_vm5, %v4513_v2, %v4580_v1  ;;  %v1772_v29 = vsel %vm628_vm5, %v4427_v43, %v4454_v32 }
 0x51b   : > { %1844 = vrot.lane.b32.xlu0 %v1582_v48, %s3109_s23  ;;  %v1621_v48 = vmul.f32 %v4113_v0, %v3724_v35  ;;  %v1775_v35 = vsel %vm628_vm5, %v4580_v1, %v4532_v56  ;;  %v1560_v1 = vmul.f32 %v4422_v38, %v5343_v11 }
 0x51c   : > { %v1969_v37 = vpop.permute.xlu1 %1968 }
 0x51d   : > { %v1831_v6 = vpop.permute.xlu0 %1830 }
 0x51e   : > { %2172 = vrot.lane.b32.xlu1 %v1623_v27, %s3110_s27  ;;  %v2560_v27 = vld [vmem:[%s3271_s13] sm:$0xff] }
 0x51f   : > { %2198 = vrot.lane.b32.xlu0 %v1636_v40, %s3110_s27 }
 0x520   : > { %v1835_v22 = vpop.permute.xlu1 %1834 }
 0x521   : > { %v1755_v36 = vpop.permute.xlu0 %1754 }
 0x522   : > { %v1776_v28 = vsel %vm628_vm5, %v1753_v63, %v1755_v36  ;;  %v1777_v23 = vsel %vm628_vm5, %v1755_v36, %v1757_v30  ;;  %1762 = vrot.lane.b32.xlu1 %v1562_v25, %s3105_s5  ;;  %v1622_v63 = vmul.f32 %v4124_v16, %v3464_v45  ;;  %v1771_v45 = vsel %vm628_vm5, %v4380_v49, %v4330_v34  ;;  %v2566_v25 = vld [vmem:[%s3271_s13 + $0x30] sm:$0xff] }
 0x523   : > { %2168 = vrot.lane.b32.xlu0 %v1621_v48, %s3110_s27  ;;  %2244 = vmatprep.subr.mxu1 %v1777_v23  ;;  %v1773_v23 = vsel %vm628_vm5, %v4454_v32, %v4418_v52  ;;  %v1620_v52 = vmul.f32 %v4122_v10, %v3462_v44  ;;  %v2563_v48 = vld [vmem:[%s3271_s13 + $0x18] sm:$0xff] }
 0x524   : > { %2245 = vmatpush1.msra.mxu1 %v1776_v28  ;;  %v2189_v0 = vpop.permute.xlu1 %2188  ;;  %v1770_v28 = vsel %vm628_vm5, %v4339_v20, %v4380_v49 }
 0x525   : > { %v4665_v40 = vpop.permute.xlu0 %2048  ;;  %2246 = vmatprep.subr.mxu1 %v1775_v35 }
 0x526   : > { %2247 = vmatpush1.msra.mxu1 %v1774_v50  ;;  %2170 = vrot.lane.b32.xlu1 %v1622_v63, %s3110_s27  ;;  %v2568_v50 = vld [vmem:[%s3271_s13 + $0x40] sm:$0xff] }
 0x527   : > { %1766 = vrot.lane.b32.xlu0 %v1564_v4, %s3105_s5  ;;  %2248 = vmatprep.subr.mxu1 %v1773_v23  ;;  %v2565_v4 = vld [vmem:[%s3271_s13 + $0x28] sm:$0xff] }
 0x528   : > { %2249 = vmatpush1.msra.mxu1 %v1772_v29  ;;  %v2185_v16 = vpop.permute.xlu1 %2184 }
 0x529   : > { %v1971_v56 = vpop.permute.xlu0 %1970  ;;  %2250 = vmatprep.subr.mxu1 %v1771_v45  ;;  %v2567_v45 = vld [vmem:[%s3271_s13 + $0x38] sm:$0xff] }
 0x52a   : > { %v4691_v2 = vsel %vm847_vm9, %v1969_v37, %v1971_v56  ;;  %v4699_v43 = vsel %vm847_vm9, %v1971_v56, %v1973_v18  ;;  %2251 = vmatpush1.msra.mxu1 %v1770_v28  ;;  %2166 = vrot.lane.b32.xlu1 %v1620_v52, %s3110_s27  ;;  %v2569_v52 = vld [vmem:[%s3271_s13 + $0x48] sm:$0xff] }
 0x52b   : > { %1758 = vrot.lane.b32.xlu0 %v1560_v1, %s3105_s5  ;;  %s3113_s5 = smov [#allocation9]  }
 0x52c   : > { %v4703_v34 = vpop.permute.xlu1 %1680  ;;  %s3025_s8 = sshll.u32 %s3113_s5, 4  ;;  %s3026_s8 = int_to_ptr.vmem [resolvable:$false] %s3025_s8 }
 0x52d   : > { %v1833_v11 = vpop.permute.xlu0 %1832  ;;  %s3027_s10 = scalar_lea.vmem %s3026_s8, 3072 }
 0x52e   : > { %v4706_v20 = vsel %vm707_vm12, %v1831_v6, %v1833_v11  ;;  %v4709_v49 = vsel %vm707_vm12, %v1833_v11, %v1835_v22  ;;  %v2561_v6 = vld [vmem:[%s3271_s13 + $0x8] sm:$0xff]  ;;  %2596 = vrot.lane.b32.xlu1 %v2560_v27, %s3108_s12  ;;  %v2562_v22 = vld [vmem:[%s3271_s13 + $0x10] sm:$0xff]  ;;  %v2572_v11 = vld [vmem:[%s3271_s13 + $0x60] sm:$0xff] }
 0x52f   : > { %5398 = vst [vmem:[#allocation61_spill] sm:$0xff] %v4706_v20  ;;  %5399 = vst [vmem:[#allocation62_spill] sm:$0xff] %v4709_v49  ;;  %2598 = vrot.lane.b32.xlu0 %v2561_v6, %s3108_s12  ;;  %v2571_v27 = vld [vmem:[%s3271_s13 + $0x58] sm:$0xff]  ;;  %v1699_v49 = vsel %vm549_vm8, %v4616_v39, %v4589_v60  ;;  %v1695_v60 = vsel %vm549_vm8, %v4397_v15, %v4390_v14  ;;  %v1541_v14 = vmul.f32 %v4164_v21, %v3289_v9 }
 0x530   : > { %v4711_v10 = vpop.permute.xlu1 %2112  ;;  %v1538_v21 = vmul.f32 %v4422_v38, %v3287_v8  ;;  %v1536_v38 = vmul.f32 %v4325_v41, %v3287_v8 }
 0x531   : > { %v2187_v44 = vpop.permute.xlu0 %2186 }
 0x532   : > { %v4714_v32 = vsel %vm1066_vm13, %v2185_v16, %v2187_v44  ;;  %v4717_v37 = vsel %vm1066_vm13, %v2187_v44, %v2189_v0  ;;  %2600 = vrot.lane.b32.xlu1 %v2562_v22, %s3108_s12  ;;  %v2570_v16 = vld [vmem:[%s3271_s13 + $0x50] sm:$0xff] }
 0x533   : > { %5400 = vst [vmem:[#allocation63_spill] sm:$0xff] %v4714_v32  ;;  %5401 = vst [vmem:[#allocation64_spill] sm:$0xff] %v4717_v37  ;;  %2604 = vrot.lane.b32.xlu0 %v2564_v33, %s3108_s12  ;;  %v2573_v33 = vld [vmem:[%s3271_s13 + $0x68] sm:$0xff] }
 0x534   : > { %v1901_v18 = vpop.permute.xlu1 %1900 }
 0x535   : > { %v1685_v30 = vpop.permute.xlu0 %1684 }
 0x536   : > { %2602 = vrot.lane.b32.xlu1 %v2563_v48, %s3108_s12 }
 0x537   : > { %2608 = vrot.lane.b32.xlu0 %v2566_v25, %s3108_s12 }
 0x538   : > { %v1683_v36 = vpop.permute.xlu1 %1682 }
 0x539   : > { %v4725_v47 = vpop.permute.xlu0 %2116 }
 0x53a   : > { %2606 = vrot.lane.b32.xlu1 %v2565_v4, %s3108_s12 }
 0x53b   : > { %2612 = vrot.lane.b32.xlu0 %v2568_v50, %s3108_s12 }
 0x53c   : > { %v4731_v0 = vpop.permute.xlu1 %2114 }
 0x53d   : > { %v1897_v35 = vpop.permute.xlu0 %1896 }
 0x53e   : > { %2610 = vrot.lane.b32.xlu1 %v2567_v45, %s3108_s12 }
 0x53f   : > { %2616 = vrot.lane.b32.xlu0 %v2570_v16, %s3108_s12 }
 0x540   : > { %v4737_v23 = vpop.permute.xlu1 %2056 }
 0x541   : > { %v1899_v63 = vpop.permute.xlu0 %1898 }
 0x542   : > { %v4740_v29 = vsel %vm768_vm10, %v1897_v35, %v1899_v63  ;;  %v4743_v56 = vsel %vm768_vm10, %v1899_v63, %v1901_v18  ;;  %2614 = vrot.lane.b32.xlu1 %v2569_v52, %s3108_s12 }
 0x543   : > { %2620 = vrot.lane.b32.xlu0 %v2572_v11, %s3108_s12 }
 0x544   : > { %v4751_v28 = vpop.permute.xlu1 %2052 }
 0x545   : > { %v4749_v1 = vpop.permute.xlu0 %1836 }
 0x546   : > { %2618 = vrot.lane.b32.xlu1 %v2571_v27, %s3108_s12 }
 0x548   : > { %v4759_v18 = vpop.permute.xlu1 %1978 }
 0x549   : > { %v4757_v44 = vpop.permute.xlu0 %2054 }
 0x54a   : > { %2622 = vrot.lane.b32.xlu1 %v2573_v33, %s3108_s12  ;;  %v1701_v33 = vsel %vm549_vm8, %v1683_v36, %v1685_v30 }
 0x54c   : > { %v4766_v22 = vpop.permute.xlu1 %1974 }
 0x54d   : > { %v4764_v6 = vpop.permute.xlu0 %1976 }
 0x550   : > { %v4772_v25 = vpop.permute.xlu1 %1840 }
 0x551   : > { %v4770_v48 = vpop.permute.xlu0 %1838 }
 0x554   : > { %v4777_v4 = vpop.permute.xlu1 %2194 }
 0x555   : > { %v4775_v35 = vpop.permute.xlu0 %2192  ;;  %5403 = vst [vmem:[#allocation66_spill] sm:$0xff] %v4777_v4 }
 0x556   : > { %5402 = vst [vmem:[#allocation65_spill] sm:$0xff] %v4775_v35  ;;  %v1700_v35 = vsel %vm549_vm8, %v4703_v34, %v1683_v36  ;;  %v1697_v34 = vsel %vm549_vm8, %v4493_v55, %v4491_v31  ;;  %v1696_v36 = vsel %vm549_vm8, %v4464_v26, %v4493_v55  ;;  %v1693_v31 = vsel %vm549_vm8, %v4323_v19, %v4293_v54 }
 0x557   : > { %v1692_v55 = vsel %vm549_vm8, %v4295_v5, %v4323_v19  ;;  %v1539_v54 = vmul.f32 %v4154_v59, %v3289_v9  ;;  %v2133_v5 = vsel %vm987_vm3, %v4731_v0, %v4725_v47  ;;  %v2132_v19 = vsel %vm987_vm3, %v4711_v10, %v4731_v0 }
 0x558   : > { %v4779_v63 = vpop.permute.xlu1 %2190  ;;  %v1537_v59 = vmul.f32 %v4145_v12, %v3289_v9  ;;  %v2131_v47 = vsel %vm987_vm3, %v4624_v7, %v4598_v58  ;;  %v2130_v10 = vsel %vm987_vm3, %v4596_v42, %v4624_v7  ;;  %v1535_v0 = vmul.f32 %v4137_v17, %v3289_v9 }
 0x559   : > { %v1687_v50 = vpop.permute.xlu0 %1686  ;;  %5404 = vst [vmem:[#allocation67_spill] sm:$0xff] %v4779_v63  ;;  %v2129_v12 = vsel %vm987_vm3, %v4503_v53, %v4501_v57  ;;  %v1534_v58 = vmul.f32 %v4248_v61, %v3287_v8  ;;  %v2128_v42 = vsel %vm987_vm3, %v4473_v3, %v4503_v53  ;;  %v1533_v17 = vmul.f32 %v4119_v51, %v3289_v9  ;;  %v5405_v57 = vld [vmem:[#allocation30_spill] sm:$0xff]  ;;  %v5408_v51 = vld [vmem:[#allocation23_spill] sm:$0xff]  ;;  %v5409_v53 = vld [vmem:[#allocation16_spill] sm:$0xff] }
 0x55a   : > { %v2127_v7 = vsel %vm987_vm3, %v5405_v57, %v4399_v62  ;;  %v5406_v61 = vld [vmem:[#allocation22_spill] sm:$0xff] }
 0x55c   : > { %v1691_v16 = vpop.permute.xlu1 %1690 }
 0x55d   : > { %v2119_v45 = vpop.permute.xlu0 %2118 }
 0x560   : > { %v2123_v11 = vpop.permute.xlu1 %2122 }
 0x561   : > { %v4781_v52 = vpop.permute.xlu0 %1902 }
 0x564   : > { %v4783_v32 = vpop.permute.xlu1 %1906 }
 0x565   : > { %v1689_v27 = vpop.permute.xlu0 %1688 }
 0x566   : > { %v1702_v37 = vsel %vm549_vm8, %v1687_v50, %v1689_v27  ;;  %v1703_v20 = vsel %vm549_vm8, %v1689_v27, %v1691_v16  ;;  %v5407_v16 = vld [vmem:[#allocation28_spill] sm:$0xff] }
 0x567   : > { %2252 = vmatprep.subr.mxu1 %v1703_v20  ;;  %v1698_v20 = vsel %vm549_vm8, %v4587_v13, %v4616_v39  ;;  %v1694_v13 = vsel %vm549_vm8, %v4369_v46, %v4397_v15  ;;  %v1540_v15 = vmul.f32 %v4527_v24, %v3287_v8  ;;  %v2939_v27 = vld [vmem:[#allocation2 + $0x8] sm:$0xff] }
 0x568   : > { %2253 = vmatpush1.msra.mxu1 %v1702_v37  ;;  %v4792_v4 = vpop.permute.xlu1 %2178  ;;  %v1531_v3 = vmul.f32 %v2939_v27, %v3289_v9  ;;  %v5411_v9 = vld [vmem:[#allocation33_spill] sm:$0xff] }
 0x569   : > { %v4790_v63 = vpop.permute.xlu0 %1812  ;;  %2254 = vmatprep.subr.mxu1 %v1701_v33  ;;  %v2125_v33 = vsel %vm987_vm3, %v5409_v53, %v5408_v51 }
 0x56a   : > { %2255 = vmatpush1.msra.mxu1 %v1700_v35 }
 0x56b   : > { %2256 = vmatprep.subr.mxu1 %v1699_v49 }
 0x56c   : > { %2257 = vmatpush1.msra.mxu1 %v1698_v20  ;;  %v4805_v30 = vpop.permute.xlu1 %2176  ;;  %v2940_v20 = vld [vmem:[#allocation2] sm:$0xff] }
 0x56d   : > { %v4803_v37 = vpop.permute.xlu0 %2174  ;;  %2258 = vmatprep.subr.mxu1 %v1697_v34  ;;  %v1530_v62 = vmul.f32 %v2940_v20, %v3287_v8 }
 0x56e   : > { %2259 = vmatpush1.msra.mxu1 %v1696_v36 }
 0x56f   : > { %2260 = vmatprep.subr.mxu1 %v1695_v60  ;;  %v5410_v60 = vld [vmem:[#allocation19_spill] sm:$0xff] }
 0x570   : > { %2261 = vmatpush1.msra.mxu1 %v1694_v13  ;;  %v2063_v49 = vpop.permute.xlu1 %2062  ;;  %v2124_v13 = vsel %vm987_vm3, %v5410_v60, %v5409_v53  ;;  %v5430_v53 = vld [vmem:[#allocation24_spill] sm:$0xff] }
 0x571   : > { %v2121_v39 = vpop.permute.xlu0 %2120  ;;  %2262 = vmatprep.subr.mxu1 %v1693_v31 }
 0x572   : > { %v2134_v26 = vsel %vm987_vm3, %v2119_v45, %v2121_v39  ;;  %2263 = vmatpush1.msra.mxu1 %v1692_v55  ;;  %v2135_v46 = vsel %vm987_vm3, %v2121_v39, %v2123_v11  ;;  %v1532_v45 = vmul.f32 %v5406_v61, %v3287_v8  ;;  %v2126_v11 = vsel %vm987_vm3, %v5407_v16, %v5405_v57  ;;  %v5412_v39 = vld [vmem:[#allocation39_spill] sm:$0xff]  ;;  %v5413_v8 = vld [vmem:[#allocation34_spill] sm:$0xff]  ;;  %v5425_v61 = vld [vmem:[#allocation40_spill] sm:$0xff] }
 0x573   : > { %2264 = vmatprep.subr.mxu1 %v1541_v14  ;;  %2345 = vmatprep.subr.mxu0 %v2135_v46  ;;  %v1989_v55 = vsel %vm847_vm9, %v5412_v39, %v5411_v9  ;;  %v5414_v46 = vld [vmem:[#allocation21_spill] sm:$0xff] }
 0x574   : > { %2265 = vmatpush1.msra.mxu1 %v1540_v15  ;;  %2346 = vmatpush1.msra.mxu0 %v2134_v26  ;;  %v2059_v24 = vpop.permute.xlu1 %2058  ;;  %v1988_v26 = vsel %vm847_vm9, %v5413_v8, %v5412_v39  ;;  %v5415_v15 = vld [vmem:[#allocation17_spill] sm:$0xff] }
 0x575   : > { %v4838_v35 = vpop.permute.xlu0 %1904  ;;  %2266 = vmatprep.subr.mxu1 %v1539_v54  ;;  %2347 = vmatprep.subr.mxu0 %v2133_v5  ;;  %v1987_v54 = vsel %vm847_vm9, %v5415_v15, %v5414_v46  ;;  %v2073_v5 = vsel %vm926_vm7, %v4757_v44, %v4737_v23  ;;  %v5417_v23 = vld [vmem:[#allocation58_spill] sm:$0xff]  ;;  %v5436_v46 = vld [vmem:[#allocation29_spill] sm:$0xff] }
 0x576   : > { %2267 = vmatpush1.msra.mxu1 %v1538_v21  ;;  %2348 = vmatpush1.msra.mxu0 %v2132_v19 }
 0x577   : > { %2268 = vmatprep.subr.mxu1 %v1537_v59  ;;  %2349 = vmatprep.subr.mxu0 %v2131_v47  ;;  %v1919_v47 = vsel %vm768_vm10, %v4838_v35, %v4783_v32 }
 0x578   : > { %2269 = vmatpush1.msra.mxu1 %v1536_v38  ;;  %2350 = vmatpush1.msra.mxu0 %v2130_v10  ;;  %v4859_v41 = vpop.permute.xlu1 %1984  ;;  %v2071_v38 = vsel %vm926_vm7, %v4665_v40, %v5417_v23  ;;  %v1918_v10 = vsel %vm768_vm10, %v4781_v52, %v4838_v35  ;;  %v5422_v52 = vld [vmem:[#allocation57_spill] sm:$0xff]  ;;  %v5423_v35 = vld [vmem:[#allocation59_spill] sm:$0xff] }
 0x579   : > { %v4857_v50 = vpop.permute.xlu0 %1842  ;;  %2270 = vmatprep.subr.mxu1 %v1535_v0  ;;  %2351 = vmatprep.subr.mxu0 %v2129_v12  ;;  %v5419_v0 = vld [vmem:[#allocation45_spill] sm:$0xff]  ;;  %v1915_v57 = vsel %vm768_vm10, %v5423_v35, %v5422_v52 }
 0x57a   : > { %2271 = vmatpush1.msra.mxu1 %v1534_v58  ;;  %2352 = vmatpush1.msra.mxu0 %v2128_v42  ;;  %v5420_v12 = vld [vmem:[#allocation49_spill] sm:$0xff] }
 0x57b   : > { %2272 = vmatprep.subr.mxu1 %v1533_v17  ;;  %2353 = vmatprep.subr.mxu0 %v2127_v7  ;;  %v2069_v32 = vsel %vm926_vm7, %v5420_v12, %v5419_v0  ;;  %v5424_v7 = vld [vmem:[#allocation35_spill] sm:$0xff]  ;;  %v5448_v52 = vld [vmem:[#allocation65_spill] sm:$0xff] }
 0x57c   : > { %2273 = vmatpush1.msra.mxu1 %v1532_v45  ;;  %2354 = vmatpush1.msra.mxu0 %v2126_v11  ;;  %v1981_v36 = vpop.permute.xlu1 %1980  ;;  %v2067_v45 = vsel %vm926_vm7, %v5425_v61, %v5424_v7  ;;  %v5427_v11 = vld [vmem:[#allocation37_spill] sm:$0xff] }
 0x57d   : > { %v2061_v34 = vpop.permute.xlu0 %2060  ;;  %2274 = vmatprep.subr.mxu1 %v1531_v3  ;;  %2355 = vmatprep.subr.mxu0 %v2125_v33  ;;  %v2066_v27 = vsel %vm926_vm7, %v5427_v11, %v5425_v61  ;;  %v5429_v3 = vld [vmem:[#allocation44_spill] sm:$0xff]  ;;  %v5431_v33 = vld [vmem:[#allocation18_spill] sm:$0xff]  ;;  %v5452_v11 = vld [vmem:[#allocation41_spill] sm:$0xff] }
 0x57e   : > { %v2074_v31 = vsel %vm926_vm7, %v2059_v24, %v2061_v34  ;;  %2275 = vmatpush1.msra.mxu1 %v1530_v62  ;;  %2356 = vmatpush1.msra.mxu0 %v2124_v13  ;;  %v2075_v14 = vsel %vm926_vm7, %v2061_v34, %v2063_v49  ;;  %v2072_v49 = vsel %vm926_vm7, %v4751_v28, %v4757_v44  ;;  %v5416_v24 = vld [vmem:[#allocation20_spill] sm:$0xff]  ;;  %v5432_v62 = vld [vmem:[#allocation26_spill] sm:$0xff] }
 0x57f   : > { %2276 = vmatprep.subr.mxu1 %v1989_v55  ;;  %2357 = vmatprep.subr.mxu0 %v2075_v14  ;;  %v1986_v59 = vsel %vm847_vm9, %v5416_v24, %v5415_v15  ;;  %v5418_v28 = vld [vmem:[#allocation60_spill] sm:$0xff]  ;;  %v2065_v20 = vsel %vm926_vm7, %v5431_v33, %v5430_v53  ;;  %v2064_v34 = vsel %vm926_vm7, %v5432_v62, %v5431_v33  ;;  %v5434_v55 = vld [vmem:[#allocation31_spill] sm:$0xff] }
 0x580   : > { %2277 = vmatpush2.msra.mxu1 %v1988_v26  ;;  %2358 = vmatpush1.msra.mxu0 %v2074_v31  ;;  %v1847_v19 = vpop.permute.xlu1 %1846  ;;  %v2070_v44 = vsel %vm926_vm7, %v5418_v28, %v4665_v40  ;;  %v5421_v40 = vld [vmem:[#allocation46_spill] sm:$0xff]  ;;  %v5433_v31 = vld [vmem:[#allocation43_spill] sm:$0xff]  ;;  %v5435_v14 = vld [vmem:[#allocation32_spill] sm:$0xff] }
 0x581   : > { %v4899_v21 = vpop.permute.xlu0 %1764  ;;  %2278 = vmatprep.subr.mxu1 %v1987_v54  ;;  %2359 = vmatprep.subr.mxu0 %v2073_v5  ;;  %v2068_v17 = vsel %vm926_vm7, %v5421_v40, %v5420_v12  ;;  %v1912_v9 = vsel %vm768_vm10, %v5433_v31, %v5429_v3  ;;  %v1911_v8 = vsel %vm768_vm10, %v5435_v14, %v5434_v55  ;;  %v5437_v54 = vld [vmem:[#allocation13_spill] sm:$0xff]  ;;  %v5438_v5 = vld [vmem:[#allocation14_spill] sm:$0xff]  ;;  %v5455_v53 = vld [vmem:[#allocation63_spill] sm:$0xff] }
 0x582   : > { %2279 = vmatpush2.msra.mxu1 %v1986_v59  ;;  %2360 = vmatpush1.msra.mxu0 %v2072_v49  ;;  %v1910_v15 = vsel %vm768_vm10, %v5436_v46, %v5435_v14  ;;  %v1995_v49 = vsel %vm847_vm9, %v4764_v6, %v4759_v18  ;;  %v1857_v18 = vsel %vm707_vm12, %v4770_v48, %v4772_v25  ;;  %v5443_v12 = vld [vmem:[#allocation62_spill] sm:$0xff]  ;;  %v5456_v33 = vld [vmem:[#allocation27_spill] sm:$0xff] }
 0x583   : > { %2280 = vmatprep.subr.mxu1 %v1919_v47  ;;  %2361 = vmatprep.subr.mxu0 %v2071_v38  ;;  %v5439_v47 = vld [vmem:[#allocation15_spill] sm:$0xff] }
 0x584   : > { %2281 = vmatpush2.msra.mxu1 %v1918_v10  ;;  %2362 = vmatpush1.msra.mxu0 %v2070_v44  ;;  %v2201_v42 = vpop.permute.xlu1 %2200  ;;  %v1908_v23 = vsel %vm768_vm10, %v5439_v47, %v5438_v5  ;;  %v280_v47 = vld [vmem:[#allocation8 + $0x58] sm:$0xff] }
 0x585   : > { %v4919_v58 = vpop.permute.xlu0 %1760  ;;  %2282 = vmatprep.subr.mxu1 %v4743_v56  ;;  %2363 = vmatprep.subr.mxu0 %v2069_v32  ;;  %v5426_v56 = vld [vmem:[#allocation56_spill] sm:$0xff]  ;;  %v5444_v32 = vld [vmem:[#allocation61_spill] sm:$0xff] }
 0x586   : > { %2283 = vmatpush2.msra.mxu1 %v4740_v29  ;;  %2364 = vmatpush1.msra.mxu0 %v2068_v17  ;;  %v1914_v16 = vsel %vm768_vm10, %v5426_v56, %v5423_v35  ;;  %v5428_v29 = vld [vmem:[#allocation42_spill] sm:$0xff] }
 0x587   : > { %2284 = vmatprep.subr.mxu1 %v1915_v57  ;;  %2365 = vmatprep.subr.mxu0 %v2067_v45  ;;  %v1913_v51 = vsel %vm768_vm10, %v5429_v3, %v5428_v29  ;;  %v5447_v17 = vld [vmem:[#allocation66_spill] sm:$0xff]  ;;  %v5449_v57 = vld [vmem:[#allocation67_spill] sm:$0xff]  ;;  %v5453_v29 = vld [vmem:[#allocation64_spill] sm:$0xff] }
 0x588   : > { %2285 = vmatpush2.msra.mxu1 %v1914_v16  ;;  %2366 = vmatpush1.msra.mxu0 %v2066_v27  ;;  %v2197_v13 = vpop.permute.xlu1 %2196  ;;  %v2211_v35 = vsel %vm1066_vm13, %v5448_v52, %v5447_v17  ;;  %v2210_v7 = vsel %vm1066_vm13, %v5449_v57, %v5448_v52  ;;  %v5450_v45 = vld [vmem:[#allocation47_spill] sm:$0xff]  ;;  %v5451_v16 = vld [vmem:[#allocation38_spill] sm:$0xff]  ;;  %v5454_v3 = vld [vmem:[#allocation36_spill] sm:$0xff] }
 0x589   : > { %v1983_v60 = vpop.permute.xlu0 %1982  ;;  %2286 = vmatprep.subr.mxu1 %v1913_v51  ;;  %2367 = vmatprep.subr.mxu0 %v2065_v20  ;;  %v1851_v27 = vsel %vm707_vm12, %v5452_v11, %v5451_v16  ;;  %v1850_v51 = vsel %vm707_vm12, %v5454_v3, %v5452_v11  ;;  %v5457_v20 = vld [vmem:[#allocation25_spill] sm:$0xff] }
 0x58a   : > { %v1996_v39 = vsel %vm847_vm9, %v1981_v36, %v1983_v60  ;;  %2287 = vmatpush2.msra.mxu1 %v1912_v9  ;;  %2368 = vmatpush1.msra.mxu0 %v2064_v34  ;;  %v1997_v26 = vsel %vm847_vm9, %v1983_v60, %v4859_v41  ;;  %v1909_v36 = vsel %vm768_vm10, %v5438_v5, %v5437_v54  ;;  %v5458_v34 = vld [vmem:[#allocation54_spill] sm:$0xff]  ;;  %v5459_v60 = vld [vmem:[#allocation55_spill] sm:$0xff] }
 0x58b   : > { %2288 = vmatprep.subr.mxu1 %v1911_v8  ;;  %2369 = vmatprep.subr.mxu0 %v1997_v26  ;;  %v1994_v41 = vsel %vm847_vm9, %v4766_v22, %v4764_v6  ;;  %v5440_v6 = vld [vmem:[#allocation48_spill] sm:$0xff]  ;;  %v5441_v22 = vld [vmem:[#allocation51_spill] sm:$0xff]  ;;  %v1849_v62 = vsel %vm707_vm12, %v5457_v20, %v5456_v33  ;;  %v1848_v31 = vsel %vm707_vm12, %v4790_v63, %v5457_v20 }
 0x58c   : > { %2289 = vmatpush2.msra.mxu1 %v1910_v15  ;;  %2370 = vmatpush1.msra.mxu0 %v1996_v39  ;;  %v1769_v59 = vpop.permute.xlu1 %1768  ;;  %v1991_v44 = vsel %vm847_vm9, %v5441_v22, %v5440_v6  ;;  %v2206_v9 = vsel %vm1066_vm13, %v4792_v4, %v5459_v60  ;;  %v2205_v26 = vsel %vm1066_vm13, %v4803_v37, %v4805_v30  ;;  %v269_v15 = vld [vmem:[#allocation8] sm:$0xff]  ;;  %v271_v5 = vld [vmem:[#allocation8 + $0x10] sm:$0xff] }
 0x58d   : > { %v1845_v24 = vpop.permute.xlu0 %1844  ;;  %2290 = vmatprep.subr.mxu1 %v1909_v36  ;;  %2371 = vmatprep.subr.mxu0 %v1995_v49  ;;  %v274_v36 = vld [vmem:[#allocation8 + $0x28] sm:$0xff]  ;;  %v276_v49 = vld [vmem:[#allocation8 + $0x38] sm:$0xff]  ;;  %v283_v6 = vld [vmem:[#allocation8 + $0x70] sm:$0xff] }
 0x58e   : > { %v1858_v38 = vsel %vm707_vm12, %v4857_v50, %v1845_v24  ;;  %2291 = vmatpush2.msra.mxu1 %v1908_v23  ;;  %2372 = vmatpush1.msra.mxu0 %v1994_v41  ;;  %v1859_v28 = vsel %vm707_vm12, %v1845_v24, %v1847_v19  ;;  %v1856_v50 = vsel %vm707_vm12, %v4749_v1, %v4770_v48  ;;  %v5445_v1 = vld [vmem:[#allocation52_spill] sm:$0xff]  ;;  %v5446_v48 = vld [vmem:[#allocation53_spill] sm:$0xff]  ;;  %v275_v24 = vld [vmem:[#allocation8 + $0x30] sm:$0xff] }
 0x58f   : > { %2292 = vmatprep.subr.mxu1 %v1859_v28  ;;  %2373 = vmatprep.subr.mxu0 %v4699_v43  ;;  %v5442_v43 = vld [vmem:[#allocation50_spill] sm:$0xff]  ;;  %v1853_v40 = vsel %vm707_vm12, %v5446_v48, %v5445_v1  ;;  %v1852_v56 = vsel %vm707_vm12, %v5450_v45, %v5446_v48  ;;  %v273_v41 = vld [vmem:[#allocation8 + $0x20] sm:$0xff]  ;;  %v279_v23 = vld [vmem:[#allocation8 + $0x50] sm:$0xff] }
 0x590   : > { %2293 = vmatpush2.msra.mxu1 %v1858_v38  ;;  %2374 = vmatpush1.msra.mxu0 %v4691_v2  ;;  %v2173_v19 = vpop.permute.xlu1 %2172  ;;  %v1990_v2 = vsel %vm847_vm9, %v5442_v43, %v5441_v22  ;;  %v282_v38 = vld [vmem:[#allocation8 + $0x68] sm:$0xff]  ;;  %v284_v28 = vld [vmem:[#allocation8 + $0x78] sm:$0xff] }
 0x591   : > { %v2199_v10 = vpop.permute.xlu0 %2198  ;;  %2294 = vmatprep.subr.mxu1 %v1857_v18  ;;  %2375 = vmatprep.subr.mxu0 %v1991_v44  ;;  %v2204_v63 = vsel %vm1066_vm13, %v2173_v19, %v4803_v37  ;;  %v281_v18 = vld [vmem:[#allocation8 + $0x60] sm:$0xff]  ;;  %v286_v22 = vld [vmem:[#allocation8 + $0x88] sm:$0xff]  ;;  %v288_v44 = vld [vmem:[#allocation8 + $0x98] sm:$0xff] }
 0x592   : > { %v2212_v0 = vsel %vm1066_vm13, %v2197_v13, %v2199_v10  ;;  %2295 = vmatpush2.msra.mxu1 %v1856_v50  ;;  %2376 = vmatpush1.msra.mxu0 %v1990_v2  ;;  %v2213_v25 = vsel %vm1066_vm13, %v2199_v10, %v2201_v42  ;;  %v2207_v13 = vsel %vm1066_vm13, %v5459_v60, %v5458_v34  ;;  %v285_v50 = vld [vmem:[#allocation8 + $0x80] sm:$0xff]  ;;  %v287_v10 = vld [vmem:[#allocation8 + $0x90] sm:$0xff]  ;;  %v290_v19 = vld [vmem:[#allocation8 + $0xa8] sm:$0xff] }
 0x593   : > { %2296 = vmatprep.subr.mxu1 %v5443_v12  ;;  %2397 = vmatprep.subr.mxu0 %v2213_v25  ;;  %v292_v43 = vld [vmem:[#allocation8 + $0xb8] sm:$0xff]  ;;  %v289_v2 = vld [vmem:[#allocation8 + $0xa0] sm:$0xff] }
 0x594   : > { %2297 = vmatpush2.msra.mxu1 %v5444_v32  ;;  %2398 = vmatpush2.msra.mxu0 %v2212_v0  ;;  %v1763_v42 = vpop.permute.xlu1 %1762  ;;  %v291_v0 = vld [vmem:[#allocation8 + $0xb0] sm:$0xff] }
 0x595   : > { %v2169_v61 = vpop.permute.xlu0 %2168  ;;  %2298 = vmatprep.subr.mxu1 %v1853_v40  ;;  %2399 = vmatprep.subr.mxu0 %v2211_v35  ;;  %v1779_v4 = vsel %vm628_vm5, %v4919_v58, %v1763_v42 }
 0x596   : > { %2299 = vmatpush2.msra.mxu1 %v1852_v56  ;;  %2400 = vmatpush2.msra.mxu0 %v2210_v7 }
 0x597   : > { %2300 = vmatprep.subr.mxu1 %v1851_v27  ;;  %2401 = vmatprep.subr.mxu0 %v5453_v29 }
 0x598   : > { %2301 = vmatpush2.msra.mxu1 %v1850_v51  ;;  %2402 = vmatpush2.msra.mxu0 %v5455_v53  ;;  %v2171_v14 = vpop.permute.xlu1 %2170 }
 0x599   : > { %v1767_v39 = vpop.permute.xlu0 %1766  ;;  %2302 = vmatprep.subr.mxu1 %v1849_v62  ;;  %2403 = vmatprep.subr.mxu0 %v2207_v13 }
 0x59a   : > { %v1780_v55 = vsel %vm628_vm5, %v4899_v21, %v1767_v39  ;;  %2303 = vmatpush2.msra.mxu1 %v1848_v31  ;;  %2404 = vmatpush2.msra.mxu0 %v2206_v9  ;;  %v1781_v8 = vsel %vm628_vm5, %v1767_v39, %v1769_v59  ;;  %v2203_v21 = vsel %vm1066_vm13, %v2169_v61, %v2171_v14  ;;  %v278_v59 = vld [vmem:[#allocation8 + $0x48] sm:$0xff] }
 0x59b   : > { %2304 = vmatprep.subr.mxu1 %v1781_v8  ;;  %2405 = vmatprep.subr.mxu0 %v2205_v26 }
 0x59c   : > { %2305 = vmatpush2.msra.mxu1 %v1780_v55  ;;  %2406 = vmatpush2.msra.mxu0 %v2204_v63  ;;  %v2167_v30 = vpop.permute.xlu1 %2166 }
 0x59d   : > { %v1759_v46 = vpop.permute.xlu0 %1758  ;;  %2306 = vmatprep.subr.mxu1 %v1779_v4  ;;  %2407 = vmatprep.subr.mxu0 %v2203_v21  ;;  %v2202_v37 = vsel %vm1066_vm13, %v2167_v30, %v2169_v61 }
 0x59e   : > { %v1778_v54 = vsel %vm628_vm5, %v1759_v46, %v4919_v58  ;;  %2408 = vmatpush2.msra.mxu0 %v2202_v37  ;;  %v277_v58 = vld [vmem:[#allocation8 + $0x40] sm:$0xff] }
 0x59f   : > { %2307 = vmatpush2.msra.mxu1 %v1778_v54  ;;  %2410 = vmatmul.mubr.f32.vlgmr.msra.gmra.mxu0 %v271_v5 }
 0x5a0   : > { %2309 = vmatmul.mubr.f32.vlgmr.msra.gmra.mxu1 %v269_v15  ;;  %2815 = vmatprep.mubr.msk.f32.mxu0 %vm1091_vm11, %v276_v49 }
 0x5a1   : > { %2314 = vmatprep.mubr.f32.mxu1 %v274_v36 }
 0x5a3   : > { %2416 = vmatmul.mubr.f32.gmra.mxu0 %v275_v24 }
 0x5a4   : > { %2315 = vmatmul.mubr.f32.gmra.mxu1 %v273_v41  ;;  %2816 = vmatprep.mubr.msk.f32.mxu0 %vm1091_vm11, %v280_v47 }
 0x5a5   : > { %2320 = vmatprep.mubr.f32.mxu1 %v278_v59 }
 0x5a7   : > { %2422 = vmatmul.mubr.f32.gmra.mxu0 %v279_v23 }
 0x5a8   : > { %2321 = vmatmul.mubr.f32.gmra.mxu1 %v277_v58  ;;  %2817 = vmatprep.mubr.msk.f32.mxu0 %vm1091_vm11, %v284_v28 }
 0x5a9   : > { %2326 = vmatprep.mubr.f32.mxu1 %v282_v38 }
 0x5ab   : > { %2428 = vmatmul.mubr.f32.gmra.mxu0 %v283_v6 }
 0x5ac   : > { %2327 = vmatmul.mubr.f32.gmra.mxu1 %v281_v18  ;;  %2818 = vmatprep.mubr.msk.f32.mxu0 %vm1091_vm11, %v288_v44 }
 0x5ad   : > { %2332 = vmatprep.mubr.f32.mxu1 %v286_v22 }
 0x5af   : > { %2434 = vmatmul.mubr.f32.gmra.mxu0 %v287_v10 }
 0x5b0   : > { %2333 = vmatmul.mubr.f32.gmra.mxu1 %v285_v50  ;;  %2819 = vmatprep.mubr.msk.f32.mxu0 %vm1091_vm11, %v292_v43  ;;  %v2577_v43 = vld [vmem:[%s3271_s13 + $0x88] sm:$0xff] }
 0x5b1   : > { %2338 = vmatprep.mubr.f32.mxu1 %v290_v19  ;;  %v2575_v19 = vld [vmem:[%s3271_s13 + $0x78] sm:$0xff] }
 0x5b3   : > { %2440 = vmatmul.mubr.f32.gmra.mxu0 %v291_v0  ;;  %v2576_v0 = vld [vmem:[%s3271_s13 + $0x80] sm:$0xff] }
 0x5b4   : > { %2339 = vmatmul.mubr.f32.gmra.mxu1 %v289_v2  ;;  %v2574_v2 = vld [vmem:[%s3271_s13 + $0x70] sm:$0xff]  ;;  %s2826_s13 = smul.u32 96, %s3267_s9 }
 0x5b6   : > { %s5166_s21 = scalar_lea.vmem [#allocation9], %s2826_s13 }
 0x5b7   : > { %s2706_s7 = sshll.u32 %s5166_s21, 4  ;;  %s5226_s7 = int_to_ptr.vmem [resolvable:$true] %s2706_s7 }
 0x5b8   : > { %s3021_s29 = scalar_lea.vmem %s5226_s7, 1536  ;;  %p3028_p6 = scmp.lt.s32.totalorder %s5226_s7, %s3026_s8 }
 0x5b9   : > { %p3022_p11 = scmp.ne.s32.totalorder %s5226_s7, %s3021_s29  ;;  %p3029_p12 = scmp.lt.s32.totalorder %s3027_s10, %s3021_s29 }
 0x5bb   : > { %p3023_p1 = pnand %p3022_p11, %p5460_p10  ;;  %p3030_p7 = por %p3029_p12, %p3028_p6 }
 0x5bd   : > { %p3024_p2 = pneg %p3023_p1 }
 0x5bf   : > { %p3031_p9 = pnand %p3030_p7, %p3024_p2 }
 0x65f   : > { %v2411_v12 = vpop.f32.mrf.mxu0 }
 0x660   : > { %v2310_v25 = vpop.f32.mrf.mxu1 }
 0x661   : > { %v5043_v32 = vadd.f32 %v2411_v12, %v2310_v25  ;;  %v2413_v48 = vpop.f32.mrf.mxu0  ;;  %v5111_v25 = vpop.permute.xlu1 %2596 }
 0x662   : > { %v2312_v1 = vpop.f32.mrf.mxu1 }
 0x663   : > { %v5045_v40 = vadd.f32 %v2413_v48, %v2312_v1  ;;  %v2417_v52 = vpop.f32.mrf.mxu0  ;;  %v2470_v35 = vmul.f32 %v5043_v32, %v5043_v32  ;;  %v5115_v1 = vpop.permute.xlu0 %2598 }
 0x664   : > { %v2316_v17 = vpop.f32.mrf.mxu1 }
 0x665   : > { %v2471_v57 = vmul.f32 %v5045_v40, %v5045_v40  ;;  %v5051_v7 = vadd.f32 %v2417_v52, %v2316_v17  ;;  %v2446_v42 = vadd.f32 %v5045_v40, %v5043_v32  ;;  %v2419_v45 = vpop.f32.mrf.mxu0  ;;  %v5113_v12 = vpop.permute.xlu1 %2600 }
 0x666   : > { %v2318_v61 = vpop.f32.mrf.mxu1 }
 0x667   : > { %v5055_v56 = vadd.f32 %v2419_v45, %v2318_v61  ;;  %2447 = vadd.xlane.f32.xlu0 %v2446_v42  ;;  %v2482_v11 = vadd.f32 %v2471_v57, %v2470_v35  ;;  %v2423_v27 = vpop.f32.mrf.mxu0  ;;  %v2472_v29 = vmul.f32 %v5051_v7, %v5051_v7  ;;  %v5119_v17 = vpop.permute.xlu0 %2604 }
 0x668   : > { %v2322_v16 = vpop.f32.mrf.mxu1 }
 0x669   : > { %v2473_v3 = vmul.f32 %v5055_v56, %v5055_v56  ;;  %v5061_v51 = vadd.f32 %v2423_v27, %v2322_v16  ;;  %2483 = vadd.xlane.f32.xlu1 %v2482_v11  ;;  %v2425_v33 = vpop.f32.mrf.mxu0  ;;  %v2449_v60 = vadd.f32 %v5055_v56, %v5051_v7  ;;  %v5117_v48 = vpop.permute.xlu1 %2602 }
 0x66a   : > { %v2324_v53 = vpop.f32.mrf.mxu1 }
 0x66b   : > { %v2474_v20 = vmul.f32 %v5061_v51, %v5061_v51  ;;  %v5065_v62 = vadd.f32 %v2425_v33, %v2324_v53  ;;  %v2485_v13 = vadd.f32 %v2473_v3, %v2472_v29  ;;  %v2429_v31 = vpop.f32.mrf.mxu0  ;;  %v5123_v35 = vpop.permute.xlu0 %2608 }
 0x66c   : > { %v2328_v34 = vpop.f32.mrf.mxu1 }
 0x66d   : > { %v2475_v9 = vmul.f32 %v5065_v62, %v5065_v62  ;;  %2450 = vadd.xlane.f32.xlu1 %v2449_v60  ;;  %2486 = vadd.xlane.f32.xlu0 %v2485_v13  ;;  %v2431_v55 = vpop.f32.mrf.mxu0  ;;  %v5071_v14 = vadd.f32 %v2429_v31, %v2328_v34  ;;  %v2452_v4 = vadd.f32 %v5065_v62, %v5061_v51  ;;  %v5121_v52 = vpop.permute.xlu1 %2606 }
 0x66e   : > { %v2330_v39 = vpop.f32.mrf.mxu1 }
 0x66f   : > { %v5073_v8 = vadd.f32 %v2431_v55, %v2330_v39  ;;  %v2488_v63 = vadd.f32 %v2475_v9, %v2474_v20  ;;  %v2435_v21 = vpop.f32.mrf.mxu0  ;;  %v2476_v30 = vmul.f32 %v5071_v14, %v5071_v14  ;;  %v5127_v61 = vpop.permute.xlu0 %2612 }
 0x670   : > { %v2334_v26 = vpop.f32.mrf.mxu1 }
 0x671   : > { %v5077_v46 = vadd.f32 %v2435_v21, %v2334_v26  ;;  %2489 = vadd.xlane.f32.xlu1 %v2488_v63  ;;  %2453 = vadd.xlane.f32.xlu0 %v2452_v4  ;;  %v2437_v54 = vpop.f32.mrf.mxu0  ;;  %v2477_v5 = vmul.f32 %v5073_v8, %v5073_v8  ;;  %v2455_v49 = vadd.f32 %v5073_v8, %v5071_v14  ;;  %v5125_v57 = vpop.permute.xlu1 %2610 }
 0x672   : > { %v2336_v15 = vpop.f32.mrf.mxu1 }
 0x673   : > { %v5083_v36 = vadd.f32 %v2437_v54, %v2336_v15  ;;  %v2441_v41 = vpop.f32.mrf.mxu0  ;;  %v2478_v24 = vmul.f32 %v5077_v46, %v5077_v46  ;;  %v2491_v18 = vadd.f32 %v2477_v5, %v2476_v30  ;;  %v5131_v45 = vpop.permute.xlu0 %2616 }
 0x674   : > { %v2340_v37 = vpop.f32.mrf.mxu1 }
 0x675   : > { %v2479_v59 = vmul.f32 %v5083_v36, %v5083_v36  ;;  %2456 = vadd.xlane.f32.xlu0 %v2455_v49  ;;  %v2458_v58 = vadd.f32 %v5083_v36, %v5077_v46  ;;  %v2443_v23 = vpop.f32.mrf.mxu0  ;;  %v5093_v38 = vadd.f32 %v2441_v41, %v2340_v37  ;;  %v5129_v42 = vpop.permute.xlu1 %2614 }
 0x676   : > { %v2342_v47 = vpop.f32.mrf.mxu1 }
 0x677   : > { %v5095_v28 = vadd.f32 %v2443_v23, %v2342_v47  ;;  %2459 = vadd.xlane.f32.xlu1 %v2458_v58  ;;  %v2494_v6 = vadd.f32 %v2479_v59, %v2478_v24  ;;  %v2480_v22 = vmul.f32 %v5093_v38, %v5093_v38  ;;  %v5135_v11 = vpop.permute.xlu0 %2620 }
 0x679   : > { %2492 = vadd.xlane.f32.xlu0 %v2491_v18  ;;  %v2481_v44 = vmul.f32 %v5095_v28, %v5095_v28  ;;  %v2461_v50 = vadd.f32 %v5095_v28, %v5093_v38  ;;  %v5133_v16 = vpop.permute.xlu1 %2618 }
 0x67b   : > { %2495 = vadd.xlane.f32.xlu1 %v2494_v6  ;;  %v2497_v10 = vadd.f32 %v2481_v44, %v2480_v22 }
 0x67d   : > { %2462 = vadd.xlane.f32.xlu0 %v2461_v50  ;;  %v5137_v27 = vpop.permute.xlu1 %2622 }
 0x681   : > { %2498 = vadd.xlane.f32.xlu0 %v2497_v10 }
 0x68c   : > { %2626 = vrot.lane.b32.xlu1 %v2575_v19, %s3108_s12 }
 0x690   : > { %2630 = vrot.lane.b32.xlu1 %v2577_v43, %s3108_s12 }
 0x697   : > { %2624 = vrot.lane.b32.xlu0 %v2574_v2, %s3108_s12 }
 0x69b   : > { %2628 = vrot.lane.b32.xlu0 %v2576_v0, %s3108_s12 }
 0x6f0   : > { %v2448_v29 = vpop.xlane.xlu0 %2447 }
 0x6f1   : > { %v2464_v3 = vmul.f32 0.00390625, %v2448_v29 }
 0x6f2   : > { %v2484_v53 = vpop.xlane.xlu1 %2483 }
 0x6f3   : > { %v2506_v33 = vmul.f32 %v2464_v3, %v2464_v3  ;;  %v2500_v20 = vmul.f32 0.00390625, %v2484_v53  ;;  %v2518_v2 = vsub.f32 %v5043_v32, %v2464_v3  ;;  %v2519_v0 = vsub.f32 %v5045_v40, %v2464_v3 }
 0x6f4   : > { %v2633_v32 = vsel %vm768_vm10, %v5115_v1, %v5113_v12 }
 0x6f5   : > { %v2512_v34 = vsub.f32 %v2500_v20, %v2506_v33 }
 0x6f6   : > { %v2487_v60 = vpop.xlane.xlu0 %2486  ;;  %v2451_v13 = vpop.xlane.xlu1 %2450 }
 0x6f7   : > { %v2530_v31 = vmax.f32 %v2512_v34, 0.0  ;;  %v2465_v9 = vmul.f32 0.00390625, %v2451_v13  ;;  %v2501_v55 = vmul.f32 0.00390625, %v2487_v60 }
 0x6f9   : > { %v2536_v39 = vadd.f32 1e-05, %v2530_v31  ;;  %v2507_v26 = vmul.f32 %v2465_v9, %v2465_v9 }
 0x6fa   : > { %v2454_v63 = vpop.xlane.xlu0 %2453  ;;  %v2490_v4 = vpop.xlane.xlu1 %2489 }
 0x6fb   : > { %2927 = vrsqrt.f32 %v2536_v39  ;;  %v2513_v21 = vsub.f32 %v2501_v55, %v2507_v26  ;;  %v5139_v15 = vmul.f32 0.00390625, %v2454_v63  ;;  %v2502_v5 = vmul.f32 0.00390625, %v2490_v4 }
 0x6fc   : > { %v2632_v39 = vsel %vm768_vm10, %v5111_v25, %v5115_v1  ;;  %v2520_v63 = vsub.f32 %v5051_v7, %v2465_v9  ;;  %v2634_v7 = vsel %vm768_vm10, %v5117_v48, %v5119_v17 }
 0x6fd   : > { %v2531_v54 = vmax.f32 %v2513_v21, 0.0  ;;  %v2508_v30 = vmul.f32 %v5139_v15, %v5139_v15 }
 0x6fe   : > { %v2457_v37 = vpop.xlane.xlu0 %2456 }
 0x6ff   : > { %v2537_v49 = vadd.f32 1e-05, %v2531_v54  ;;  %v2514_v41 = vsub.f32 %v2502_v5, %v2508_v30  ;;  %v5143_v24 = vmul.f32 0.00390625, %v2457_v37  ;;  %v2521_v5 = vsub.f32 %v5055_v56, %v2465_v9 }
 0x700   : > { %v2460_v59 = vpop.xlane.xlu1 %2459  ;;  %v2635_v56 = vsel %vm768_vm10, %v5119_v17, %v5121_v52  ;;  %v2636_v17 = vsel %vm768_vm10, %v5123_v35, %v5125_v57  ;;  %v2637_v52 = vsel %vm768_vm10, %v5125_v57, %v5127_v61 }
 0x701   : > { %2929 = vrsqrt.f32 %v2537_v49  ;;  %v2532_v47 = vmax.f32 %v2514_v41, 0.0  ;;  %v5145_v58 = vmul.f32 0.00390625, %v2460_v59  ;;  %v2509_v6 = vmul.f32 %v5143_v24, %v5143_v24 }
 0x702   : > { %v2493_v23 = vpop.xlane.xlu0 %2492  ;;  %v2522_v59 = vsub.f32 %v5061_v51, %v5139_v15 }
 0x703   : > { %v2538_v18 = vadd.f32 1e-05, %v2532_v47  ;;  %v2503_v22 = vmul.f32 0.00390625, %v2493_v23  ;;  %v2510_v10 = vmul.f32 %v5145_v58, %v5145_v58  ;;  %v2523_v47 = vsub.f32 %v5065_v62, %v5139_v15 }
 0x704   : > { %v2496_v44 = vpop.xlane.xlu1 %2495  ;;  %v2526_v35 = vsub.f32 %v5077_v46, %v5145_v58  ;;  %v2527_v57 = vsub.f32 %v5083_v36, %v5145_v58  ;;  %v2640_v36 = vsel %vm768_vm10, %v5135_v11, %v5137_v27 }
 0x705   : > { %2931 = vrsqrt.f32 %v2538_v18  ;;  %v2515_v50 = vsub.f32 %v2503_v22, %v2509_v6  ;;  %v2504_v19 = vmul.f32 0.00390625, %v2496_v44 }
 0x706   : > { %v2463_v43 = vpop.xlane.xlu0 %2462 }
 0x707   : > { %v2533_v29 = vmax.f32 %v2515_v50, 0.0  ;;  %v2516_v53 = vsub.f32 %v2504_v19, %v2510_v10  ;;  %v5154_v20 = vmul.f32 0.00390625, %v2463_v43  ;;  %v2524_v10 = vsub.f32 %v5071_v14, %v5143_v24 }
 0x708   : > { %v2928_v33 = vpop.eup %2927  ;;  %v2525_v19 = vsub.f32 %v5073_v8, %v5143_v24  ;;  %v2638_v14 = vsel %vm768_vm10, %v5129_v42, %v5131_v45  ;;  %v2639_v8 = vsel %vm768_vm10, %v5131_v45, %v5133_v16 }
 0x709   : > { %v2548_v34 = vmul.f32 %v2928_v33, %v2518_v2  ;;  %v2549_v60 = vmul.f32 %v2928_v33, %v2519_v0  ;;  %v2539_v13 = vadd.f32 1e-05, %v2533_v29  ;;  %v2534_v31 = vmax.f32 %v2516_v53, 0.0  ;;  %v2627_v2 = vpop.permute.xlu1 %2626 }
 0x70a   : > { %v2499_v55 = vpop.xlane.xlu0 %2498  ;;  %v2511_v4 = vmul.f32 %v5154_v20, %v5154_v20  ;;  %v2529_v11 = vsub.f32 %v5095_v28, %v5154_v20 }
 0x70b   : > { %v2656_v40 = vadd.f32 %v2632_v39, %v2548_v34  ;;  %v2657_v3 = vadd.f32 %v2633_v32, %v2549_v60  ;;  %2933 = vrsqrt.f32 %v2539_v13  ;;  %v2540_v26 = vadd.f32 1e-05, %v2534_v31 }
 0x70c   : > { %v2505_v21 = vmul.f32 0.00390625, %v2499_v55  ;;  %v2528_v32 = vsub.f32 %v5093_v38, %v5154_v20 }
 0x70d   : > { %v2668_v54 = vmax.f32 %v2656_v40, 0.0  ;;  %v2669_v30 = vmax.f32 %v2657_v3, 0.0  ;;  %2935 = vrsqrt.f32 %v2540_v26  ;;  %v2631_v39 = vpop.permute.xlu1 %2630 }
 0x70e   : > { %v2930_v25 = vpop.eup %2929  ;;  %v2517_v37 = vsub.f32 %v2505_v21, %v2511_v4  ;;  %v2625_v29 = vpop.permute.xlu0 %2624 }
 0x70f   : > { %2680 = vst [vmem:[%s5166_s21] sm:$0xff] %v2668_v54  ;;  %2681 = vst [vmem:[%s5166_s21 + $0x8] sm:$0xff] %v2669_v30  ;;  %v2550_v12 = vmul.f32 %v2930_v25, %v2520_v63  ;;  %v2551_v1 = vmul.f32 %v2930_v25, %v2521_v5  ;;  %v2641_v58 = vsel %vm768_vm10, %v5137_v27, %v2625_v29 }
 0x710   : > { %v2535_v9 = vmax.f32 %v2517_v37, 0.0 }
 0x711   : > { %v2658_v49 = vadd.f32 %v2634_v7, %v2550_v12  ;;  %v2659_v41 = vadd.f32 %v2635_v56, %v2551_v1 }
 0x712   : > { %v2932_v23 = vpop.eup %2931  ;;  %v2541_v18 = vadd.f32 1e-05, %v2535_v9  ;;  %v2629_v55 = vpop.permute.xlu0 %2628 }
 0x713   : > { %v2670_v6 = vmax.f32 %v2658_v49, 0.0  ;;  %v2671_v22 = vmax.f32 %v2659_v41, 0.0  ;;  %v2552_v48 = vmul.f32 %v2932_v23, %v2522_v59  ;;  %v2553_v44 = vmul.f32 %v2932_v23, %v2523_v47 }
 0x714   : > { %2937 = vrsqrt.f32 %v2541_v18  ;;  %v2643_v40 = vsel %vm768_vm10, %v2629_v55, %v2631_v39  ;;  %v2642_v63 = vsel %vm768_vm10, %v2627_v2, %v2629_v55 }
 0x715   : > { %2682 = vst [vmem:[%s5166_s21 + $0x10] sm:$0xff] %v2670_v6  ;;  %2683 = vst [vmem:[%s5166_s21 + $0x18] sm:$0xff] %v2671_v22  ;;  %v2660_v51 = vadd.f32 %v2636_v17, %v2552_v48  ;;  %v2661_v62 = vadd.f32 %v2637_v52, %v2553_v44 }
 0x717   : > { %v2672_v15 = vmax.f32 %v2660_v51, 0.0  ;;  %v2673_v50 = vmax.f32 %v2661_v62, 0.0 }
 0x718   : > { %v2934_v43 = vpop.eup %2933 }
 0x719   : > { %2684 = vst [vmem:[%s5166_s21 + $0x20] sm:$0xff] %v2672_v15  ;;  %2685 = vst [vmem:[%s5166_s21 + $0x28] sm:$0xff] %v2673_v50  ;;  %v2554_v61 = vmul.f32 %v2934_v43, %v2524_v10  ;;  %v2555_v0 = vmul.f32 %v2934_v43, %v2525_v19 }
 0x71a   : > { %v2936_v53 = vpop.eup %2935 }
 0x71b   : > { %v2662_v24 = vadd.f32 %v2638_v14, %v2554_v61  ;;  %v2663_v33 = vadd.f32 %v2639_v8, %v2555_v0  ;;  %v2556_v46 = vmul.f32 %v2936_v53, %v2526_v35  ;;  %v2557_v34 = vmul.f32 %v2936_v53, %v2527_v57 }
 0x71d   : > { %v2674_v60 = vmax.f32 %v2662_v24, 0.0  ;;  %v2675_v13 = vmax.f32 %v2663_v33, 0.0  ;;  %v2664_v42 = vadd.f32 %v2640_v36, %v2556_v46  ;;  %v2665_v31 = vadd.f32 %v2641_v58, %v2557_v34 }
 0x71f   : > { %2686 = vst [vmem:[%s5166_s21 + $0x30] sm:$0xff] %v2674_v60  ;;  %2687 = vst [vmem:[%s5166_s21 + $0x38] sm:$0xff] %v2675_v13  ;;  %v2676_v45 = vmax.f32 %v2664_v42, 0.0  ;;  %v2677_v16 = vmax.f32 %v2665_v31, 0.0 }
 0x721   : > { %v2938_v27 = vpop.eup %2937  ;;  %2688 = vst [vmem:[%s5166_s21 + $0x40] sm:$0xff] %v2676_v45  ;;  %2689 = vst [vmem:[%s5166_s21 + $0x48] sm:$0xff] %v2677_v16 }
 0x722   : > { %v2558_v3 = vmul.f32 %v2938_v27, %v2528_v32  ;;  %v2559_v26 = vmul.f32 %v2938_v27, %v2529_v11 }
 0x724   : > { %v2666_v38 = vadd.f32 %v2642_v63, %v2558_v3  ;;  %v2667_v4 = vadd.f32 %v2643_v40, %v2559_v26 }
 0x726   : > { %v2678_v21 = vmax.f32 %v2666_v38, 0.0  ;;  %v2679_v28 = vmax.f32 %v2667_v4, 0.0 }
 0x728   : > { %2690 = vst [vmem:[%s5166_s21 + $0x50] sm:$0xff] %v2678_v21  ;;  %2691 = vst [vmem:[%s5166_s21 + $0x58] sm:$0xff] %v2679_v28 }
 0x729   : > { %3034 = shalt.err (!%p3031_p9)
}
 0x72a   : > { %s3035_s12 = scalar_lea.hbm %s5224_s28, 1536  ;;  %s3039_s30 = scalar_lea.hbm %s5276_s4, 3072 }
 0x72b   : > { %p3036_p13 = scmp.ne.s32.totalorder %s5224_s28, %s3035_s12  ;;  %p3040_p4 = scmp.lt.s32.totalorder %s5224_s28, %s5276_s4 }
 0x72c   : > { %p3041_p8 = scmp.lt.s32.totalorder %s3039_s30, %s3035_s12 }
 0x72d   : > { %p3037_p5 = pnand %p3036_p13, %p5460_p10 }
 0x72e   : > { %p3042_p3 = por %p3041_p8, %p3040_p4 }
 0x72f   : > { %p3038_p0 = pneg %p3037_p5 }
 0x731   : > { %p3043_p11 = pnand %p3042_p3, %p3038_p0 }
 0x733   : > { %3046 = shalt.err (!%p3043_p11)
}
 0x734   : > { %s3114_s6 = smov 256  }
 0x735   : > { %2838 = dma.vmem_to_hbm [thread:$0]  (%p5460_p10), %s5226_s7, 1536, %s5224_s28, %s2693_s19, %s3114_s6, %s3114_s6, %s3101_s24  }
 0x736 PF: > { %s2721_s26 = sand.u32 1, %s3077_s15   ;;  %p5461_p1 = scmp.ne.s32.totalorder %s5318_s22, 0 }
 0x737   : > { %p5462_p2 = scmp.ge.s32.totalorder %s3089_s18, 2  ;;  %s2722_s25 = scalar_lea.sflag [#allocation5], %s2721_s26 }
 0x739   : > { %p2852_p6 = pnand %p5462_p2, %p5461_p1 }
 0x73b   : > { %p2853_p12 = pneg %p2852_p6 }
 0x73d   : > { %3072 = dma.done.wait (%p2853_p12), %s2722_s25, 1536  }
 0x73e   : > { %3074 = vsyncadd (%p2853_p12), %s2722_s25, 4294965760  ;;  %p18_p7 = scmp.ge.s32.totalorder %s3212_s11, 4   ;;  %s5463_s15 = smov %s3081_s16 }
 0x73f   : > { %s5464_s16 = smov %s3085_s17  ;;  %s5465_s17 = smov %s3228_s20 }
 0x740   : > { %s5466_s18 = smov %s3212_s11  ;;  %20 = sbr.rel (!%p18_p7) target bundleno = 6 (0x6), region = 90 }
 0x745   :  { %2727 = vsyncpa [#allocation4], 1 }
 0x746   :  { %2729 = vsyncpa [#allocation4 + $0x1], 1 }
 0x747   :  { %2730 = vsyncpa [#allocation7], 1 }
 0x748   :  { %2731 = vsyncpa [#allocation5], 1 }
 0x749   :  { %2733 = vsyncpa [#allocation5 + $0x1], 1 }

</bundles_post_ra>
